<compile_context>
chip_gen: v7x
topology: tpu7x:2x2x1
jax: 0.10.0
libtpu: 0.0.40
codegen_flags: <defaults>
</compile_context>

<pallas_src>
import functools

import jax
import jax.numpy as jnp
from jax.experimental import pallas as pl
from jax.experimental.pallas import tpu as pltpu

EPS = 1e-5
LANE = 128


def _round_up(x, m):
    return ((x + m - 1) // m) * m


def _vmem_limit_bytes():
    """Generation-dependent scoped-VMEM limit (~3/4 of physical, capped)."""
    try:
        cap = int(pltpu.get_tpu_info().vmem_capacity_bytes)
    except Exception:  # query unavailable -> conservative default
        cap = 64 << 20
    return int(min(96 << 20, max(32 << 20, (cap * 3) // 4)))


def _pick_band_rows(H, W, band_rows):
    """Band height TH: must divide H; auto targets TH*W ~ <=1024 MXU rows."""
    if band_rows is not None:
        assert H % band_rows == 0, (H, band_rows)
        return int(band_rows)
    target = 1024
    th = 1
    for cand in range(1, H + 1):
        if H % cand == 0 and cand * W <= max(target, W):
            th = cand
    return th


# --------------------------------------------------------------------------------------
# shared: 3x3 "same" conv of one row band as a single big-K im2col matmul
# --------------------------------------------------------------------------------------
def _conv3x3_band_matmul(xbp, w_flat, TH, W):
    """xbp: (TH+4, W, C) rows = [zero guard, top halo, TH interior rows, bottom halo,
    zero guard]; halo rows already zeroed at image borders. w_flat: (9*C, Co) with taps
    flattened (ky, kx, ci) row-major. Returns (TH*W, Co) f32 (MXU accumulation)."""
    C = xbp.shape[-1]
    R = (TH + 4) * W
    # Pre-masked copies handle the left/right zero padding: a kx=0 tap only ever reads
    # column w-1 legitimately, so globally zeroing column W-1 of its source kills the
    # row-wraparound values (and symmetrically for kx=2 / column 0).
    wcol = jax.lax.broadcasted_iota(jnp.int32, (1, W, 1), 1)
    zeros = jnp.zeros_like(xbp)
    flats = (
        jnp.where(wcol != W - 1, xbp, zeros).reshape(R, C),   # for kx = 0 (reads col w-1)
        xbp.reshape(R, C),                                    # for kx = 1
        jnp.where(wcol != 0, xbp, zeros).reshape(R, C),       # for kx = 2 (reads col w+1)
    )
    taps = []
    for ky in range(3):
        for kx in range(3):
            start = (ky + 1) * W + (kx - 1)                   # contiguous sublane slice
            taps.append(jax.lax.slice_in_dim(flats[kx], start, start + TH * W, axis=0))
    patches = jnp.concatenate(taps, axis=-1)                  # (TH*W, 9*C) bf16
    return jnp.dot(patches, w_flat, preferred_element_type=jnp.float32)


# --------------------------------------------------------------------------------------
# pass 1: deconv1 (im2col matmul) + BN1 / BN_down partial statistics (no yd HBM write)
# --------------------------------------------------------------------------------------
def _conv1_stats_kernel(x_ref, w1_ref, wd_ref, y1_ref, s1_ref, sd_ref):
    # x_ref : (1, H, W, Ci) bf16 full image per n (resident across bands)
    # w1_ref: (9*Ci, Co) bf16, wd_ref: (Ci, Co) bf16
    # y1_ref: (1, TH, W, Co) bf16 band output (pre-BN)
    # s1_ref, sd_ref: (1, 2, Co) f32 per-image [sum, sum_sq] accumulators
    band = pl.program_id(1)
    n_bands = pl.num_programs(1)
    H = x_ref.shape[1]
    Ci = x_ref.shape[3]
    TH, W, Co = y1_ref.shape[1], y1_ref.shape[2], y1_ref.shape[3]

    row0 = pl.multiple_of(band * TH, TH)
    top_i = jnp.maximum(row0 - 1, 0)
    bot_i = jnp.minimum(row0 + TH, H - 1)

    zrow = jnp.zeros((1, W, Ci), x_ref.dtype)
    top = jnp.where(band > 0, x_ref[0, pl.ds(top_i, 1), :, :], zrow)
    mid = x_ref[0, pl.ds(row0, TH), :, :]                     # (TH, W, Ci)
    bot = jnp.where(band < n_bands - 1, x_ref[0, pl.ds(bot_i, 1), :, :], zrow)
    xbp = jnp.concatenate([zrow, top, mid, bot, zrow], axis=0)  # (TH+4, W, Ci)

    acc1 = _conv3x3_band_matmul(xbp, w1_ref[...], TH, W)      # (TH*W, Co) f32
    # 1x1 downsample deconv: computed only for its BN statistics (recomputed in pass 3).
    accd = jnp.dot(mid.reshape(TH * W, Ci), wd_ref[...],
                   preferred_element_type=jnp.float32)        # (TH*W, Co) f32

    y1_ref[...] = acc1.astype(y1_ref.dtype).reshape(1, TH, W, Co)

    @pl.when(band == 0)
    def _init_stats():
        s1_ref[...] = jnp.zeros_like(s1_ref)
        sd_ref[...] = jnp.zeros_like(sd_ref)

    s1_ref[...] += jnp.concatenate(
        [jnp.sum(acc1, axis=0, keepdims=True),
         jnp.sum(acc1 * acc1, axis=0, keepdims=True)], axis=0)[None]
    sd_ref[...] += jnp.concatenate(
        [jnp.sum(accd, axis=0, keepdims=True),
         jnp.sum(accd * accd, axis=0, keepdims=True)], axis=0)[None]


# --------------------------------------------------------------------------------------
# pass 2: bn1 + ReLU (per-band, on-the-fly) fused into deconv2 + BN2 partial statistics
# --------------------------------------------------------------------------------------
def _bn_relu_conv2_kernel(y1_ref, w2_ref, a1_ref, y2_ref, s2_ref):
    # y1_ref: (1, H, W, C) bf16 full image per n; a1_ref: (2, C) f32 [scale, shift]
    # w2_ref: (9*C, C) bf16; y2_ref: (1, TH, W, C) bf16; s2_ref: (1, 2, C) f32
    band = pl.program_id(1)
    n_bands = pl.num_programs(1)
    H = y1_ref.shape[1]
    TH, W, C = y2_ref.shape[1], y2_ref.shape[2], y2_ref.shape[3]

    scale = a1_ref[0:1, :].reshape(1, 1, C)
    shift = a1_ref[1:2, :].reshape(1, 1, C)

    def bn_relu(t):
        return jnp.maximum(t.astype(jnp.float32) * scale + shift, 0.0).astype(jnp.bfloat16)

    row0 = pl.multiple_of(band * TH, TH)
    top_i = jnp.maximum(row0 - 1, 0)
    bot_i = jnp.minimum(row0 + TH, H - 1)

    zrow = jnp.zeros((1, W, C), jnp.bfloat16)
    # conv2's zero padding applies to h = relu(bn1(y1)): out-of-image halo rows are zero.
    top = jnp.where(band > 0, bn_relu(y1_ref[0, pl.ds(top_i, 1), :, :]), zrow)
    mid = bn_relu(y1_ref[0, pl.ds(row0, TH), :, :])
    bot = jnp.where(band < n_bands - 1, bn_relu(y1_ref[0, pl.ds(bot_i, 1), :, :]), zrow)
    hbp = jnp.concatenate([zrow, top, mid, bot, zrow], axis=0)  # (TH+4, W, C)

    acc2 = _conv3x3_band_matmul(hbp, w2_ref[...], TH, W)      # (TH*W, C) f32

    y2_ref[...] = acc2.astype(y2_ref.dtype).reshape(1, TH, W, C)

    @pl.when(band == 0)
    def _init_stats():
        s2_ref[...] = jnp.zeros_like(s2_ref)

    s2_ref[...] += jnp.concatenate(
        [jnp.sum(acc2, axis=0, keepdims=True),
         jnp.sum(acc2 * acc2, axis=0, keepdims=True)], axis=0)[None]


# --------------------------------------------------------------------------------------
# pass 3: bn2 + recomputed 1x1 downsample + bn_down + residual add + ReLU
#          -> unpadded (P valid channels) f32 NHWC output
# --------------------------------------------------------------------------------------
def _finalize_kernel(y2_ref, x_ref, wd_ref, a2_ref, ad_ref, out_ref):
    TH, W, Co = y2_ref.shape[1], y2_ref.shape[2], y2_ref.shape[3]
    Ci = x_ref.shape[3]
    P = out_ref.shape[3]

    scale2 = a2_ref[0:1, :].reshape(1, 1, Co)
    shift2 = a2_ref[1:2, :].reshape(1, 1, Co)
    scaled = ad_ref[0:1, :].reshape(1, 1, Co)
    shiftd = ad_ref[1:2, :].reshape(1, 1, Co)

    y2n = y2_ref[0, :, :, :].astype(jnp.float32) * scale2 + shift2

    # recompute the 1x1 downsample deconv from the bf16 x band (identical bf16 operands
    # -> bit-identical to the pass-1 values the sd statistics were computed over).
    accd = jnp.dot(x_ref[0, :, :, :].reshape(TH * W, Ci), wd_ref[...],
                   preferred_element_type=jnp.float32).reshape(TH, W, Co)
    ydn = accd * scaled + shiftd

    res = jnp.maximum(y2n + ydn, 0.0)
    out_ref[...] = res[:, :, :P].reshape(1, TH, W, P)


# --------------------------------------------------------------------------------------
# wrapper
# --------------------------------------------------------------------------------------
def _bn_coeffs(stats, count):
    """Finish BN from per-image [sum, sum_sq] partials -> (2, C) = [scale, shift]."""
    s = jnp.sum(stats, axis=0)                         # (2, C)
    mean = s[0] / count
    var = jnp.maximum(s[1] / count - mean * mean, 0.0)
    scale = jax.lax.rsqrt(var + EPS)
    return jnp.stack([scale, -mean * scale], axis=0)   # gamma=1, beta=0


def _deconv3x3_to_im2col(w, cin_pad, cout_pad):
    """(Cin, Cout, 3, 3) ConvTranspose2d weight -> (9*cin_pad, cout_pad) bf16 im2col matrix.

    ConvTranspose2d(stride=1, padding=1) == 'same' conv with spatially flipped taps and
    in/out channels swapped.
    """
    taps = jnp.transpose(jnp.flip(w, (2, 3)), (2, 3, 0, 1))           # (ky, kx, ci, co)
    taps = jnp.pad(taps, ((0, 0), (0, 0),
                          (0, cin_pad - w.shape[0]), (0, cout_pad - w.shape[1])))
    return taps.reshape(9 * cin_pad, cout_pad).astype(jnp.bfloat16)


def deres_block_forward(x_nchw, w_deconv1, w_deconv2, w_down, *, band_rows=None):
    """x_nchw: (N, Cin, H, W); weights in PyTorch ConvTranspose2d layout (Cin, Cout, kH, kW)."""
    N, Cin, H, W = x_nchw.shape
    P = w_deconv1.shape[1]
    Ci = _round_up(Cin, LANE)
    Co = _round_up(P, LANE)

    TH = _pick_band_rows(H, W, band_rows)
    nH = H // TH
    vmem_limit = _vmem_limit_bytes()

    # NCHW -> NHWC, lane-dense (128-multiple) channels, bf16 MXU operands.
    x = jnp.transpose(x_nchw, (0, 2, 3, 1))
    x = jnp.pad(x, ((0, 0), (0, 0), (0, 0), (0, Ci - Cin))).astype(jnp.bfloat16)

    w1 = _deconv3x3_to_im2col(w_deconv1, Ci, Co)                       # (9*Ci, Co)
    w2 = _deconv3x3_to_im2col(w_deconv2, Co, Co)                       # (9*Co, Co)
    wd = jnp.pad(w_down[:, :, 0, 0], ((0, Ci - Cin), (0, Co - P))).astype(jnp.bfloat16)

    sem12 = ("parallel", "arbitrary")    # N across TCs; bands accumulate BN stats

    # ---------------- pass 1 ----------------
    cost1 = pl.CostEstimate(
        flops=int(2 * N * H * W * 10 * Ci * Co + 4 * N * H * W * Co),
        transcendentals=0,
        bytes_accessed=int(N * H * W * Ci * 2 + 9 * Ci * Co * 2 + Ci * Co * 2
                           + N * H * W * Co * 2 + 2 * N * 2 * Co * 4))
    y1, s1, sd = pl.pallas_call(
        _conv1_stats_kernel,
        grid_spec=pltpu.PrefetchScalarGridSpec(
            num_scalar_prefetch=0,
            grid=(N, nH),
            in_specs=[
                pl.BlockSpec((1, H, W, Ci), lambda n, b: (n, 0, 0, 0)),
                pl.BlockSpec((9 * Ci, Co), lambda n, b: (0, 0)),
                pl.BlockSpec((Ci, Co), lambda n, b: (0, 0)),
            ],
            out_specs=[
                pl.BlockSpec((1, TH, W, Co), lambda n, b: (n, b, 0, 0)),
                pl.BlockSpec((1, 2, Co), lambda n, b: (n, 0, 0)),
                pl.BlockSpec((1, 2, Co), lambda n, b: (n, 0, 0)),
            ],
        ),
        out_shape=[
            jax.ShapeDtypeStruct((N, H, W, Co), jnp.bfloat16),
            jax.ShapeDtypeStruct((N, 2, Co), jnp.float32),
            jax.ShapeDtypeStruct((N, 2, Co), jnp.float32),
        ],
        compiler_params=pltpu.CompilerParams(
            dimension_semantics=sem12, vmem_limit_bytes=vmem_limit),
        cost_estimate=cost1,
    )(x, w1, wd)

    count = float(N * H * W)
    a1 = _bn_coeffs(s1, count)           # bn1 scale/shift
    ad = _bn_coeffs(sd, count)           # downsample-bn scale/shift

    # ---------------- pass 2 ----------------
    cost2 = pl.CostEstimate(
        flops=int(2 * N * H * W * 9 * Co * Co + 8 * N * H * W * Co),
        transcendentals=0,
        bytes_accessed=int(N * H * W * Co * 2 + 9 * Co * Co * 2 + 2 * Co * 4
                           + N * H * W * Co * 2 + N * 2 * Co * 4))
    y2, s2 = pl.pallas_call(
        _bn_relu_conv2_kernel,
        grid_spec=pltpu.PrefetchScalarGridSpec(
            num_scalar_prefetch=0,
            grid=(N, nH),
            in_specs=[
                pl.BlockSpec((1, H, W, Co), lambda n, b: (n, 0, 0, 0)),
                pl.BlockSpec((9 * Co, Co), lambda n, b: (0, 0)),
                pl.BlockSpec((2, Co), lambda n, b: (0, 0)),
            ],
            out_specs=[
                pl.BlockSpec((1, TH, W, Co), lambda n, b: (n, b, 0, 0)),
                pl.BlockSpec((1, 2, Co), lambda n, b: (n, 0, 0)),
            ],
        ),
        out_shape=[
            jax.ShapeDtypeStruct((N, H, W, Co), jnp.bfloat16),
            jax.ShapeDtypeStruct((N, 2, Co), jnp.float32),
        ],
        compiler_params=pltpu.CompilerParams(
            dimension_semantics=sem12, vmem_limit_bytes=vmem_limit),
        cost_estimate=cost2,
    )(y1, w2, a1)

    a2 = _bn_coeffs(s2, count)           # bn2 scale/shift

    # ---------------- pass 3 ----------------
    cost3 = pl.CostEstimate(
        flops=int(2 * N * H * W * Ci * Co + 8 * N * H * W * Co),
        transcendentals=0,
        bytes_accessed=int(N * H * W * Co * 2 + N * H * W * Ci * 2 + Ci * Co * 2
                           + 4 * Co * 4 + N * H * W * P * 4))
    out_nhwc = pl.pallas_call(
        _finalize_kernel,
        grid_spec=pltpu.PrefetchScalarGridSpec(
            num_scalar_prefetch=0,
            grid=(N, nH),
            in_specs=[
                pl.BlockSpec((1, TH, W, Co), lambda n, b: (n, b, 0, 0)),
                pl.BlockSpec((1, TH, W, Ci), lambda n, b: (n, b, 0, 0)),
                pl.BlockSpec((Ci, Co), lambda n, b: (0, 0)),
                pl.BlockSpec((2, Co), lambda n, b: (0, 0)),
                pl.BlockSpec((2, Co), lambda n, b: (0, 0)),
            ],
            out_specs=pl.BlockSpec((1, TH, W, P), lambda n, b: (n, b, 0, 0)),
        ),
        out_shape=jax.ShapeDtypeStruct((N, H, W, P), jnp.float32),
        compiler_params=pltpu.CompilerParams(
            dimension_semantics=("parallel", "parallel"), vmem_limit_bytes=vmem_limit),
        cost_estimate=cost3,
    )(y2, x, wd, a2, ad)

    # only the true-sized (unpadded) output crosses HBM; this transpose is tiny.
    return jnp.transpose(out_nhwc, (0, 3, 1, 2))    # NHWC(P) -> NCHW


# --------------------------------------------------------------------------------------
# pure-JAX reference (NCHW, f32, XLA convolutions) for correctness checking
# --------------------------------------------------------------------------------------
def _reference(x, wd1, wd2, wdn):
    def tconv(z, w, k):
        w_conv = jnp.transpose(jnp.flip(w, (2, 3)), (1, 0, 2, 3))   # (Co, Ci, k, k)
        pad = k - 1 - (k // 2)
        return jax.lax.conv_general_dilated(
            z, w_conv, window_strides=(1, 1),
            padding=((pad, pad), (pad, pad)),
            dimension_numbers=('NCHW', 'OIHW', 'NCHW'),
            precision=jax.lax.Precision.HIGHEST)

    def bn(z):
        mean = jnp.mean(z, axis=(0, 2, 3), keepdims=True)
        var = jnp.mean((z - mean) ** 2, axis=(0, 2, 3), keepdims=True)
        return (z - mean) * jax.lax.rsqrt(var + EPS)

    out = jax.nn.relu(bn(tconv(x, wd1, 3)))
    out = bn(tconv(out, wd2, 3))
    res = bn(tconv(x, wdn, 1))
    return jax.nn.relu(out + res)


if __name__ == "__main__":
    key = jax.random.PRNGKey(0)
    k1, k2, k3, k4 = jax.random.split(key, 4)

    # small shapes consistent with the module: N=2, inplanes=4, planes=8, 16x16 spatial
    N, Cin, P, H, W = 2, 4, 8, 16, 16
    x = jax.random.normal(k1, (N, Cin, H, W), jnp.float32)

    # deterministic synthetic weights in PyTorch ConvTranspose2d layout (Cin, Cout, kH, kW)
    w_deconv1 = 0.3 * jax.random.normal(k2, (Cin, P, 3, 3), jnp.float32)
    w_deconv2 = 0.3 * jax.random.normal(k3, (P, P, 3, 3), jnp.float32)
    w_down = 0.3 * jax.random.normal(k4, (Cin, P, 1, 1), jnp.float32)

    # band_rows=8 -> two bands of 8 rows each: exercises the multi-band halo path.
    fwd = jax.jit(functools.partial(deres_block_forward, band_rows=8))
    out = jax.block_until_ready(fwd(x, w_deconv1, w_deconv2, w_down))

    ref = _reference(x, w_deconv1, w_deconv2, w_down)
    assert out.shape == (N, P, H, W), out.shape
    max_err = float(jnp.max(jnp.abs(out - ref)))
    # bf16 MXU operands + bf16 intermediates vs f32 reference -> ~1e-2 typical error
    assert jnp.allclose(out, ref, atol=4e-2, rtol=4e-2), f"max abs err {max_err}"

    print("KERNEL_OK")
</pallas_src>

<mosaic_0001>
module attributes {stable_mosaic.version = 11 : i64} {
  func.func @_bn_relu_conv2_kernel(%arg0: i32, %arg1: i32, %arg2: memref<1x16x16x128xbf16, #tpu.memory_space<vmem>>, %arg3: memref<1152x128xbf16, #tpu.memory_space<vmem>>, %arg4: memref<2x128xf32, #tpu.memory_space<vmem>>, %arg5: memref<1x8x16x128xbf16, #tpu.memory_space<vmem>>, %arg6: memref<1x2x128xf32, #tpu.memory_space<vmem>>) attributes {dimension_semantics = [#tpu.dimension_semantics<parallel>, #tpu.dimension_semantics<arbitrary>], iteration_bounds = array<i64: 2, 2>, scalar_prefetch = 0 : i64, scratch_operands = 0 : i64, tpu.core_type = #tpu.core_type<tc>, window_params = [{transform_indices = @transform_0, window_bounds = array<i64: 1, 16, 16, 128>}, {pipeline_mode = #tpu.pipeline_mode<synchronous>, transform_indices = @transform_1, window_bounds = array<i64: 1152, 128>}, {pipeline_mode = #tpu.pipeline_mode<synchronous>, transform_indices = @transform_2, window_bounds = array<i64: 2, 128>}, {transform_indices = @transform_3, window_bounds = array<i64: 1, 8, 16, 128>}, {transform_indices = @transform_4, window_bounds = array<i64: 1, 2, 128>}]} {
    %c0 = arith.constant 0 : index
    %c0_0 = arith.constant 0 : index
    %0 = vector.load %arg4[%c0, %c0_0] : memref<2x128xf32, #tpu.memory_space<vmem>>, vector<1x128xf32>
    %1 = vector.shape_cast %0 : vector<1x128xf32> to vector<1x1x128xf32>
    %c1 = arith.constant 1 : index
    %c0_1 = arith.constant 0 : index
    %2 = vector.load %arg4[%c1, %c0_1] : memref<2x128xf32, #tpu.memory_space<vmem>>, vector<1x128xf32>
    %3 = vector.shape_cast %2 : vector<1x128xf32> to vector<1x1x128xf32>
    %c8_i32 = arith.constant 8 : i32
    %4 = arith.muli %arg1, %c8_i32 : i32
    %5 = tpu.assume_multiple %4, 8 : i32
    %c1_i32 = arith.constant 1 : i32
    %6 = arith.subi %5, %c1_i32 : i32
    %c0_i32 = arith.constant 0 : i32
    %7 = arith.maxsi %6, %c0_i32 : i32
    %c8_i32_2 = arith.constant 8 : i32
    %8 = arith.addi %5, %c8_i32_2 : i32
    %c15_i32 = arith.constant 15 : i32
    %9 = arith.minsi %8, %c15_i32 : i32
    %cst = arith.constant 0.000000e+00 : bf16
    %10 = vector.broadcast %cst : bf16 to vector<1x16x128xbf16>
    %c0_i32_3 = arith.constant 0 : i32
    %11 = arith.cmpi sgt, %arg1, %c0_i32_3 : i32
    %c0_4 = arith.constant 0 : index
    %12 = arith.index_cast %7 : i32 to index
    %c0_5 = arith.constant 0 : index
    %c0_6 = arith.constant 0 : index
    %13 = vector.load %arg2[%c0_4, %12, %c0_5, %c0_6] : memref<1x16x16x128xbf16, #tpu.memory_space<vmem>>, vector<1x1x16x128xbf16>
    %14 = vector.shape_cast %13 : vector<1x1x16x128xbf16> to vector<1x16x128xbf16>
    %15 = arith.extf %14 : vector<1x16x128xbf16> to vector<1x16x128xf32>
    %16 = vector.broadcast %1 : vector<1x1x128xf32> to vector<1x16x128xf32>
    %17 = arith.mulf %15, %16 : vector<1x16x128xf32>
    %18 = vector.broadcast %3 : vector<1x1x128xf32> to vector<1x16x128xf32>
    %19 = arith.addf %17, %18 : vector<1x16x128xf32>
    %cst_7 = arith.constant 0.000000e+00 : f32
    %20 = vector.broadcast %cst_7 : f32 to vector<1x16x128xf32>
    %21 = arith.maximumf %19, %20 : vector<1x16x128xf32>
    %22 = arith.truncf %21 : vector<1x16x128xf32> to vector<1x16x128xbf16>
    %23 = arith.select %11, %22, %10 : vector<1x16x128xbf16>
    %c0_8 = arith.constant 0 : index
    %24 = arith.index_cast %5 : i32 to index
    %c0_9 = arith.constant 0 : index
    %c0_10 = arith.constant 0 : index
    %25 = vector.load %arg2[%c0_8, %24, %c0_9, %c0_10] : memref<1x16x16x128xbf16, #tpu.memory_space<vmem>>, vector<1x8x16x128xbf16>
    %26 = vector.shape_cast %25 : vector<1x8x16x128xbf16> to vector<8x16x128xbf16>
    %27 = arith.extf %26 : vector<8x16x128xbf16> to vector<8x16x128xf32>
    %28 = vector.broadcast %1 : vector<1x1x128xf32> to vector<8x16x128xf32>
    %29 = arith.mulf %27, %28 : vector<8x16x128xf32>
    %30 = vector.broadcast %3 : vector<1x1x128xf32> to vector<8x16x128xf32>
    %31 = arith.addf %29, %30 : vector<8x16x128xf32>
    %cst_11 = arith.constant 0.000000e+00 : f32
    %32 = vector.broadcast %cst_11 : f32 to vector<8x16x128xf32>
    %33 = arith.maximumf %31, %32 : vector<8x16x128xf32>
    %34 = arith.truncf %33 : vector<8x16x128xf32> to vector<8x16x128xbf16>
    %c1_i32_12 = arith.constant 1 : i32
    %35 = arith.cmpi slt, %arg1, %c1_i32_12 : i32
    %c0_13 = arith.constant 0 : index
    %36 = arith.index_cast %9 : i32 to index
    %c0_14 = arith.constant 0 : index
    %c0_15 = arith.constant 0 : index
    %37 = vector.load %arg2[%c0_13, %36, %c0_14, %c0_15] : memref<1x16x16x128xbf16, #tpu.memory_space<vmem>>, vector<1x1x16x128xbf16>
    %38 = vector.shape_cast %37 : vector<1x1x16x128xbf16> to vector<1x16x128xbf16>
    %39 = arith.extf %38 : vector<1x16x128xbf16> to vector<1x16x128xf32>
    %40 = vector.broadcast %1 : vector<1x1x128xf32> to vector<1x16x128xf32>
    %41 = arith.mulf %39, %40 : vector<1x16x128xf32>
    %42 = vector.broadcast %3 : vector<1x1x128xf32> to vector<1x16x128xf32>
    %43 = arith.addf %41, %42 : vector<1x16x128xf32>
    %cst_16 = arith.constant 0.000000e+00 : f32
    %44 = vector.broadcast %cst_16 : f32 to vector<1x16x128xf32>
    %45 = arith.maximumf %43, %44 : vector<1x16x128xf32>
    %46 = arith.truncf %45 : vector<1x16x128xf32> to vector<1x16x128xbf16>
    %47 = arith.select %35, %46, %10 : vector<1x16x128xbf16>
    %48 = tpu.concatenate %10, %23, %34, %47, %10 in 0 : vector<1x16x128xbf16>, vector<1x16x128xbf16>, vector<8x16x128xbf16>, vector<1x16x128xbf16>, vector<1x16x128xbf16> -> vector<12x16x128xbf16>
    %c0_17 = arith.constant 0 : index
    %c0_18 = arith.constant 0 : index
    %49 = vector.load %arg3[%c0_17, %c0_18] : memref<1152x128xbf16, #tpu.memory_space<vmem>>, vector<1152x128xbf16>
    %50 = tpu.iota {dimensions = array<i32: 1>} : vector<1x16x1xi32>
    %cst_19 = arith.constant 0.000000e+00 : bf16
    %51 = vector.broadcast %cst_19 : bf16 to vector<12x16x128xbf16>
    %c15_i32_20 = arith.constant 15 : i32
    %52 = vector.broadcast %c15_i32_20 : i32 to vector<1x16x1xi32>
    %53 = arith.cmpi ne, %50, %52 : vector<1x16x1xi32>
    %54 = vector.shape_cast %53 : vector<1x16x1xi1> to vector<1x16x1xi1>
    %55 = vector.broadcast %54 : vector<1x16x1xi1> to vector<12x16x128xi1>
    %56 = arith.select %55, %48, %51 : vector<12x16x128xi1>, vector<12x16x128xbf16>
    %57 = vector.shape_cast %56 : vector<12x16x128xbf16> to vector<192x128xbf16>
    %58 = vector.shape_cast %48 : vector<12x16x128xbf16> to vector<192x128xbf16>
    %c0_i32_21 = arith.constant 0 : i32
    %59 = vector.broadcast %c0_i32_21 : i32 to vector<1x16x1xi32>
    %60 = arith.cmpi ne, %50, %59 : vector<1x16x1xi32>
    %61 = vector.shape_cast %60 : vector<1x16x1xi1> to vector<1x16x1xi1>
    %62 = vector.broadcast %61 : vector<1x16x1xi1> to vector<12x16x128xi1>
    %63 = arith.select %62, %48, %51 : vector<12x16x128xi1>, vector<12x16x128xbf16>
    %64 = vector.shape_cast %63 : vector<12x16x128xbf16> to vector<192x128xbf16>
    %65 = vector.extract_strided_slice %57 {offsets = [15, 0], sizes = [128, 128], strides = [1, 1]} : vector<192x128xbf16> to vector<128x128xbf16>
    %66 = vector.extract_strided_slice %58 {offsets = [16, 0], sizes = [128, 128], strides = [1, 1]} : vector<192x128xbf16> to vector<128x128xbf16>
    %67 = vector.extract_strided_slice %64 {offsets = [17, 0], sizes = [128, 128], strides = [1, 1]} : vector<192x128xbf16> to vector<128x128xbf16>
    %68 = vector.extract_strided_slice %57 {offsets = [31, 0], sizes = [128, 128], strides = [1, 1]} : vector<192x128xbf16> to vector<128x128xbf16>
    %69 = vector.extract_strided_slice %58 {offsets = [32, 0], sizes = [128, 128], strides = [1, 1]} : vector<192x128xbf16> to vector<128x128xbf16>
    %70 = vector.extract_strided_slice %64 {offsets = [33, 0], sizes = [128, 128], strides = [1, 1]} : vector<192x128xbf16> to vector<128x128xbf16>
    %71 = vector.extract_strided_slice %57 {offsets = [47, 0], sizes = [128, 128], strides = [1, 1]} : vector<192x128xbf16> to vector<128x128xbf16>
    %72 = vector.extract_strided_slice %58 {offsets = [48, 0], sizes = [128, 128], strides = [1, 1]} : vector<192x128xbf16> to vector<128x128xbf16>
    %73 = vector.extract_strided_slice %64 {offsets = [49, 0], sizes = [128, 128], strides = [1, 1]} : vector<192x128xbf16> to vector<128x128xbf16>
    %74 = tpu.concatenate %65, %66, %67, %68, %69, %70, %71, %72, %73 in 1 : vector<128x128xbf16>, vector<128x128xbf16>, vector<128x128xbf16>, vector<128x128xbf16>, vector<128x128xbf16>, vector<128x128xbf16>, vector<128x128xbf16>, vector<128x128xbf16>, vector<128x128xbf16> -> vector<128x1152xbf16>
    %cst_22 = arith.constant dense<0.000000e+00> : vector<128x128xf32>
    %75 = tpu.matmul %74, %49, %cst_22 {dimension_numbers = #tpu.dot_dimension_numbers<[1], [0], [0], [1], [0, 0, 1, 1], [], []>} : vector<128x1152xbf16>, vector<1152x128xbf16>, vector<128x128xf32> -> vector<128x128xf32>
    %76 = arith.truncf %75 : vector<128x128xf32> to vector<128x128xbf16>
    %77 = vector.shape_cast %76 : vector<128x128xbf16> to vector<1x8x16x128xbf16>
    %c0_23 = arith.constant 0 : index
    %c0_24 = arith.constant 0 : index
    %c0_25 = arith.constant 0 : index
    %c0_26 = arith.constant 0 : index
    %78 = vector.load %arg5[%c0_23, %c0_24, %c0_25, %c0_26] : memref<1x8x16x128xbf16, #tpu.memory_space<vmem>>, vector<1x8x16x128xbf16>
    tpu.vector_store %arg5[%c0_23, %c0_24, %c0_25, %c0_26], %77 {strides = array<i32>} : memref<1x8x16x128xbf16, #tpu.memory_space<vmem>>, vector<1x8x16x128xbf16>,
    %c0_i32_27 = arith.constant 0 : i32
    %79 = arith.cmpi eq, %arg1, %c0_i32_27 : i32
    %80 = arith.extui %79 : i1 to i32
    %c0_i32_28 = arith.constant 0 : i32
    %81 = arith.cmpi ne, %80, %c0_i32_28 : i32
    scf.if %81 {
      %cst_37 = arith.constant 0.000000e+00 : f32
      %92 = vector.broadcast %cst_37 : f32 to vector<1x2x128xf32>
      %c0_38 = arith.constant 0 : index
      %c0_39 = arith.constant 0 : index
      %c0_40 = arith.constant 0 : index
      %93 = vector.load %arg6[%c0_38, %c0_39, %c0_40] : memref<1x2x128xf32, #tpu.memory_space<vmem>>, vector<1x2x128xf32>
      tpu.vector_store %arg6[%c0_38, %c0_39, %c0_40], %92 {strides = array<i32>} : memref<1x2x128xf32, #tpu.memory_space<vmem>>, vector<1x2x128xf32>,
    } else {
    }
    %c0_29 = arith.constant 0 : index
    %c0_30 = arith.constant 0 : index
    %c0_31 = arith.constant 0 : index
    %82 = vector.load %arg6[%c0_29, %c0_30, %c0_31] : memref<1x2x128xf32, #tpu.memory_space<vmem>>, vector<1x2x128xf32>
    %cst_32 = arith.constant dense<0.000000e+00> : vector<128xf32>
    %83 = vector.multi_reduction <add>, %75, %cst_32 [0] : vector<128x128xf32> to vector<128xf32>
    %84 = vector.shape_cast %83 : vector<128xf32> to vector<1x128xf32>
    %85 = arith.mulf %75, %75 : vector<128x128xf32>
    %cst_33 = arith.constant dense<0.000000e+00> : vector<128xf32>
    %86 = vector.multi_reduction <add>, %85, %cst_33 [0] : vector<128x128xf32> to vector<128xf32>
    %87 = vector.shape_cast %86 : vector<128xf32> to vector<1x128xf32>
    %88 = tpu.concatenate %84, %87 in 0 : vector<1x128xf32>, vector<1x128xf32> -> vector<2x128xf32>
    %89 = vector.shape_cast %88 : vector<2x128xf32> to vector<1x2x128xf32>
    %90 = arith.addf %82, %89 : vector<1x2x128xf32>
    %c0_34 = arith.constant 0 : index
    %c0_35 = arith.constant 0 : index
    %c0_36 = arith.constant 0 : index
    %91 = vector.load %arg6[%c0_34, %c0_35, %c0_36] : memref<1x2x128xf32, #tpu.memory_space<vmem>>, vector<1x2x128xf32>
    tpu.vector_store %arg6[%c0_34, %c0_35, %c0_36], %90 {strides = array<i32>} : memref<1x2x128xf32, #tpu.memory_space<vmem>>, vector<1x2x128xf32>,
    return
  }
  func.func @transform_0(%arg0: i32, %arg1: i32) -> (i32, i32, i32, i32) {
    %c0_i32 = arith.constant 0 : i32
    %c0_i32_0 = arith.constant 0 : i32
    %c0_i32_1 = arith.constant 0 : i32
    %c0_i32_2 = arith.constant 0 : i32
    return %arg0, %c0_i32, %c0_i32_0, %c0_i32_1 : i32, i32, i32, i32
  }
  func.func @transform_1(%arg0: i32, %arg1: i32) -> (i32, i32) {
    %c0_i32 = arith.constant 0 : i32
    %c0_i32_0 = arith.constant 0 : i32
    %c0_i32_1 = arith.constant 0 : i32
    return %c0_i32, %c0_i32_0 : i32, i32
  }
  func.func @transform_2(%arg0: i32, %arg1: i32) -> (i32, i32) {
    %c0_i32 = arith.constant 0 : i32
    %c0_i32_0 = arith.constant 0 : i32
    %c0_i32_1 = arith.constant 0 : i32
    return %c0_i32, %c0_i32_0 : i32, i32
  }
  func.func @transform_3(%arg0: i32, %arg1: i32) -> (i32, i32, i32, i32) {
    %c0_i32 = arith.constant 0 : i32
    %c0_i32_0 = arith.constant 0 : i32
    %c0_i32_1 = arith.constant 0 : i32
    return %arg0, %arg1, %c0_i32, %c0_i32_0 : i32, i32, i32, i32
  }
  func.func @transform_4(%arg0: i32, %arg1: i32) -> (i32, i32, i32) {
    %c0_i32 = arith.constant 0 : i32
    %c0_i32_0 = arith.constant 0 : i32
    %c0_i32_1 = arith.constant 0 : i32
    return %arg0, %c0_i32, %c0_i32_0 : i32, i32, i32
  }
}

module attributes {stable_mosaic.version = 11 : i64} {
  func.func @_finalize_kernel(%arg0: i32, %arg1: i32, %arg2: memref<1x8x16x128xbf16, #tpu.memory_space<vmem>>, %arg3: memref<1x8x16x128xbf16, #tpu.memory_space<vmem>>, %arg4: memref<128x128xbf16, #tpu.memory_space<vmem>>, %arg5: memref<2x128xf32, #tpu.memory_space<vmem>>, %arg6: memref<2x128xf32, #tpu.memory_space<vmem>>, %arg7: memref<1x8x16x8xf32, #tpu.memory_space<vmem>>) attributes {dimension_semantics = [#tpu.dimension_semantics<parallel>, #tpu.dimension_semantics<parallel>], iteration_bounds = array<i64: 2, 2>, scalar_prefetch = 0 : i64, scratch_operands = 0 : i64, tpu.core_type = #tpu.core_type<tc>, window_params = [{transform_indices = @transform_0, window_bounds = array<i64: 1, 8, 16, 128>}, {transform_indices = @transform_1, window_bounds = array<i64: 1, 8, 16, 128>}, {pipeline_mode = #tpu.pipeline_mode<synchronous>, transform_indices = @transform_2, window_bounds = array<i64: 128, 128>}, {pipeline_mode = #tpu.pipeline_mode<synchronous>, transform_indices = @transform_3, window_bounds = array<i64: 2, 128>}, {pipeline_mode = #tpu.pipeline_mode<synchronous>, transform_indices = @transform_4, window_bounds = array<i64: 2, 128>}, {transform_indices = @transform_5, window_bounds = array<i64: 1, 8, 16, 8>}]} {
    %c0 = arith.constant 0 : index
    %c0_0 = arith.constant 0 : index
    %0 = vector.load %arg5[%c0, %c0_0] : memref<2x128xf32, #tpu.memory_space<vmem>>, vector<1x128xf32>
    %1 = vector.shape_cast %0 : vector<1x128xf32> to vector<1x1x128xf32>
    %c1 = arith.constant 1 : index
    %c0_1 = arith.constant 0 : index
    %2 = vector.load %arg5[%c1, %c0_1] : memref<2x128xf32, #tpu.memory_space<vmem>>, vector<1x128xf32>
    %3 = vector.shape_cast %2 : vector<1x128xf32> to vector<1x1x128xf32>
    %c0_2 = arith.constant 0 : index
    %c0_3 = arith.constant 0 : index
    %4 = vector.load %arg6[%c0_2, %c0_3] : memref<2x128xf32, #tpu.memory_space<vmem>>, vector<1x128xf32>
    %5 = vector.shape_cast %4 : vector<1x128xf32> to vector<1x1x128xf32>
    %c1_4 = arith.constant 1 : index
    %c0_5 = arith.constant 0 : index
    %6 = vector.load %arg6[%c1_4, %c0_5] : memref<2x128xf32, #tpu.memory_space<vmem>>, vector<1x128xf32>
    %7 = vector.shape_cast %6 : vector<1x128xf32> to vector<1x1x128xf32>
    %c0_6 = arith.constant 0 : index
    %c0_7 = arith.constant 0 : index
    %c0_8 = arith.constant 0 : index
    %c0_9 = arith.constant 0 : index
    %8 = vector.load %arg2[%c0_6, %c0_7, %c0_8, %c0_9] : memref<1x8x16x128xbf16, #tpu.memory_space<vmem>>, vector<1x8x16x128xbf16>
    %9 = vector.shape_cast %8 : vector<1x8x16x128xbf16> to vector<8x16x128xbf16>
    %10 = arith.extf %9 : vector<8x16x128xbf16> to vector<8x16x128xf32>
    %11 = vector.broadcast %1 : vector<1x1x128xf32> to vector<8x16x128xf32>
    %12 = arith.mulf %10, %11 : vector<8x16x128xf32>
    %13 = vector.broadcast %3 : vector<1x1x128xf32> to vector<8x16x128xf32>
    %14 = arith.addf %12, %13 : vector<8x16x128xf32>
    %c0_10 = arith.constant 0 : index
    %c0_11 = arith.constant 0 : index
    %c0_12 = arith.constant 0 : index
    %c0_13 = arith.constant 0 : index
    %15 = vector.load %arg3[%c0_10, %c0_11, %c0_12, %c0_13] : memref<1x8x16x128xbf16, #tpu.memory_space<vmem>>, vector<1x8x16x128xbf16>
    %16 = vector.shape_cast %15 : vector<1x8x16x128xbf16> to vector<8x16x128xbf16>
    %17 = vector.shape_cast %16 : vector<8x16x128xbf16> to vector<128x128xbf16>
    %c0_14 = arith.constant 0 : index
    %c0_15 = arith.constant 0 : index
    %18 = vector.load %arg4[%c0_14, %c0_15] : memref<128x128xbf16, #tpu.memory_space<vmem>>, vector<128x128xbf16>
    %cst = arith.constant dense<0.000000e+00> : vector<128x128xf32>
    %19 = tpu.matmul %17, %18, %cst {dimension_numbers = #tpu.dot_dimension_numbers<[1], [0], [0], [1], [0, 0, 1, 1], [], []>} : vector<128x128xbf16>, vector<128x128xbf16>, vector<128x128xf32> -> vector<128x128xf32>
    %20 = vector.shape_cast %19 : vector<128x128xf32> to vector<8x16x128xf32>
    %21 = vector.broadcast %5 : vector<1x1x128xf32> to vector<8x16x128xf32>
    %22 = arith.mulf %20, %21 : vector<8x16x128xf32>
    %23 = vector.broadcast %7 : vector<1x1x128xf32> to vector<8x16x128xf32>
    %24 = arith.addf %22, %23 : vector<8x16x128xf32>
    %25 = arith.addf %14, %24 : vector<8x16x128xf32>
    %cst_16 = arith.constant 0.000000e+00 : f32
    %26 = vector.broadcast %cst_16 : f32 to vector<8x16x128xf32>
    %27 = arith.maximumf %25, %26 : vector<8x16x128xf32>
    %28 = vector.extract_strided_slice %27 {offsets = [0, 0, 0], sizes = [8, 16, 8], strides = [1, 1, 1]} : vector<8x16x128xf32> to vector<8x16x8xf32>
    %29 = vector.shape_cast %28 : vector<8x16x8xf32> to vector<1x8x16x8xf32>
    %c0_17 = arith.constant 0 : index
    %c0_18 = arith.constant 0 : index
    %c0_19 = arith.constant 0 : index
    %c0_20 = arith.constant 0 : index
    %30 = vector.load %arg7[%c0_17, %c0_18, %c0_19, %c0_20] : memref<1x8x16x8xf32, #tpu.memory_space<vmem>>, vector<1x8x16x8xf32>
    tpu.vector_store %arg7[%c0_17, %c0_18, %c0_19, %c0_20], %29 {strides = array<i32>} : memref<1x8x16x8xf32, #tpu.memory_space<vmem>>, vector<1x8x16x8xf32>,
    return
  }
  func.func @transform_0(%arg0: i32, %arg1: i32) -> (i32, i32, i32, i32) {
    %c0_i32 = arith.constant 0 : i32
    %c0_i32_0 = arith.constant 0 : i32
    %c0_i32_1 = arith.constant 0 : i32
    return %arg0, %arg1, %c0_i32, %c0_i32_0 : i32, i32, i32, i32
  }
  func.func @transform_1(%arg0: i32, %arg1: i32) -> (i32, i32, i32, i32) {
    %c0_i32 = arith.constant 0 : i32
    %c0_i32_0 = arith.constant 0 : i32
    %c0_i32_1 = arith.constant 0 : i32
    return %arg0, %arg1, %c0_i32, %c0_i32_0 : i32, i32, i32, i32
  }
  func.func @transform_2(%arg0: i32, %arg1: i32) -> (i32, i32) {
    %c0_i32 = arith.constant 0 : i32
    %c0_i32_0 = arith.constant 0 : i32
    %c0_i32_1 = arith.constant 0 : i32
    return %c0_i32, %c0_i32_0 : i32, i32
  }
  func.func @transform_3(%arg0: i32, %arg1: i32) -> (i32, i32) {
    %c0_i32 = arith.constant 0 : i32
    %c0_i32_0 = arith.constant 0 : i32
    %c0_i32_1 = arith.constant 0 : i32
    return %c0_i32, %c0_i32_0 : i32, i32
  }
  func.func @transform_4(%arg0: i32, %arg1: i32) -> (i32, i32) {
    %c0_i32 = arith.constant 0 : i32
    %c0_i32_0 = arith.constant 0 : i32
    %c0_i32_1 = arith.constant 0 : i32
    return %c0_i32, %c0_i32_0 : i32, i32
  }
  func.func @transform_5(%arg0: i32, %arg1: i32) -> (i32, i32, i32, i32) {
    %c0_i32 = arith.constant 0 : i32
    %c0_i32_0 = arith.constant 0 : i32
    %c0_i32_1 = arith.constant 0 : i32
    return %arg0, %arg1, %c0_i32, %c0_i32_0 : i32, i32, i32, i32
  }
}

module attributes {stable_mosaic.version = 11 : i64} {
  func.func @_conv1_stats_kernel(%arg0: i32, %arg1: i32, %arg2: memref<1x16x16x128xbf16, #tpu.memory_space<vmem>>, %arg3: memref<1152x128xbf16, #tpu.memory_space<vmem>>, %arg4: memref<128x128xbf16, #tpu.memory_space<vmem>>, %arg5: memref<1x8x16x128xbf16, #tpu.memory_space<vmem>>, %arg6: memref<1x2x128xf32, #tpu.memory_space<vmem>>, %arg7: memref<1x2x128xf32, #tpu.memory_space<vmem>>) attributes {dimension_semantics = [#tpu.dimension_semantics<parallel>, #tpu.dimension_semantics<arbitrary>], iteration_bounds = array<i64: 2, 2>, scalar_prefetch = 0 : i64, scratch_operands = 0 : i64, tpu.core_type = #tpu.core_type<tc>, window_params = [{transform_indices = @transform_0, window_bounds = array<i64: 1, 16, 16, 128>}, {pipeline_mode = #tpu.pipeline_mode<synchronous>, transform_indices = @transform_1, window_bounds = array<i64: 1152, 128>}, {pipeline_mode = #tpu.pipeline_mode<synchronous>, transform_indices = @transform_2, window_bounds = array<i64: 128, 128>}, {transform_indices = @transform_3, window_bounds = array<i64: 1, 8, 16, 128>}, {transform_indices = @transform_4, window_bounds = array<i64: 1, 2, 128>}, {transform_indices = @transform_5, window_bounds = array<i64: 1, 2, 128>}]} {
    %c8_i32 = arith.constant 8 : i32
    %0 = arith.muli %arg1, %c8_i32 : i32
    %1 = tpu.assume_multiple %0, 8 : i32
    %c1_i32 = arith.constant 1 : i32
    %2 = arith.subi %1, %c1_i32 : i32
    %c0_i32 = arith.constant 0 : i32
    %3 = arith.maxsi %2, %c0_i32 : i32
    %c8_i32_0 = arith.constant 8 : i32
    %4 = arith.addi %1, %c8_i32_0 : i32
    %c15_i32 = arith.constant 15 : i32
    %5 = arith.minsi %4, %c15_i32 : i32
    %cst = arith.constant 0.000000e+00 : bf16
    %6 = vector.broadcast %cst : bf16 to vector<1x16x128xbf16>
    %c0_i32_1 = arith.constant 0 : i32
    %7 = arith.cmpi sgt, %arg1, %c0_i32_1 : i32
    %c0 = arith.constant 0 : index
    %8 = arith.index_cast %3 : i32 to index
    %c0_2 = arith.constant 0 : index
    %c0_3 = arith.constant 0 : index
    %9 = vector.load %arg2[%c0, %8, %c0_2, %c0_3] : memref<1x16x16x128xbf16, #tpu.memory_space<vmem>>, vector<1x1x16x128xbf16>
    %10 = vector.shape_cast %9 : vector<1x1x16x128xbf16> to vector<1x16x128xbf16>
    %11 = arith.select %7, %10, %6 : vector<1x16x128xbf16>
    %c0_4 = arith.constant 0 : index
    %12 = arith.index_cast %1 : i32 to index
    %c0_5 = arith.constant 0 : index
    %c0_6 = arith.constant 0 : index
    %13 = vector.load %arg2[%c0_4, %12, %c0_5, %c0_6] : memref<1x16x16x128xbf16, #tpu.memory_space<vmem>>, vector<1x8x16x128xbf16>
    %14 = vector.shape_cast %13 : vector<1x8x16x128xbf16> to vector<8x16x128xbf16>
    %c1_i32_7 = arith.constant 1 : i32
    %15 = arith.cmpi slt, %arg1, %c1_i32_7 : i32
    %c0_8 = arith.constant 0 : index
    %16 = arith.index_cast %5 : i32 to index
    %c0_9 = arith.constant 0 : index
    %c0_10 = arith.constant 0 : index
    %17 = vector.load %arg2[%c0_8, %16, %c0_9, %c0_10] : memref<1x16x16x128xbf16, #tpu.memory_space<vmem>>, vector<1x1x16x128xbf16>
    %18 = vector.shape_cast %17 : vector<1x1x16x128xbf16> to vector<1x16x128xbf16>
    %19 = arith.select %15, %18, %6 : vector<1x16x128xbf16>
    %20 = tpu.concatenate %6, %11, %14, %19, %6 in 0 : vector<1x16x128xbf16>, vector<1x16x128xbf16>, vector<8x16x128xbf16>, vector<1x16x128xbf16>, vector<1x16x128xbf16> -> vector<12x16x128xbf16>
    %c0_11 = arith.constant 0 : index
    %c0_12 = arith.constant 0 : index
    %21 = vector.load %arg3[%c0_11, %c0_12] : memref<1152x128xbf16, #tpu.memory_space<vmem>>, vector<1152x128xbf16>
    %22 = tpu.iota {dimensions = array<i32: 1>} : vector<1x16x1xi32>
    %cst_13 = arith.constant 0.000000e+00 : bf16
    %23 = vector.broadcast %cst_13 : bf16 to vector<12x16x128xbf16>
    %c15_i32_14 = arith.constant 15 : i32
    %24 = vector.broadcast %c15_i32_14 : i32 to vector<1x16x1xi32>
    %25 = arith.cmpi ne, %22, %24 : vector<1x16x1xi32>
    %26 = vector.shape_cast %25 : vector<1x16x1xi1> to vector<1x16x1xi1>
    %27 = vector.broadcast %26 : vector<1x16x1xi1> to vector<12x16x128xi1>
    %28 = arith.select %27, %20, %23 : vector<12x16x128xi1>, vector<12x16x128xbf16>
    %29 = vector.shape_cast %28 : vector<12x16x128xbf16> to vector<192x128xbf16>
    %30 = vector.shape_cast %20 : vector<12x16x128xbf16> to vector<192x128xbf16>
    %c0_i32_15 = arith.constant 0 : i32
    %31 = vector.broadcast %c0_i32_15 : i32 to vector<1x16x1xi32>
    %32 = arith.cmpi ne, %22, %31 : vector<1x16x1xi32>
    %33 = vector.shape_cast %32 : vector<1x16x1xi1> to vector<1x16x1xi1>
    %34 = vector.broadcast %33 : vector<1x16x1xi1> to vector<12x16x128xi1>
    %35 = arith.select %34, %20, %23 : vector<12x16x128xi1>, vector<12x16x128xbf16>
    %36 = vector.shape_cast %35 : vector<12x16x128xbf16> to vector<192x128xbf16>
    %37 = vector.extract_strided_slice %29 {offsets = [15, 0], sizes = [128, 128], strides = [1, 1]} : vector<192x128xbf16> to vector<128x128xbf16>
    %38 = vector.extract_strided_slice %30 {offsets = [16, 0], sizes = [128, 128], strides = [1, 1]} : vector<192x128xbf16> to vector<128x128xbf16>
    %39 = vector.extract_strided_slice %36 {offsets = [17, 0], sizes = [128, 128], strides = [1, 1]} : vector<192x128xbf16> to vector<128x128xbf16>
    %40 = vector.extract_strided_slice %29 {offsets = [31, 0], sizes = [128, 128], strides = [1, 1]} : vector<192x128xbf16> to vector<128x128xbf16>
    %41 = vector.extract_strided_slice %30 {offsets = [32, 0], sizes = [128, 128], strides = [1, 1]} : vector<192x128xbf16> to vector<128x128xbf16>
    %42 = vector.extract_strided_slice %36 {offsets = [33, 0], sizes = [128, 128], strides = [1, 1]} : vector<192x128xbf16> to vector<128x128xbf16>
    %43 = vector.extract_strided_slice %29 {offsets = [47, 0], sizes = [128, 128], strides = [1, 1]} : vector<192x128xbf16> to vector<128x128xbf16>
    %44 = vector.extract_strided_slice %30 {offsets = [48, 0], sizes = [128, 128], strides = [1, 1]} : vector<192x128xbf16> to vector<128x128xbf16>
    %45 = vector.extract_strided_slice %36 {offsets = [49, 0], sizes = [128, 128], strides = [1, 1]} : vector<192x128xbf16> to vector<128x128xbf16>
    %46 = tpu.concatenate %37, %38, %39, %40, %41, %42, %43, %44, %45 in 1 : vector<128x128xbf16>, vector<128x128xbf16>, vector<128x128xbf16>, vector<128x128xbf16>, vector<128x128xbf16>, vector<128x128xbf16>, vector<128x128xbf16>, vector<128x128xbf16>, vector<128x128xbf16> -> vector<128x1152xbf16>
    %cst_16 = arith.constant dense<0.000000e+00> : vector<128x128xf32>
    %47 = tpu.matmul %46, %21, %cst_16 {dimension_numbers = #tpu.dot_dimension_numbers<[1], [0], [0], [1], [0, 0, 1, 1], [], []>} : vector<128x1152xbf16>, vector<1152x128xbf16>, vector<128x128xf32> -> vector<128x128xf32>
    %48 = vector.shape_cast %14 : vector<8x16x128xbf16> to vector<128x128xbf16>
    %c0_17 = arith.constant 0 : index
    %c0_18 = arith.constant 0 : index
    %49 = vector.load %arg4[%c0_17, %c0_18] : memref<128x128xbf16, #tpu.memory_space<vmem>>, vector<128x128xbf16>
    %cst_19 = arith.constant dense<0.000000e+00> : vector<128x128xf32>
    %50 = tpu.matmul %48, %49, %cst_19 {dimension_numbers = #tpu.dot_dimension_numbers<[1], [0], [0], [1], [0, 0, 1, 1], [], []>} : vector<128x128xbf16>, vector<128x128xbf16>, vector<128x128xf32> -> vector<128x128xf32>
    %51 = arith.truncf %47 : vector<128x128xf32> to vector<128x128xbf16>
    %52 = vector.shape_cast %51 : vector<128x128xbf16> to vector<1x8x16x128xbf16>
    %c0_20 = arith.constant 0 : index
    %c0_21 = arith.constant 0 : index
    %c0_22 = arith.constant 0 : index
    %c0_23 = arith.constant 0 : index
    %53 = vector.load %arg5[%c0_20, %c0_21, %c0_22, %c0_23] : memref<1x8x16x128xbf16, #tpu.memory_space<vmem>>, vector<1x8x16x128xbf16>
    tpu.vector_store %arg5[%c0_20, %c0_21, %c0_22, %c0_23], %52 {strides = array<i32>} : memref<1x8x16x128xbf16, #tpu.memory_space<vmem>>, vector<1x8x16x128xbf16>,
    %c0_i32_24 = arith.constant 0 : i32
    %54 = arith.cmpi eq, %arg1, %c0_i32_24 : i32
    %55 = arith.extui %54 : i1 to i32
    %c0_i32_25 = arith.constant 0 : i32
    %56 = arith.cmpi ne, %55, %c0_i32_25 : i32
    scf.if %56 {
      %cst_42 = arith.constant 0.000000e+00 : f32
      %77 = vector.broadcast %cst_42 : f32 to vector<1x2x128xf32>
      %c0_43 = arith.constant 0 : index
      %c0_44 = arith.constant 0 : index
      %c0_45 = arith.constant 0 : index
      %78 = vector.load %arg6[%c0_43, %c0_44, %c0_45] : memref<1x2x128xf32, #tpu.memory_space<vmem>>, vector<1x2x128xf32>
      tpu.vector_store %arg6[%c0_43, %c0_44, %c0_45], %77 {strides = array<i32>} : memref<1x2x128xf32, #tpu.memory_space<vmem>>, vector<1x2x128xf32>,
      %cst_46 = arith.constant 0.000000e+00 : f32
      %79 = vector.broadcast %cst_46 : f32 to vector<1x2x128xf32>
      %c0_47 = arith.constant 0 : index
      %c0_48 = arith.constant 0 : index
      %c0_49 = arith.constant 0 : index
      %80 = vector.load %arg7[%c0_47, %c0_48, %c0_49] : memref<1x2x128xf32, #tpu.memory_space<vmem>>, vector<1x2x128xf32>
      tpu.vector_store %arg7[%c0_47, %c0_48, %c0_49], %79 {strides = array<i32>} : memref<1x2x128xf32, #tpu.memory_space<vmem>>, vector<1x2x128xf32>,
    } else {
    }
    %c0_26 = arith.constant 0 : index
    %c0_27 = arith.constant 0 : index
    %c0_28 = arith.constant 0 : index
    %57 = vector.load %arg6[%c0_26, %c0_27, %c0_28] : memref<1x2x128xf32, #tpu.memory_space<vmem>>, vector<1x2x128xf32>
    %cst_29 = arith.constant dense<0.000000e+00> : vector<128xf32>
    %58 = vector.multi_reduction <add>, %47, %cst_29 [0] : vector<128x128xf32> to vector<128xf32>
    %59 = vector.shape_cast %58 : vector<128xf32> to vector<1x128xf32>
    %60 = arith.mulf %47, %47 : vector<128x128xf32>
    %cst_30 = arith.constant dense<0.000000e+00> : vector<128xf32>
    %61 = vector.multi_reduction <add>, %60, %cst_30 [0] : vector<128x128xf32> to vector<128xf32>
    %62 = vector.shape_cast %61 : vector<128xf32> to vector<1x128xf32>
    %63 = tpu.concatenate %59, %62 in 0 : vector<1x128xf32>, vector<1x128xf32> -> vector<2x128xf32>
    %64 = vector.shape_cast %63 : vector<2x128xf32> to vector<1x2x128xf32>
    %65 = arith.addf %57, %64 : vector<1x2x128xf32>
    %c0_31 = arith.constant 0 : index
    %c0_32 = arith.constant 0 : index
    %c0_33 = arith.constant 0 : index
    %66 = vector.load %arg6[%c0_31, %c0_32, %c0_33] : memref<1x2x128xf32, #tpu.memory_space<vmem>>, vector<1x2x128xf32>
    tpu.vector_store %arg6[%c0_31, %c0_32, %c0_33], %65 {strides = array<i32>} : memref<1x2x128xf32, #tpu.memory_space<vmem>>, vector<1x2x128xf32>,
    %c0_34 = arith.constant 0 : index
    %c0_35 = arith.constant 0 : index
    %c0_36 = arith.constant 0 : index
    %67 = vector.load %arg7[%c0_34, %c0_35, %c0_36] : memref<1x2x128xf32, #tpu.memory_space<vmem>>, vector<1x2x128xf32>
    %cst_37 = arith.constant dense<0.000000e+00> : vector<128xf32>
    %68 = vector.multi_reduction <add>, %50, %cst_37 [0] : vector<128x128xf32> to vector<128xf32>
    %69 = vector.shape_cast %68 : vector<128xf32> to vector<1x128xf32>
    %70 = arith.mulf %50, %50 : vector<128x128xf32>
    %cst_38 = arith.constant dense<0.000000e+00> : vector<128xf32>
    %71 = vector.multi_reduction <add>, %70, %cst_38 [0] : vector<128x128xf32> to vector<128xf32>
    %72 = vector.shape_cast %71 : vector<128xf32> to vector<1x128xf32>
    %73 = tpu.concatenate %69, %72 in 0 : vector<1x128xf32>, vector<1x128xf32> -> vector<2x128xf32>
    %74 = vector.shape_cast %73 : vector<2x128xf32> to vector<1x2x128xf32>
    %75 = arith.addf %67, %74 : vector<1x2x128xf32>
    %c0_39 = arith.constant 0 : index
    %c0_40 = arith.constant 0 : index
    %c0_41 = arith.constant 0 : index
    %76 = vector.load %arg7[%c0_39, %c0_40, %c0_41] : memref<1x2x128xf32, #tpu.memory_space<vmem>>, vector<1x2x128xf32>
    tpu.vector_store %arg7[%c0_39, %c0_40, %c0_41], %75 {strides = array<i32>} : memref<1x2x128xf32, #tpu.memory_space<vmem>>, vector<1x2x128xf32>,
    return
  }
  func.func @transform_0(%arg0: i32, %arg1: i32) -> (i32, i32, i32, i32) {
    %c0_i32 = arith.constant 0 : i32
    %c0_i32_0 = arith.constant 0 : i32
    %c0_i32_1 = arith.constant 0 : i32
    %c0_i32_2 = arith.constant 0 : i32
    return %arg0, %c0_i32, %c0_i32_0, %c0_i32_1 : i32, i32, i32, i32
  }
  func.func @transform_1(%arg0: i32, %arg1: i32) -> (i32, i32) {
    %c0_i32 = arith.constant 0 : i32
    %c0_i32_0 = arith.constant 0 : i32
    %c0_i32_1 = arith.constant 0 : i32
    return %c0_i32, %c0_i32_0 : i32, i32
  }
  func.func @transform_2(%arg0: i32, %arg1: i32) -> (i32, i32) {
    %c0_i32 = arith.constant 0 : i32
    %c0_i32_0 = arith.constant 0 : i32
    %c0_i32_1 = arith.constant 0 : i32
    return %c0_i32, %c0_i32_0 : i32, i32
  }
  func.func @transform_3(%arg0: i32, %arg1: i32) -> (i32, i32, i32, i32) {
    %c0_i32 = arith.constant 0 : i32
    %c0_i32_0 = arith.constant 0 : i32
    %c0_i32_1 = arith.constant 0 : i32
    return %arg0, %arg1, %c0_i32, %c0_i32_0 : i32, i32, i32, i32
  }
  func.func @transform_4(%arg0: i32, %arg1: i32) -> (i32, i32, i32) {
    %c0_i32 = arith.constant 0 : i32
    %c0_i32_0 = arith.constant 0 : i32
    %c0_i32_1 = arith.constant 0 : i32
    return %arg0, %c0_i32, %c0_i32_0 : i32, i32, i32
  }
  func.func @transform_5(%arg0: i32, %arg1: i32) -> (i32, i32, i32) {
    %c0_i32 = arith.constant 0 : i32
    %c0_i32_0 = arith.constant 0 : i32
    %c0_i32_1 = arith.constant 0 : i32
    return %arg0, %c0_i32, %c0_i32_0 : i32, i32, i32
  }
}

</mosaic_0001>

<bundles_post_ra>
// kernel: deres_block_forward.5
= control target key start
LH: loop header
LB: loop body
LE: loop exit
PB: predicated region body
PF: predicated region fallthrough
CT: control target
= control target key end

     0   :  { %s1087_s18 = smov 0   ;;  %s1089_s19 = smov 0   ;;  %s1292_s0 = inlined_call_operand.vmem [shape: bf16[2,16,16,128], index: 0, kind: input, shape index: {}]   ;;  %s1293_s1 = inlined_call_operand.vmem [shape: bf16[2,16,16,128], index: 1, kind: input, shape index: {}]   ;;  %s1294_s2 = inlined_call_operand.vmem [shape: bf16[128,128], index: 2, kind: input, shape index: {}]   ;;  %s1295_s3 = inlined_call_operand.vmem [shape: f32[2,128], index: 3, kind: input, shape index: {}]   ;;  %s1296_s4 = inlined_call_operand.vmem [shape: f32[2,128], index: 4, kind: input, shape index: {}]   ;;  %s1297_s5 = inlined_call_operand.vmem [shape: f32[2,16,16,8], index: 5, kind: output, shape index: {}]  }
   0x1   :  { %s1091_s20 = smov 0   ;;  %s1093_s21 = smov 0  }
   0x2   :  { %s1095_s22 = smov 0  }
   0x3 LB: > { %s24_s23 = sadd.s32 1, %s1047_s20  ;;  %s27_s24 = sadd.s32 1, %s1051_s21  ;;  %s1055_s22 = sphi %s1095_s22, %s15_s22   ;;  %s1051_s21 = sphi %s1093_s21, %s1301_s21   ;;  %s1047_s20 = sphi %s1091_s20, %s1300_s20   ;;  %s1043_s19 = sphi %s1089_s19, %s1299_s19   ;;  %s1039_s18 = sphi %s1087_s18, %s1298_s18  }
   0x4   : > { %p25_p0 = scmp.ge.s32.totalorder %s24_s23, 2  ;;  %p823_p1 = scmp.ge.s32.totalorder %s1055_s22, 1 }
   0x5   : > { %p227_p2 = scmp.lt.s32.totalorder %s1055_s22, 5 }
   0x6   : > { %s1303_s23 = smov (%p25_p0, %s24_s23), 0  ;;  %s1305_s24 = smov (!%p25_p0, %s27_s24), %s1051_s21 }
   0x7   : > { %p228_p3 = pnand %p823_p1, %p227_p2  ;;  %p29_p4 = scmp.ge.s32.totalorder %s1305_s24, 2 }
   0x8   : > { %v1001_v0 = vld [vmem:[%s1294_s2] sm:$0xff] (!%p228_p3)   ;;  %s824_s27 = sshll.u32 (!%p228_p3), %s1039_s18, 3  ;;  %v1002_v1 = vld [vmem:[%s1294_s2 + $0x8] sm:$0xff] (!%p228_p3)   ;;  %p276_p5 = scmp.lt.s32.totalorder (!%p228_p3), %s1043_s19, 1  ;;  %v1003_v2 = vld [vmem:[%s1294_s2 + $0x10] sm:$0xff] (!%p228_p3)   ;;  %vm682_vm0 = vcmask (!%p228_p3), 64512  }
   0x9   : > { %s1307_s24 = smov (%p29_p4, %s1305_s24), 0  ;;  %231 = sbr.rel (%p228_p3) target bundleno = 275 (0x113), region = 40 }
   0xa   : > { %913 = vmatprep.subr.bf16.mxu0 (!%p228_p3), %v1001_v0  ;;  %945 = vmatprep.subr.bf16.mxu1 (!%p228_p3), %v1001_v0  ;;  %p278_p6 = scmp.lt.s32.totalorder (!%p228_p3), %s824_s27, 15  ;;  %v1004_v3 = vld [vmem:[%s1294_s2 + $0x18] sm:$0xff] (!%p228_p3)   ;;  %v1005_v6 = vld [vmem:[%s1294_s2 + $0x20] sm:$0xff] (!%p228_p3)   ;;  %v1006_v7 = vld [vmem:[%s1294_s2 + $0x28] sm:$0xff] (!%p228_p3)  }
   0xb   : > { %914 = vmatpush3.bf16.msra.mxu0 (!%p228_p3), %v1001_v0  ;;  %953 = vmatpush3.bf16.msra.mxu1 (!%p228_p3), %v1001_v0  ;;  %v1007_v8 = vld [vmem:[%s1294_s2 + $0x30] sm:$0xff] (!%p228_p3)   ;;  %v1008_v9 = vld [vmem:[%s1294_s2 + $0x38] sm:$0xff] (!%p228_p3)   ;;  %v836_v21 = vld [vmem:[%s1295_s3] ss:$0 sm:$0xff] (!%p228_p3) }
   0xc   : > { %915 = vmatprep.subr.bf16.mxu0 (!%p228_p3), %v1002_v1  ;;  %946 = vmatprep.subr.bf16.mxu1 (!%p228_p3), %v1002_v1  ;;  %v837_v34 = vld [vmem:[%s1295_s3 + $0x1] ss:$0 sm:$0xff] (!%p228_p3)  ;;  %v1176_v59 = vld [vmem:[%s1296_s4] ss:$0 sm:$0xff] (!%p228_p3) }
   0xf   : > { %916 = vmatpush3.bf16.msra.mxu0 (!%p228_p3), %v1002_v1  ;;  %954 = vmatpush3.bf16.msra.mxu1 (!%p228_p3), %v1002_v1 }
  0x10   : > { %s1309_s19 = smov (!%p276_p5, %s1043_s19), 1  ;;  %s1311_s27 = smov (!%p278_p6, %s824_s27), 15  ;;  %917 = vmatprep.subr.bf16.mxu0 %v1003_v2  ;;  %947 = vmatprep.subr.bf16.mxu1 %v1003_v2 }
  0x11   : > { %s826_s7 = sshll.u32 %s1309_s19, 5  ;;  %s825_s8 = sshll.u32 %s1311_s27, 1 }
  0x12   : > { %s1129_s9 = sadd.s32 %s826_s7, %s825_s8 }
  0x13   : > { %s827_s12 = sshll.u32 %s1129_s9, 2  ;;  %918 = vmatpush3.bf16.msra.mxu0 %v1003_v2  ;;  %955 = vmatpush3.bf16.msra.mxu1 %v1003_v2  ;;  %s835_s16 = sshll.u32 %s1129_s9, 3 }
  0x14   : > { %s1140_s15 = scalar_lea.vmem %s1293_s1, %s827_s12  ;;  %919 = vmatprep.subr.bf16.mxu0 %v1004_v3  ;;  %948 = vmatprep.subr.bf16.mxu1 %v1004_v3  ;;  %s284_s6 = scalar_lea.vmem %s1292_s0, %s827_s12 }
  0x15   : > { %v1009_v4 = vld [vmem:[%s1140_s15] sm:$0xff]   ;;  %v1011_v10 = vld [vmem:[%s1140_s15 + $0x8] sm:$0xff]   ;;  %v1013_v12 = vld [vmem:[%s1140_s15 + $0x10] sm:$0xff]   ;;  %s1217_s18 = scalar_lea.vmem %s1297_s5, %s835_s16 }
  0x16   : > { %v1010_v5 = vld [vmem:[%s1140_s15 + $0x20] sm:$0xff]   ;;  %929 = vmatprep.mubr.bf16.mxu0 %v1009_v4  ;;  %v1012_v11 = vld [vmem:[%s1140_s15 + $0x28] sm:$0xff]   ;;  %v1014_v13 = vld [vmem:[%s1140_s15 + $0x30] sm:$0xff]  }
  0x17   : > { %937 = vmatprep.mubr.bf16.mxu1 %v1010_v5  ;;  %920 = vmatpush3.bf16.msra.mxu0 %v1004_v3  ;;  %v1015_v14 = vld [vmem:[%s1140_s15 + $0x18] sm:$0xff]   ;;  %v890_v16 = vld [vmem:[%s284_s6 + $0x8] sm:$0xff]   ;;  %v859_v18 = vld [vmem:[%s284_s6] sm:$0xff]  }
  0x18   : > { %956 = vmatpush3.bf16.msra.mxu1 %v1004_v3  ;;  %921 = vmatprep.subr.bf16.mxu0 %v1005_v6  ;;  %v1016_v15 = vld [vmem:[%s1140_s15 + $0x38] sm:$0xff]   ;;  %v894_v17 = vld [vmem:[%s284_s6 + $0x28] sm:$0xff]   ;;  %v864_v19 = vunpack.c.l.bf16 %v890_v16  ;;  %v893_v20 = vld [vmem:[%s284_s6 + $0x20] sm:$0xff]   ;;  %v860_v24 = vunpack.c.l.bf16 %v859_v18  ;;  %v865_v29 = vunpack.c.h.bf16 %v890_v16  ;;  %v861_v32 = vunpack.c.h.bf16 %v859_v18 }
  0x19   : > { %949 = vmatprep.subr.bf16.mxu1 %v1005_v6  ;;  %v892_v22 = vld [vmem:[%s284_s6 + $0x18] sm:$0xff]   ;;  %v880_v23 = vunpack.c.l.bf16 %v894_v17  ;;  %v891_v26 = vld [vmem:[%s284_s6 + $0x10] sm:$0xff]   ;;  %v876_v28 = vunpack.c.l.bf16 %v893_v20  ;;  %v881_v31 = vunpack.c.h.bf16 %v894_v17  ;;  %v877_v33 = vunpack.c.h.bf16 %v893_v20  ;;  %v1181_v3 = vld [vmem:[%s1296_s4 + $0x1] ss:$0 sm:$0xff] }
  0x1a   : > { %v896_v25 = vld [vmem:[%s284_s6 + $0x38] sm:$0xff]   ;;  %v895_v27 = vld [vmem:[%s284_s6 + $0x30] sm:$0xff]   ;;  %v351_v30 = vmul.f32 %v864_v19, %v836_v21  ;;  %v872_v35 = vunpack.c.l.bf16 %v892_v22  ;;  %v868_v37 = vunpack.c.l.bf16 %v891_v26  ;;  %v349_v40 = vmul.f32 %v860_v24, %v836_v21 }
  0x1b   : > { %922 = vmatpush3.bf16.msra.mxu0 %v1005_v6  ;;  %v888_v36 = vunpack.c.l.bf16 %v896_v25  ;;  %v884_v38 = vunpack.c.l.bf16 %v895_v27  ;;  %v359_v39 = vmul.f32 %v880_v23, %v836_v21  ;;  %v873_v41 = vunpack.c.h.bf16 %v892_v22 }
  0x1c   : > { %957 = vmatpush3.bf16.msra.mxu1 %v1005_v6  ;;  %923 = vmatprep.subr.bf16.mxu0 %v1006_v7  ;;  %v889_v42 = vunpack.c.h.bf16 %v896_v25  ;;  %v357_v43 = vmul.f32 %v876_v28, %v836_v21  ;;  %v352_v44 = vmul.f32 %v865_v29, %v836_v21  ;;  %v869_v45 = vunpack.c.h.bf16 %v891_v26 }
  0x1d   : > { %950 = vmatprep.subr.bf16.mxu1 %v1006_v7  ;;  %v885_v46 = vunpack.c.h.bf16 %v895_v27  ;;  %v371_v47 = vadd.f32 %v837_v34, %v351_v30  ;;  %v360_v48 = vmul.f32 %v881_v31, %v836_v21  ;;  %v350_v49 = vmul.f32 %v861_v32, %v836_v21 }
  0x1e   : > { %v358_v50 = vmul.f32 %v877_v33, %v836_v21  ;;  %v355_v51 = vmul.f32 %v872_v35, %v836_v21  ;;  %v363_v52 = vmul.f32 %v888_v36, %v836_v21  ;;  %v353_v53 = vmul.f32 %v868_v37, %v836_v21 }
  0x1f   : > { %924 = vmatpush3.bf16.msra.mxu0 %v1006_v7  ;;  %v361_v54 = vmul.f32 %v884_v38, %v836_v21  ;;  %v379_v55 = vadd.f32 %v837_v34, %v359_v39  ;;  %v369_v56 = vadd.f32 %v837_v34, %v349_v40  ;;  %v356_v57 = vmul.f32 %v873_v41, %v836_v21 }
  0x20   : > { %958 = vmatpush3.bf16.msra.mxu1 %v1006_v7  ;;  %925 = vmatprep.subr.bf16.mxu0 %v1007_v8  ;;  %v364_v58 = vmul.f32 %v889_v42, %v836_v21  ;;  %v377_v60 = vadd.f32 %v837_v34, %v357_v43  ;;  %v372_v61 = vadd.f32 %v837_v34, %v352_v44 }
  0x21   : > { %951 = vmatprep.subr.bf16.mxu1 %v1007_v8  ;;  %v354_v62 = vmul.f32 %v869_v45, %v836_v21  ;;  %v362_v63 = vmul.f32 %v885_v46, %v836_v21  ;;  %v380_v0 = vadd.f32 %v837_v34, %v360_v48  ;;  %v370_v1 = vadd.f32 %v837_v34, %v350_v49 }
  0x22   : > { %v378_v2 = vadd.f32 %v837_v34, %v358_v50  ;;  %v1183_v6 = vadd.f32 %v837_v34, %v355_v51  ;;  %v1185_v7 = vadd.f32 %v837_v34, %v363_v52 }
  0x23   : > { %926 = vmatpush3.bf16.msra.mxu0 %v1007_v8  ;;  %v1199_v20 = vadd.f32 %v837_v34, %v354_v62  ;;  %v1201_v21 = vadd.f32 %v837_v34, %v362_v63 }
  0x24   : > { %959 = vmatpush3.bf16.msra.mxu1 %v1007_v8  ;;  %927 = vmatprep.subr.bf16.mxu0 %v1008_v9  ;;  %v1187_v8 = vadd.f32 %v837_v34, %v353_v53 }
  0x25   : > { %952 = vmatprep.subr.bf16.mxu1 %v1008_v9 }
  0x27   : > { %928 = vmatpush3.bf16.msra.mxu0 %v1008_v9 }
  0x28   : > { %960 = vmatpush3.bf16.msra.mxu1 %v1008_v9  ;;  %v1189_v9 = vadd.f32 %v837_v34, %v361_v54 }
  0x2a   : > { %930 = vmatmul.mubr.bf16.vlgmr.msra.gmra.mrb[0].mxu0 %v1011_v10 }
  0x2b   : > { %938 = vmatmul.mubr.bf16.vlgmr.msra.gmra.mrb[0].mxu1 %v1012_v11  ;;  %933 = vmatprep.mubr.bf16.mxu0 %v1013_v12 }
  0x2c   : > { %941 = vmatprep.mubr.bf16.mxu1 %v1014_v13 }
  0x32   : > { %934 = vmatmul.mubr.bf16.gmra.mrb[4].mxu0 %v1015_v14  ;;  %v1193_v14 = vadd.f32 %v837_v34, %v356_v57 }
  0x33   : > { %942 = vmatmul.mubr.bf16.gmra.mrb[4].mxu1 %v1016_v15  ;;  %v1195_v15 = vadd.f32 %v837_v34, %v364_v58 }
  0xfd   : > { %v931_v4 = vpop.f32.mrb[0].mxu0 }
  0xfe   : > { %v939_v5 = vpop.f32.mrb[0].mxu1  ;;  %v616_v10 = vmul.f32 %v931_v4, %v1176_v59  ;;  %v547_v12 = vpop.f32.mrb[1].mxu0 }
  0xff   : > { %v624_v11 = vmul.f32 %v939_v5, %v1176_v59  ;;  %v579_v13 = vpop.f32.mrb[1].mxu1  ;;  %v614_v16 = vmul.f32 %v1176_v59, %v547_v12  ;;  %v932_v18 = vpop.f32.mrb[2].mxu0 }
 0x100   : > { %v622_v17 = vmul.f32 %v1176_v59, %v579_v13  ;;  %v940_v19 = vpop.f32.mrb[2].mxu1  ;;  %v636_v22 = vadd.f32 %v1181_v3, %v616_v10  ;;  %v617_v24 = vmul.f32 %v932_v18, %v1176_v59  ;;  %v550_v26 = vpop.f32.mrb[3].mxu0 }
 0x101   : > { %v644_v23 = vadd.f32 %v1181_v3, %v624_v11  ;;  %v625_v25 = vmul.f32 %v940_v19, %v1176_v59  ;;  %v582_v27 = vpop.f32.mrb[3].mxu1  ;;  %v634_v28 = vadd.f32 %v1181_v3, %v614_v16  ;;  %v615_v30 = vmul.f32 %v1176_v59, %v550_v26 }
 0x102   : > { %v642_v29 = vadd.f32 %v1181_v3, %v622_v17  ;;  %v623_v31 = vmul.f32 %v1176_v59, %v582_v27  ;;  %v652_v32 = vadd.f32 %v636_v22, %v371_v47  ;;  %v637_v34 = vadd.f32 %v1181_v3, %v617_v24 }
 0x103   : > { %v660_v33 = vadd.f32 %v644_v23, %v379_v55  ;;  %v645_v35 = vadd.f32 %v1181_v3, %v625_v25  ;;  %v650_v36 = vadd.f32 %v634_v28, %v369_v56  ;;  %v635_v38 = vadd.f32 %v1181_v3, %v615_v30 }
 0x104   : > { %v658_v37 = vadd.f32 %v642_v29, %v377_v60  ;;  %v643_v39 = vadd.f32 %v1181_v3, %v623_v31  ;;  %v668_v40 = vmax.f32 %v652_v32, 0.0  ;;  %v653_v42 = vadd.f32 %v637_v34, %v372_v61 }
 0x105   : > { %v676_v41 = vmax.f32 %v660_v33, 0.0  ;;  %v661_v43 = vadd.f32 %v645_v35, %v380_v0  ;;  %v666_v44 = vmax.f32 %v650_v36, 0.0  ;;  %v651_v46 = vadd.f32 %v635_v38, %v370_v1  ;;  %v935_v48 = vpop.f32.mrb[4].mxu0 }
 0x106   : > { %v674_v45 = vmax.f32 %v658_v37, 0.0  ;;  %v659_v47 = vadd.f32 %v643_v39, %v378_v2  ;;  %v943_v49 = vpop.f32.mrb[4].mxu1  ;;  %685 = vst.msk [vmem:[%s1217_s18 + $0x10] sm:$0xff] %vm682_vm0, %v668_v40  ;;  %v669_v50 = vmax.f32 %v653_v42, 0.0  ;;  %v620_v52 = vmul.f32 %v935_v48, %v1176_v59  ;;  %v563_v54 = vpop.f32.mrb[5].mxu0 }
 0x107   : > { %693 = vst.msk [vmem:[%s1217_s18 + $0x50] sm:$0xff] %vm682_vm0, %v676_v41  ;;  %v677_v51 = vmax.f32 %v661_v43, 0.0  ;;  %v628_v53 = vmul.f32 %v943_v49, %v1176_v59  ;;  %v595_v55 = vpop.f32.mrb[5].mxu1  ;;  %683 = vst.msk [vmem:[%s1217_s18] sm:$0xff] %vm682_vm0, %v666_v44  ;;  %v667_v56 = vmax.f32 %v651_v46, 0.0  ;;  %v618_v58 = vmul.f32 %v1176_v59, %v563_v54  ;;  %v936_v61 = vpop.f32.mrb[6].mxu0 }
 0x108   : > { %691 = vst.msk [vmem:[%s1217_s18 + $0x40] sm:$0xff] %vm682_vm0, %v674_v45  ;;  %v675_v57 = vmax.f32 %v659_v47, 0.0  ;;  %v626_v60 = vmul.f32 %v1176_v59, %v595_v55  ;;  %v944_v62 = vpop.f32.mrb[6].mxu1  ;;  %686 = vst.msk [vmem:[%s1217_s18 + $0x18] sm:$0xff] %vm682_vm0, %v669_v50  ;;  %v640_v63 = vadd.f32 %v1181_v3, %v620_v52  ;;  %v621_v1 = vmul.f32 %v936_v61, %v1176_v59  ;;  %v566_v4 = vpop.f32.mrb[7].mxu0 }
 0x109   : > { %694 = vst.msk [vmem:[%s1217_s18 + $0x58] sm:$0xff] %vm682_vm0, %v677_v51  ;;  %v648_v0 = vadd.f32 %v1181_v3, %v628_v53  ;;  %v629_v2 = vmul.f32 %v944_v62, %v1176_v59  ;;  %v598_v5 = vpop.f32.mrb[7].mxu1  ;;  %684 = vst.msk [vmem:[%s1217_s18 + $0x8] sm:$0xff] %vm682_vm0, %v667_v56  ;;  %v638_v10 = vadd.f32 %v1181_v3, %v618_v58 }
 0x10a   : > { %692 = vst.msk [vmem:[%s1217_s18 + $0x48] sm:$0xff] %vm682_vm0, %v675_v57  ;;  %v646_v11 = vadd.f32 %v1181_v3, %v626_v60  ;;  %v619_v12 = vmul.f32 %v1176_v59, %v566_v4  ;;  %v627_v13 = vmul.f32 %v1176_v59, %v598_v5  ;;  %v656_v16 = vadd.f32 %v640_v63, %v1183_v6 }
 0x10b   : > { %v664_v17 = vadd.f32 %v648_v0, %v1185_v7  ;;  %v641_v18 = vadd.f32 %v1181_v3, %v621_v1  ;;  %v649_v19 = vadd.f32 %v1181_v3, %v629_v2  ;;  %v654_v22 = vadd.f32 %v638_v10, %v1187_v8 }
 0x10c   : > { %v662_v23 = vadd.f32 %v646_v11, %v1189_v9  ;;  %v639_v24 = vadd.f32 %v1181_v3, %v619_v12  ;;  %v647_v59 = vadd.f32 %v1181_v3, %v627_v13  ;;  %v672_v25 = vmax.f32 %v656_v16, 0.0 }
 0x10d   : > { %v680_v6 = vmax.f32 %v664_v17, 0.0  ;;  %v657_v7 = vadd.f32 %v641_v18, %v1193_v14  ;;  %v665_v26 = vadd.f32 %v649_v19, %v1195_v15  ;;  %v670_v27 = vmax.f32 %v654_v22, 0.0 }
 0x10e   : > { %v678_v8 = vmax.f32 %v662_v23, 0.0  ;;  %v655_v28 = vadd.f32 %v639_v24, %v1199_v20  ;;  %v663_v9 = vadd.f32 %v647_v59, %v1201_v21  ;;  %689 = vst.msk [vmem:[%s1217_s18 + $0x30] sm:$0xff] %vm682_vm0, %v672_v25 }
 0x10f   : > { %697 = vst.msk [vmem:[%s1217_s18 + $0x70] sm:$0xff] %vm682_vm0, %v680_v6  ;;  %v673_v3 = vmax.f32 %v657_v7, 0.0  ;;  %v681_v29 = vmax.f32 %v665_v26, 0.0  ;;  %687 = vst.msk [vmem:[%s1217_s18 + $0x20] sm:$0xff] %vm682_vm0, %v670_v27 }
 0x110   : > { %695 = vst.msk [vmem:[%s1217_s18 + $0x60] sm:$0xff] %vm682_vm0, %v678_v8  ;;  %v671_v14 = vmax.f32 %v655_v28, 0.0  ;;  %v679_v30 = vmax.f32 %v663_v9, 0.0 }
 0x111   : > { %690 = vst.msk [vmem:[%s1217_s18 + $0x38] sm:$0xff] %vm682_vm0, %v673_v3  ;;  %698 = vst.msk [vmem:[%s1217_s18 + $0x78] sm:$0xff] %vm682_vm0, %v681_v29 }
 0x112   : > { %688 = vst.msk [vmem:[%s1217_s18 + $0x28] sm:$0xff] %vm682_vm0, %v671_v14  ;;  %696 = vst.msk [vmem:[%s1217_s18 + $0x68] sm:$0xff] %vm682_vm0, %v679_v30 }
 0x113 PF: > { %s15_s22 = sadd.s32 1, %s1055_s22   ;;  %s1298_s18 = smov %s1047_s20 }
 0x114   : > { %p12_p7 = scmp.ge.s32.totalorder %s15_s22, 6   ;;  %s1299_s19 = smov %s1051_s21 }
 0x115   : > { %s1300_s20 = smov %s1303_s23  ;;  %s1301_s21 = smov %s1307_s24 }
 0x116   :  { %14 = sbr.rel (!%p12_p7) target bundleno = 3 (0x3), region = 73 }

// kernel: deres_block_forward.4
= control target key start
LH: loop header
LB: loop body
LE: loop exit
PB: predicated region body
PF: predicated region fallthrough
CT: control target
= control target key end

     0   :  { %s2941_s15 = smov 0   ;;  %s2943_s16 = smov 0   ;;  %s3779_s0 = inlined_call_operand.vmem [shape: bf16[2,16,16,128], index: 0, kind: input, shape index: {}]   ;;  %s3780_s1 = inlined_call_operand.vmem [shape: bf16[1152,128], index: 1, kind: input, shape index: {}]   ;;  %s3781_s2 = inlined_call_operand.vmem [shape: f32[2,128], index: 2, kind: input, shape index: {}]   ;;  %s3782_s3 = inlined_call_operand.vmem [shape: bf16[2,16,16,128], index: 3, kind: output, shape index: {0}]   ;;  %s3783_s4 = inlined_call_operand.vmem [shape: f32[2,2,128], index: 4, kind: output, shape index: {1}]  }
   0x1   :  { %s2945_s17 = smov 0   ;;  %s2947_s18 = smov 0  }
   0x2   :  { %s2949_s19 = smov 0  }
   0x3 LB: > { %s24_s20 = sadd.s32 1, %s2903_s17  ;;  %s27_s21 = sadd.s32 1, %s2907_s18  ;;  %s2911_s19 = sphi %s2949_s19, %s15_s19   ;;  %s2907_s18 = sphi %s2947_s18, %s3791_s18   ;;  %s2903_s17 = sphi %s2945_s17, %s3790_s17   ;;  %s2899_s16 = sphi %s2943_s16, %s3789_s16   ;;  %s2895_s15 = sphi %s2941_s15, %s3788_s15  }
   0x4   : > { %p25_p0 = scmp.ge.s32.totalorder %s24_s20, 2  ;;  %p2212_p1 = scmp.ge.s32.totalorder %s2911_s19, 1 }
   0x5   : > { %p179_p2 = scmp.lt.s32.totalorder %s2911_s19, 5 }
   0x6   : > { %s3793_s20 = smov (%p25_p0, %s24_s20), 0  ;;  %s3795_s21 = smov (!%p25_p0, %s27_s21), %s2907_s18 }
   0x7   : > { %p180_p3 = pnand %p2212_p1, %p179_p2  ;;  %p29_p4 = scmp.ge.s32.totalorder %s3795_s21, 2 }
   0x8   : > { %v2801_v0 = vld [vmem:[%s3780_s1 + $0x40] sm:$0xff] (!%p180_p3)   ;;  %p214_p5 = scmp.lt.s32.totalorder (!%p180_p3), %s2899_s16, 1  ;;  %v2805_v4 = vld [vmem:[%s3780_s1 + $0x48] sm:$0xff] (!%p180_p3)   ;;  %v2809_v8 = vld [vmem:[%s3780_s1 + $0x50] sm:$0xff] (!%p180_p3)   ;;  %s3015_s29 = sshll.u32 (!%p180_p3), %s2895_s15, 3  ;;  %v527_v20 = vlaneseq (!%p180_p3)  ;;  %vm2913_vm2 = vmmov (!%p180_p3), 1  }
   0x9   : > { %s3797_s21 = smov (%p29_p4, %s3795_s21), 0  ;;  %183 = sbr.rel (%p180_p3) target bundleno = 456 (0x1c8), region = 32 }
   0xa   : > { %v2802_v1 = vld [vmem:[%s3780_s1 + $0xc0] sm:$0xff] (!%p180_p3)   ;;  %2438 = vmatprep.subr.bf16.mxu0 (!%p180_p3), %v2801_v0  ;;  %v2806_v5 = vld [vmem:[%s3780_s1 + $0xc8] sm:$0xff] (!%p180_p3)   ;;  %v2810_v9 = vld [vmem:[%s3780_s1 + $0xd0] sm:$0xff] (!%p180_p3)   ;;  %s2221_s10 = sadd.s32 (!%p180_p3), 4294967295, %s3015_s29  ;;  %s243_s23 = sadd.s32 (!%p180_p3), 8, %s3015_s29  ;;  %v528_v25 = vshrl.u32 (!%p180_p3), %v527_v20, 7 }
   0xb   : > { %v2803_v2 = vld [vmem:[%s3780_s1] sm:$0xff] (!%p180_p3)   ;;  %2502 = vmatprep.subr.bf16.mxu1 (!%p180_p3), %v2802_v1  ;;  %v2807_v6 = vld [vmem:[%s3780_s1 + $0x8] sm:$0xff] (!%p180_p3)   ;;  %v2811_v10 = vld [vmem:[%s3780_s1 + $0x10] sm:$0xff] (!%p180_p3)   ;;  %p241_p6 = scmp.gt.s32.totalorder (!%p180_p3), %s2221_s10, 0  ;;  %p244_p7 = scmp.lt.s32.totalorder (!%p180_p3), %s243_s23, 15  ;;  %v2914_v47 = vmov (!%p180_p3), 0  }
   0xc   : > { %v2804_v3 = vld [vmem:[%s3780_s1 + $0x80] sm:$0xff] (!%p180_p3)   ;;  %2439 = vmatpush3.bf16.msra.mxu0 (!%p180_p3), %v2803_v2  ;;  %v2808_v7 = vld [vmem:[%s3780_s1 + $0x88] sm:$0xff] (!%p180_p3)   ;;  %v2812_v11 = vld [vmem:[%s3780_s1 + $0x90] sm:$0xff] (!%p180_p3)   ;;  %s2326_s6 = sshll.u32 (!%p180_p3), %s2895_s15, 6  ;;  %v529_v30 = vadd.s32 (!%p180_p3), 8, %v528_v25  ;;  %p246_p8 = scmp.gt.s32.totalorder (!%p180_p3), %s2895_s15, 0 }
   0xd   : > { %2503 = vmatpush3.bf16.msra.mxu1 (!%p180_p3), %v2804_v3  ;;  %2440 = vmatprep.subr.bf16.mxu0 (!%p180_p3), %v2805_v4  ;;  %v2813_v12 = vld [vmem:[%s3780_s1 + $0x58] sm:$0xff] (!%p180_p3)   ;;  %v2817_v16 = vld [vmem:[%s3780_s1 + $0x60] sm:$0xff] (!%p180_p3)   ;;  %v2821_v21 = vld [vmem:[%s3780_s1 + $0x68] sm:$0xff] (!%p180_p3)   ;;  %vm554_vm1 = vcmp.ne.s32.totalorder (!%p180_p3), %v528_v25, 0  ;;  %v3123_v53 = vrot.slane (!%p180_p3), %v2914_v47, 7  ;;  %vm651_vm7 = vcmask (!%p180_p3), 1046528  }
   0xe   : > { %2504 = vmatprep.subr.bf16.mxu1 (!%p180_p3), %v2806_v5  ;;  %v2814_v13 = vld [vmem:[%s3780_s1 + $0xd8] sm:$0xff] (!%p180_p3)   ;;  %v2818_v17 = vld [vmem:[%s3780_s1 + $0xe0] sm:$0xff] (!%p180_p3)   ;;  %v2822_v22 = vld [vmem:[%s3780_s1 + $0xe8] sm:$0xff] (!%p180_p3)   ;;  %vm531_vm0 = vcmp.ne.s32.totalorder (!%p180_p3), %v529_v30, 15  ;;  %vm578_vm6 = vsmask.f32 (!%p180_p3), 7424 }
   0xf   : > { %v2815_v14 = vld [vmem:[%s3780_s1 + $0x18] sm:$0xff] (!%p180_p3)   ;;  %v2819_v18 = vld [vmem:[%s3780_s1 + $0x20] sm:$0xff] (!%p180_p3)   ;;  %v2823_v23 = vld [vmem:[%s3780_s1 + $0x28] sm:$0xff] (!%p180_p3)   ;;  %vm691_vm11 = vsmask.f32 (!%p180_p3), 256  ;;  %p364_p9 = scmp.lt.s32.totalorder (!%p180_p3), %s2895_s15, 1 }
  0x10   : > { %s3799_s16 = smov (!%p214_p5, %s2899_s16), 1  ;;  %2441 = vmatpush3.bf16.msra.mxu0 %v2807_v6  ;;  %v2816_v15 = vld [vmem:[%s3780_s1 + $0x98] sm:$0xff]   ;;  %v2820_v19 = vld [vmem:[%s3780_s1 + $0xa0] sm:$0xff]   ;;  %s3801_s10 = smov (!%p241_p6, %s2221_s10), 0  ;;  %v2824_v24 = vld [vmem:[%s3780_s1 + $0xa8] sm:$0xff]  }
  0x11   : > { %s2219_s8 = sshll.u32 %s3799_s16, 1  ;;  %2505 = vmatpush3.bf16.msra.mxu1 %v2808_v7  ;;  %2442 = vmatprep.subr.bf16.mxu0 %v2809_v8  ;;  %s2323_s12 = sshll.u32 %s3799_s16, 7  ;;  %v2825_v26 = vld [vmem:[%s3780_s1 + $0x70] sm:$0xff]   ;;  %v2829_v31 = vld [vmem:[%s3780_s1 + $0x78] sm:$0xff]   ;;  %v3096_v35 = vld [vmem:[%s3781_s2] ss:$0 sm:$0xff] }
  0x12   : > { %s3000_s13 = scalar_lea.vmem %s3783_s4, %s2219_s8  ;;  %2506 = vmatprep.subr.bf16.mxu1 %v2810_v9  ;;  %s3803_s23 = smov (!%p244_p7, %s243_s23), 15  ;;  %v2826_v27 = vld [vmem:[%s3780_s1 + $0xf0] sm:$0xff]   ;;  %v2830_v32 = vld [vmem:[%s3780_s1 + $0xf8] sm:$0xff]   ;;  %v3101_v36 = vld [vmem:[%s3781_s2 + $0x1] ss:$0 sm:$0xff] }
  0x13   : > { %s2324_s28 = sshll.u32 %s3801_s10, 3  ;;  %v2827_v28 = vld [vmem:[%s3780_s1 + $0x30] sm:$0xff]   ;;  %s218_s14 = scalar_lea.vmem %s3779_s0, %s2323_s12  ;;  %v2831_v33 = vld [vmem:[%s3780_s1 + $0x38] sm:$0xff]   ;;  %vm536_vm3 = vmpackc.low %vm2913_vm2, %vm2913_vm2 }
  0x14   : > { %2443 = vmatpush3.bf16.msra.mxu0 %v2811_v10  ;;  %s2327_s22 = sshll.u32 %s3803_s23, 3  ;;  %v2828_v29 = vld [vmem:[%s3780_s1 + $0xb0] sm:$0xff]   ;;  %s249_s5 = scalar_lea.vmem %s218_s14, %s2324_s28  ;;  %v2832_v34 = vld [vmem:[%s3780_s1 + $0xb8] sm:$0xff]   ;;  %vm537_vm4 = vmpackc.low %vm531_vm0, %vm531_vm0  ;;  %v538_v48 = vsel %vm536_vm3, 65537, %v2914_v47 }
  0x15   : > { %2507 = vmatpush3.bf16.msra.mxu1 %v2812_v11  ;;  %2444 = vmatprep.subr.bf16.mxu0 %v2813_v12  ;;  %s3088_s7 = scalar_lea.vmem %s218_s14, %s2326_s6  ;;  %s367_s8 = scalar_lea.vmem %s218_s14, %s2327_s22  ;;  %v2345_v37 = vld [vmem:[%s249_s5] sm:$0xff]   ;;  %v539_v49 = vsel %vm537_vm4, 65537, %v2914_v47  ;;  %vm560_vm5 = vmpackc.low %vm554_vm1, %vm554_vm1 }
  0x16   : > { %2508 = vmatprep.subr.bf16.mxu1 %v2814_v13  ;;  %v2346_v38 = vunpack.c.l.bf16 %v2345_v37  ;;  %v2347_v39 = vunpack.c.h.bf16 %v2345_v37  ;;  %s3105_s6 = scalar_select %p246_p8, 1, 0  ;;  %v2349_v40 = vld [vmem:[%s3088_s7] sm:$0xff]   ;;  %v562_v57 = vsel %vm560_vm5, 65537, %v2914_v47  ;;  %v2230_v61 = vcombine.low %v538_v48, %v539_v49  ;;  %v2424_v63 = vld [vmem:[%s3088_s7 + $0x8] sm:$0xff]   ;;  %v2425_v49 = vld [vmem:[%s3088_s7 + $0x10] sm:$0xff]  }
  0x17   : > { %v2381_v41 = vld [vmem:[%s367_s8] sm:$0xff]   ;;  %v2350_v42 = vunpack.c.l.bf16 %v2349_v40  ;;  %v2351_v43 = vunpack.c.h.bf16 %v2349_v40  ;;  %v2231_v62 = vcombine.low %v562_v57, %v538_v48  ;;  %v2354_v2 = vunpack.c.l.bf16 %v2424_v63  ;;  %p222_p10 = scmp.lt.s32.totalorder %s3015_s29, 15  ;;  %s2217_s22 = sshll.u32 %s3799_s16, 5 }
  0x18   : > { %2445 = vmatpush3.bf16.msra.mxu0 %v2815_v14  ;;  %v2833_v44 = vld [vmem:[%s3780_s1 + $0x140] sm:$0xff]   ;;  %v258_v45 = vmul.f32 %v2346_v38, %v3096_v35  ;;  %v259_v46 = vmul.f32 %v2347_v39, %v3096_v35  ;;  %v270_v50 = vstv %s3105_s6  ;;  %v2382_v58 = vunpack.c.l.bf16 %v2381_v41  ;;  %p2320_p11 = scmp.ne.s32.totalorder %s2895_s15, 0 }
  0x19   : > { %2509 = vmatpush3.bf16.msra.mxu1 %v2816_v15  ;;  %2446 = vmatprep.subr.bf16.mxu0 %v2817_v16  ;;  %v308_v51 = vmul.f32 %v2350_v42, %v3096_v35  ;;  %v309_v52 = vmul.f32 %v2351_v43, %v3096_v35  ;;  %v2834_v54 = vld [vmem:[%s3780_s1 + $0x1c0] sm:$0xff]   ;;  %v2355_v3 = vunpack.c.h.bf16 %v2424_v63  ;;  %vm271_vm8 = vcmp.eq.s32.totalorder %v270_v50, 1  ;;  %s3805_s29 = smov (!%p222_p10, %s3015_s29), 15 }
  0x1a   : > { %2510 = vmatprep.subr.bf16.mxu1 %v2818_v17  ;;  %v264_v55 = vadd.f32 %v3101_v36, %v258_v45  ;;  %v265_v56 = vadd.f32 %v3101_v36, %v259_v46  ;;  %v2383_v6 = vunpack.c.h.bf16 %v2381_v41  ;;  %v310_v8 = vmul.f32 %v2354_v2, %v3096_v35  ;;  %s2216_s14 = sshll.u32 %s3805_s29, 1 }
  0x1b   : > { %v324_v59 = vadd.f32 %v3101_v36, %v308_v51  ;;  %v325_v60 = vadd.f32 %v3101_v36, %v309_v52  ;;  %v311_v9 = vmul.f32 %v2355_v3, %v3096_v35  ;;  %v3137_v10 = vmul.f32 %v2382_v58, %v3096_v35 }
  0x1c   : > { %2447 = vmatpush3.bf16.msra.mxu0 %v2819_v18  ;;  %v266_v0 = vmax.f32 %v264_v55, 0.0  ;;  %v267_v1 = vmax.f32 %v265_v56, 0.0  ;;  %vm3139_vm9 = vcmp.ne.s16.totalorder %v2230_v61, 0  ;;  %vm3143_vm10 = vcmp.ne.s16.totalorder %v2231_v62, 0 }
  0x1d   : > { %2511 = vmatpush3.bf16.msra.mxu1 %v2820_v19  ;;  %2448 = vmatprep.subr.bf16.mxu0 %v2821_v21  ;;  %v340_v4 = vmax.f32 %v324_v59, 0.0  ;;  %v341_v5 = vmax.f32 %v325_v60, 0.0  ;;  %v3148_v14 = vmul.f32 %v2383_v6, %v3096_v35  ;;  %v326_v16 = vadd.f32 %v3101_v36, %v310_v8 }
  0x1e   : > { %2512 = vmatprep.subr.bf16.mxu1 %v2822_v22  ;;  %v268_v7 = vpack.c.bf16 %v267_v1, %v266_v0  ;;  %v327_v17 = vadd.f32 %v3101_v36, %v311_v9  ;;  %v2358_v61 = vunpack.c.l.bf16 %v2425_v49  ;;  %v2359_v62 = vunpack.c.h.bf16 %v2425_v49 }
  0x1f   : > { %v356_v11 = vpack.c.bf16 %v341_v5, %v340_v4  ;;  %v2836_v4 = vld [vmem:[%s3780_s1 + $0x180] sm:$0xff]  }
  0x20   : > { %2449 = vmatpush3.bf16.msra.mxu0 %v2823_v23  ;;  %v272_v15 = vsel %vm271_vm8, %v268_v7, 0  ;;  %v343_v42 = vmax.f32 %v327_v17, 0.0 }
  0x21   : > { %2513 = vmatpush3.bf16.msra.mxu1 %v2824_v24  ;;  %2450 = vmatprep.subr.bf16.mxu0 %v2825_v26  ;;  %v580_v18 = vshll.u32 %v272_v15, 16  ;;  %v583_v19 = vshrl.u32 %v272_v15, 16  ;;  %v587_v20 = vshll.u32 %v356_v11, 16  ;;  %v544_v21 = vsel %vm3139_vm9, %v272_v15, 0 }
  0x22   : > { %2514 = vmatprep.subr.bf16.mxu1 %v2826_v27  ;;  %v545_v22 = vsel %vm3139_vm9, %v356_v11, 0  ;;  %v697_v23 = vshrl.u32 %v544_v21, 16  ;;  %v700_v24 = vshll.u32 %v544_v21, 16  ;;  %v568_v25 = vsel %vm3143_vm10, %v272_v15, 0 }
  0x23   : > { %v582_v26 = vrot.slane %v580_v18, 1  ;;  %v3158_v27 = vrot.slane %v587_v20, 1  ;;  %v591_v43 = vshrl.u32 %v356_v11, 16  ;;  %v312_v15 = vmul.f32 %v2358_v61, %v3096_v35  ;;  %v2838_v20 = vld [vmem:[%s3780_s1 + $0x1c8] sm:$0xff]  }
  0x24   : > { %2451 = vmatpush3.bf16.msra.mxu0 %v2827_v28  ;;  %v729_v28 = vshrl.u32 %v545_v22, 16  ;;  %v699_v30 = vrot.slane %v697_v23, 7 }
  0x25   : > { %2515 = vmatpush3.bf16.msra.mxu1 %v2828_v29  ;;  %2452 = vmatprep.subr.bf16.mxu0 %v2829_v31  ;;  %v732_v29 = vshll.u32 %v545_v22, 16  ;;  %v569_v31 = vsel %vm3143_vm10, %v356_v11, 0  ;;  %v705_v37 = vshrl.u32 %v582_v26, 16  ;;  %v593_v60 = vor.u32 %v591_v43, %v3158_v27  ;;  %v2837_v11 = vld [vmem:[%s3780_s1 + $0x148] sm:$0xff]   ;;  %v2426_v22 = vld [vmem:[%s3088_s7 + $0x18] sm:$0xff]  }
  0x26   : > { %2516 = vmatprep.subr.bf16.mxu1 %v2830_v32  ;;  %v652_v32 = vrot.slane %v568_v25, 1  ;;  %v3162_v38 = vrot.slane %v729_v28, 7  ;;  %v3164_v39 = vrot.slane %v569_v31, 1  ;;  %v702_v40 = vor.u32 %v700_v24, %v699_v30  ;;  %v2839_v28 = vld [vmem:[%s3780_s1 + $0x108] sm:$0xff]  }
  0x27   : > { %v707_v45 = vrot.slane %v705_v37, 7  ;;  %v2427_v37 = vld [vmem:[%s3088_s7 + $0x20] sm:$0xff]   ;;  %v2362_v43 = vunpack.c.l.bf16 %v2426_v22 }
  0x28   : > { %2453 = vmatpush3.bf16.msra.mxu0 %v2831_v33  ;;  %v342_v33 = vmax.f32 %v326_v16, 0.0  ;;  %v717_v41 = vshrl.u32 %v652_v32, 16  ;;  %v734_v46 = vor.u32 %v732_v29, %v3162_v38  ;;  %v654_v48 = vsel %vm651_vm7, %v652_v32, %v3164_v39  ;;  %v2840_v29 = vld [vmem:[%s3780_s1 + $0x188] sm:$0xff]  }
  0x29   : > { %2517 = vmatpush3.bf16.msra.mxu1 %v2832_v34  ;;  %2566 = vmatprep.subr.bf16.mxu0 %v2833_v44  ;;  %v585_v34 = vor.u32 %v583_v19, %v582_v26  ;;  %v703_v52 = vsel %vm691_vm11, %v3123_v53, %v702_v40  ;;  %v721_v56 = vshrl.u32 %v654_v48, 16  ;;  %v724_v57 = vshll.u32 %v654_v48, 16  ;;  %v2835_v53 = vld [vmem:[%s3780_s1 + $0x100] sm:$0xff]  }
  0x2a   : > { %2630 = vmatprep.subr.bf16.mxu1 %v2834_v54  ;;  %v719_v54 = vrot.slane %v717_v41, 7  ;;  %v3175_v55 = vsel %vm691_vm11, %v699_v30, %v734_v46  ;;  %v3177_v58 = vpack.c.bf16 %v343_v42, %v342_v33  ;;  %v313_v16 = vmul.f32 %v2359_v62, %v3096_v35  ;;  %v2842_v42 = vld [vmem:[%s3780_s1 + $0x1d0] sm:$0xff]  }
  0x2b   : > { %v590_v44 = vsel %vm578_vm6, %v585_v34, %v3158_v27  ;;  %1577 = vmatprep.mubr.bf16.mxu1 %v3175_v55  ;;  %v723_v63 = vrot.slane %v721_v56, 7  ;;  %v328_v33 = vadd.f32 %v3101_v36, %v312_v15  ;;  %v2841_v34 = vld [vmem:[%s3780_s1 + $0x150] sm:$0xff]   ;;  %v2363_v48 = vunpack.c.h.bf16 %v2426_v22  ;;  %v3253_v56 = vld [vmem:[%s3088_s7 + $0x28] sm:$0xff]  }
  0x2c   : > { %v709_v50 = vshrl.u32 %v590_v44, 16  ;;  %v712_v51 = vshll.u32 %v590_v44, 16  ;;  %v595_v0 = vshll.u32 %v3177_v58, 16  ;;  %v546_v1 = vsel %vm3139_vm9, %v3177_v58, 0 }
  0x2d   : > { %v570_v2 = vsel %vm3143_vm10, %v3177_v58, 0  ;;  %v761_v5 = vshrl.u32 %v546_v1, 16  ;;  %v764_v6 = vshll.u32 %v546_v1, 16  ;;  %v726_v8 = vor.u32 %v724_v57, %v723_v63  ;;  %v2845_v1 = vld [vmem:[%s3780_s1 + $0x158] sm:$0xff]  }
  0x2e   : > { %v3179_v59 = vrot.slane %v709_v50, 7  ;;  %v3197_v7 = vrot.slane %v570_v2, 1  ;;  %v3199_v9 = vrot.slane %v595_v0, 1  ;;  %v599_v21 = vshrl.u32 %v3177_v58, 16  ;;  %v2844_v58 = vld [vmem:[%s3780_s1 + $0x190] sm:$0xff]  }
  0x2f   : > { %v3207_v18 = vrot.slane %v761_v5, 7  ;;  %v727_v23 = vsel %vm691_vm11, %v719_v54, %v726_v8  ;;  %v329_v41 = vadd.f32 %v3101_v36, %v313_v16  ;;  %v344_v46 = vmax.f32 %v328_v33, 0.0  ;;  %v2847_v16 = vld [vmem:[%s3780_s1 + $0x118] sm:$0xff]  }
  0x30   : > { %v714_v3 = vor.u32 %v712_v51, %v3179_v59  ;;  %v656_v19 = vsel %vm651_vm7, %v3164_v39, %v3197_v7  ;;  %v598_v24 = vsel %vm578_vm6, %v593_v60, %v3199_v9  ;;  %1578 = vmatmul.mubr.bf16.vlgmr.msra.gmra.mrb[0].mxu1 %v727_v23  ;;  %v2843_v51 = vld [vmem:[%s3780_s1 + $0x110] sm:$0xff]   ;;  %v2366_v54 = vunpack.c.l.bf16 %v2427_v37 }
  0x31   : > { %v753_v25 = vshrl.u32 %v656_v19, 16  ;;  %v756_v26 = vshll.u32 %v656_v19, 16  ;;  %v741_v30 = vshrl.u32 %v598_v24, 16  ;;  %v744_v31 = vshll.u32 %v598_v24, 16  ;;  %2631 = vmatpush3.bf16.msra.mxu1 %v2836_v4  ;;  %v2848_v24 = vld [vmem:[%s3780_s1 + $0x198] sm:$0xff]  }
  0x32   : > { %v715_v17 = vsel %vm691_vm11, %v707_v45, %v714_v3  ;;  %v766_v32 = vor.u32 %v764_v6, %v3207_v18  ;;  %2632 = vmatprep.subr.bf16.mxu1 %v2838_v20  ;;  %v345_v50 = vmax.f32 %v329_v41, 0.0  ;;  %v601_v57 = vor.u32 %v599_v21, %v3199_v9 }
  0x33   : > { %1480 = vmatprep.mubr.bf16.mxu0 %v715_v17  ;;  %v3232_v40 = vrot.slane %v753_v25, 7  ;;  %v3238_v44 = vrot.slane %v741_v30, 7  ;;  %v315_v60 = vmul.f32 %v2363_v48, %v3096_v35  ;;  %v2367_v61 = vunpack.c.h.bf16 %v2427_v37 }
  0x34   : > { %1481 = vmatmul.mubr.bf16.vlgmr.msra.gmra.mrb[0].mxu0 %v703_v52  ;;  %v3242_v45 = vsel %vm691_vm11, %v3162_v38, %v766_v32  ;;  %v314_v52 = vmul.f32 %v2362_v43, %v3096_v35  ;;  %v2370_v2 = vunpack.c.l.bf16 %v3253_v56  ;;  %v316_v5 = vmul.f32 %v2366_v54, %v3096_v35 }
  0x35   : > { %2567 = vmatpush3.bf16.msra.mxu0 %v2835_v53  ;;  %1585 = vmatprep.mubr.bf16.mxu1 %v3242_v45  ;;  %v3246_v49 = vor.u32 %v756_v26, %v3232_v40  ;;  %v3256_v38 = vor.u32 %v744_v31, %v3238_v44  ;;  %v358_v53 = vpack.c.bf16 %v345_v50, %v344_v46  ;;  %v2371_v6 = vunpack.c.h.bf16 %v3253_v56  ;;  %v2850_v31 = vld [vmem:[%s3780_s1 + $0x1e0] sm:$0xff]  }
  0x36   : > { %2568 = vmatprep.subr.bf16.mxu0 %v2837_v11  ;;  %2633 = vmatpush3.bf16.msra.mxu1 %v2840_v29  ;;  %v330_v0 = vadd.f32 %v3101_v36, %v314_v52  ;;  %v331_v4 = vadd.f32 %v3101_v36, %v315_v60  ;;  %v317_v25 = vmul.f32 %v2367_v61, %v3096_v35  ;;  %v2853_v60 = vld [vmem:[%s3780_s1 + $0x168] sm:$0xff]  }
  0x37   : > { %v793_v62 = vsel %vm691_vm11, %v723_v63, %v3246_v49  ;;  %v792_v3 = vsel %vm691_vm11, %v3179_v59, %v3256_v38  ;;  %2634 = vmatprep.subr.bf16.mxu1 %v2842_v42  ;;  %v2846_v63 = vld [vmem:[%s3780_s1 + $0x1d8] sm:$0xff]   ;;  %v603_v8 = vshll.u32 %v358_v53, 16  ;;  %v547_v11 = vsel %vm3139_vm9, %v358_v53, 0  ;;  %v2851_v42 = vld [vmem:[%s3780_s1 + $0x120] sm:$0xff]  }
  0x38   : > { %1488 = vmatprep.mubr.bf16.mxu0 %v792_v3  ;;  %v571_v59 = vsel %vm3143_vm10, %v358_v53, 0  ;;  %v346_v15 = vmax.f32 %v330_v0, 0.0  ;;  %1586 = vmatmul.mubr.bf16.gmra.mrb[4].mxu1 %v793_v62  ;;  %v797_v17 = vshrl.u32 %v547_v11, 16  ;;  %v800_v19 = vshll.u32 %v547_v11, 16 }
  0x39   : > { %2569 = vmatpush3.bf16.msra.mxu0 %v2839_v28  ;;  %v657_v20 = vrot.slane %v571_v59, 1  ;;  %v347_v21 = vmax.f32 %v331_v4, 0.0  ;;  %v605_v22 = vrot.slane %v603_v8, 1  ;;  %v607_v23 = vshrl.u32 %v358_v53, 16 }
  0x3a   : > { %2570 = vmatprep.subr.bf16.mxu0 %v2841_v34  ;;  %2635 = vmatpush3.bf16.msra.mxu1 %v2844_v58  ;;  %v332_v26 = vadd.f32 %v3101_v36, %v316_v5  ;;  %v3295_v28 = vrot.slane %v797_v17, 7  ;;  %v318_v32 = vmul.f32 %v2370_v2, %v3096_v35  ;;  %v333_v58 = vadd.f32 %v3101_v36, %v317_v25  ;;  %v3341_v5 = vld [vmem:[%s3088_s7 + $0x30] sm:$0xff]  }
  0x3b   : > { %v658_v29 = vsel %vm651_vm7, %v3197_v7, %v657_v20  ;;  %v3299_v30 = vpack.c.bf16 %v347_v21, %v346_v15  ;;  %2636 = vmatprep.subr.bf16.mxu1 %v2846_v63  ;;  %v606_v33 = vsel %vm578_vm6, %v601_v57, %v605_v22  ;;  %v609_v41 = vor.u32 %v607_v23, %v605_v22 }
  0x3c   : > { %1489 = vmatmul.mubr.bf16.gmra.mrb[4].mxu0 %v3175_v55  ;;  %v2849_v55 = vld [vmem:[%s3780_s1 + $0x160] sm:$0xff]   ;;  %v785_v34 = vshrl.u32 %v658_v29, 16  ;;  %v788_v37 = vshll.u32 %v658_v29, 16  ;;  %v773_v43 = vshrl.u32 %v606_v33, 16  ;;  %v776_v46 = vshll.u32 %v606_v33, 16 }
  0x3d   : > { %2571 = vmatpush3.bf16.msra.mxu0 %v2843_v51  ;;  %v802_v48 = vor.u32 %v800_v19, %v3295_v28  ;;  %v611_v50 = vshll.u32 %v3299_v30, 16  ;;  %v2852_v51 = vld [vmem:[%s3780_s1 + $0x1a0] sm:$0xff]   ;;  %v548_v54 = vsel %vm3139_vm9, %v3299_v30, 0  ;;  %v572_v57 = vsel %vm3143_vm10, %v3299_v30, 0 }
  0x3e   : > { %2572 = vmatprep.subr.bf16.mxu0 %v2845_v1  ;;  %v3314_v52 = vrot.slane %v785_v34, 7  ;;  %2637 = vmatpush3.bf16.msra.mxu1 %v2848_v24  ;;  %v775_v61 = vrot.slane %v773_v43, 7  ;;  %v821_v0 = vshrl.u32 %v548_v54, 16  ;;  %v2854_v1 = vld [vmem:[%s3780_s1 + $0x1e8] sm:$0xff]   ;;  %v824_v3 = vshll.u32 %v548_v54, 16 }
  0x3f   : > { %v3328_v62 = vsel %vm691_vm11, %v3207_v18, %v802_v48  ;;  %v613_v53 = vrot.slane %v611_v50, 1  ;;  %2638 = vmatprep.subr.bf16.mxu1 %v2850_v31  ;;  %v659_v4 = vrot.slane %v572_v57, 1  ;;  %v348_v63 = vmax.f32 %v332_v26, 0.0  ;;  %v2855_v18 = vld [vmem:[%s3780_s1 + $0x128] sm:$0xff]  }
  0x40   : > { %1593 = vmatprep.mubr.bf16.mxu1 %v3328_v62  ;;  %v3335_v2 = vor.u32 %v788_v37, %v3314_v52  ;;  %v3343_v8 = vor.u32 %v776_v46, %v775_v61  ;;  %v3346_v59 = vrot.slane %v821_v0, 7  ;;  %v349_v15 = vmax.f32 %v333_v58, 0.0 }
  0x41   : > { %2573 = vmatpush3.bf16.msra.mxu0 %v2847_v16  ;;  %v614_v11 = vsel %vm578_vm6, %v609_v41, %v613_v53  ;;  %v2856_v16 = vld [vmem:[%s3780_s1 + $0x1a8] sm:$0xff]   ;;  %v660_v22 = vsel %vm651_vm7, %v657_v20, %v659_v4  ;;  %v2858_v20 = vld [vmem:[%s3780_s1 + $0x1f0] sm:$0xff]   ;;  %v615_v29 = vshrl.u32 %v3299_v30, 16  ;;  %v319_v31 = vmul.f32 %v2371_v6, %v3096_v35 }
  0x42   : > { %2574 = vmatprep.subr.bf16.mxu0 %v2849_v55  ;;  %v3354_v17 = vsel %vm691_vm11, %v3232_v40, %v3335_v2  ;;  %v805_v19 = vshrl.u32 %v614_v11, 16  ;;  %v808_v21 = vshll.u32 %v614_v11, 16  ;;  %2639 = vmatpush3.bf16.msra.mxu1 %v2852_v51  ;;  %v3360_v23 = vsel %vm691_vm11, %v3238_v44, %v3343_v8  ;;  %v2857_v40 = vld [vmem:[%s3780_s1 + $0x170] sm:$0xff]   ;;  %v2861_v51 = vld [vmem:[%s3780_s1 + $0x178] sm:$0xff]  }
  0x43   : > { %1594 = vmatmul.mubr.bf16.gmra.mrb[8].mxu1 %v3354_v17  ;;  %v826_v24 = vor.u32 %v824_v3, %v3346_v59  ;;  %v813_v25 = vshrl.u32 %v660_v22, 16  ;;  %v816_v26 = vshll.u32 %v660_v22, 16  ;;  %1496 = vmatprep.mubr.bf16.mxu0 %v3360_v23  ;;  %v360_v44 = vpack.c.bf16 %v349_v15, %v348_v63 }
  0x44   : > { %v3371_v55 = vrot.slane %v805_v19, 7  ;;  %2640 = vmatprep.subr.bf16.mxu1 %v2854_v1  ;;  %1497 = vmatmul.mubr.bf16.gmra.mrb[8].mxu0 %v3242_v45  ;;  %v334_v37 = vadd.f32 %v3101_v36, %v318_v32  ;;  %v2374_v41 = vunpack.c.l.bf16 %v3341_v5  ;;  %v617_v30 = vor.u32 %v615_v29, %v613_v53  ;;  %v2860_v32 = vld [vmem:[%s3780_s1 + $0x1b0] sm:$0xff]  }
  0x45   : > { %2575 = vmatpush3.bf16.msra.mxu0 %v2851_v42  ;;  %v3380_v33 = vsel %vm691_vm11, %v3295_v28, %v826_v24  ;;  %v3382_v34 = vrot.slane %v813_v25, 7  ;;  %v619_v56 = vshll.u32 %v360_v44, 16  ;;  %v549_v6 = vsel %vm3139_vm9, %v360_v44, 0  ;;  %v2859_v28 = vld [vmem:[%s3780_s1 + $0x130] sm:$0xff]  }
  0x46   : > { %2576 = vmatprep.subr.bf16.mxu0 %v2853_v60  ;;  %v810_v42 = vor.u32 %v808_v21, %v3371_v55  ;;  %1601 = vmatprep.mubr.bf16.mxu1 %v3380_v33  ;;  %v845_v46 = vshrl.u32 %v549_v6, 16  ;;  %v848_v48 = vshll.u32 %v549_v6, 16  ;;  %v573_v50 = vsel %vm3143_vm10, %v360_v44, 0 }
  0x47   : > { %v818_v43 = vor.u32 %v816_v26, %v3382_v34  ;;  %2641 = vmatpush3.bf16.msra.mxu1 %v2856_v16  ;;  %v621_v57 = vrot.slane %v619_v56, 1  ;;  %v661_v58 = vrot.slane %v573_v50, 1  ;;  %v335_v60 = vadd.f32 %v3101_v36, %v319_v31 }
  0x48   : > { %v3403_v54 = vsel %vm691_vm11, %v775_v61, %v810_v42  ;;  %2642 = vmatprep.subr.bf16.mxu1 %v2858_v20  ;;  %v3411_v0 = vrot.slane %v845_v46, 7  ;;  %v350_v1 = vmax.f32 %v334_v37, 0.0  ;;  %v623_v3 = vshrl.u32 %v360_v44, 16  ;;  %v2862_v61 = vld [vmem:[%s3780_s1 + $0x1f8] sm:$0xff]  }
  0x49   : > { %2577 = vmatpush3.bf16.msra.mxu0 %v2855_v18  ;;  %1504 = vmatprep.mubr.bf16.mxu0 %v3403_v54  ;;  %v3409_v53 = vsel %vm691_vm11, %v3314_v52, %v818_v43  ;;  %v622_v63 = vsel %vm578_vm6, %v617_v30, %v621_v57  ;;  %v662_v18 = vsel %vm651_vm7, %v659_v4, %v661_v58  ;;  %v351_v11 = vmax.f32 %v335_v60, 0.0  ;;  %v2863_v52 = vld [vmem:[%s3780_s1 + $0x138] sm:$0xff]   ;;  %v3427_v4 = vld [vmem:[%s3780_s1 + $0x200] sm:$0xff]  }
  0x4a   : > { %2578 = vmatprep.subr.bf16.mxu0 %v2857_v40  ;;  %v2375_v15 = vunpack.c.h.bf16 %v3341_v5  ;;  %v829_v16 = vshrl.u32 %v622_v63, 16  ;;  %v832_v19 = vshll.u32 %v622_v63, 16  ;;  %v850_v21 = vor.u32 %v848_v48, %v3411_v0  ;;  %v2864_v40 = vld [vmem:[%s3780_s1 + $0x1b8] sm:$0xff]  }
  0x4b   : > { %1602 = vmatmul.mubr.bf16.gmra.mrb[12].mxu1 %v3409_v53  ;;  %v837_v22 = vshrl.u32 %v662_v18, 16  ;;  %v840_v24 = vshll.u32 %v662_v18, 16  ;;  %v361_v5 = vpack.c.bf16 %v351_v11, %v350_v1  ;;  %v625_v25 = vor.u32 %v623_v3, %v621_v57 }
  0x4c   : > { %v320_v26 = vmul.f32 %v2374_v41, %v3096_v35  ;;  %2643 = vmatpush3.bf16.msra.mxu1 %v2860_v32  ;;  %1505 = vmatmul.mubr.bf16.gmra.mrb[12].mxu0 %v3328_v62  ;;  %v831_v20 = vrot.slane %v829_v16, 7  ;;  %v3436_v44 = vsel %vm691_vm11, %v3346_v59, %v850_v21  ;;  %v321_v31 = vmul.f32 %v2375_v15, %v3096_v35  ;;  %v2430_v32 = vld [vmem:[%s3088_s7 + $0x38] sm:$0xff]   ;;  %s379_s7 = scalar_select %p364_p9, 1, 0 }
  0x4d   : > { %2579 = vmatpush3.bf16.msra.mxu0 %v2859_v28  ;;  %v839_v29 = vrot.slane %v837_v22, 7  ;;  %2644 = vmatprep.subr.bf16.mxu1 %v2862_v61  ;;  %v627_v37 = vshll.u32 %v361_v5, 16  ;;  %v550_v41 = vsel %vm3139_vm9, %v361_v5, 0  ;;  %v574_v42 = vsel %vm3143_vm10, %v361_v5, 0 }
  0x4e   : > { %2580 = vmatprep.subr.bf16.mxu0 %v2861_v51  ;;  %1609 = vmatprep.mubr.bf16.mxu1 %v3436_v44  ;;  %v336_v30 = vadd.f32 %v3101_v36, %v320_v26  ;;  %v834_v56 = vor.u32 %v832_v19, %v831_v20  ;;  %v869_v59 = vshrl.u32 %v550_v41, 16  ;;  %v872_v28 = vshll.u32 %v550_v41, 16 }
  0x4f   : > { %v842_v6 = vor.u32 %v840_v24, %v839_v29  ;;  %v629_v43 = vrot.slane %v627_v37, 1  ;;  %v663_v46 = vrot.slane %v574_v42, 1  ;;  %v337_v48 = vadd.f32 %v3101_v36, %v321_v31 }
  0x50   : > { %v352_v50 = vmax.f32 %v336_v30, 0.0  ;;  %2645 = vmatpush3.bf16.msra.mxu1 %v2864_v40  ;;  %v3450_v51 = vsel %vm691_vm11, %v3371_v55, %v834_v56  ;;  %v871_v60 = vrot.slane %v869_v59, 7  ;;  %v631_v1 = vshrl.u32 %v361_v5, 16 }
  0x51   : > { %2581 = vmatpush3.bf16.msra.mxu0 %v2863_v52  ;;  %v3454_v57 = vsel %vm691_vm11, %v3382_v34, %v842_v6  ;;  %2742 = vmatprep.subr.bf16.mxu1 %v3427_v4  ;;  %v630_v3 = vsel %vm578_vm6, %v625_v25, %v629_v43  ;;  %v664_v61 = vsel %vm651_vm7, %v661_v58, %v663_v46  ;;  %v353_v63 = vmax.f32 %v337_v48, 0.0 }
  0x52   : > { %2710 = vmatprep.subr.bf16.mxu0 %v3427_v4  ;;  %1512 = vmatprep.mubr.bf16.mxu0 %v3450_v51  ;;  %v2378_v18 = vunpack.c.l.bf16 %v2430_v32  ;;  %v853_v55 = vshrl.u32 %v630_v3, 16  ;;  %v856_v11 = vshll.u32 %v630_v3, 16  ;;  %v874_v15 = vor.u32 %v872_v28, %v871_v60 }
  0x53   : > { %1610 = vmatmul.mubr.bf16.gmra.mrb[16].mxu1 %v3454_v57  ;;  %v861_v52 = vshrl.u32 %v664_v61, 16  ;;  %v864_v34 = vshll.u32 %v664_v61, 16  ;;  %v362_v16 = vpack.c.bf16 %v353_v63, %v352_v50  ;;  %v633_v19 = vor.u32 %v631_v1, %v629_v43 }
  0x54   : > { %v2379_v21 = vunpack.c.h.bf16 %v2430_v32  ;;  %1513 = vmatmul.mubr.bf16.gmra.mrb[16].mxu0 %v3380_v33  ;;  %v855_v22 = vrot.slane %v853_v55, 7  ;;  %v3464_v24 = vsel %vm691_vm11, %v3411_v0, %v874_v15  ;;  %v322_v5 = vmul.f32 %v2378_v18, %v3096_v35 }
  0x55   : > { %v863_v58 = vrot.slane %v861_v52, 7  ;;  %1617 = vmatprep.mubr.bf16.mxu1 %v3464_v24  ;;  %v635_v25 = vshll.u32 %v362_v16, 16  ;;  %v551_v26 = vsel %vm3139_vm9, %v362_v16, 0  ;;  %v575_v40 = vsel %vm3143_vm10, %v362_v16, 0 }
  0x56   : > { %v639_v31 = vshrl.u32 %v362_v16, 16  ;;  %v858_v37 = vor.u32 %v856_v11, %v855_v22  ;;  %v893_v42 = vshrl.u32 %v551_v26, 16  ;;  %v896_v30 = vshll.u32 %v551_v26, 16 }
  0x57   : > { %v866_v41 = vor.u32 %v864_v34, %v863_v58  ;;  %v637_v56 = vrot.slane %v635_v25, 1  ;;  %v665_v0 = vrot.slane %v575_v40, 1  ;;  %v323_v6 = vmul.f32 %v2379_v21, %v3096_v35 }
  0x58   : > { %v338_v59 = vadd.f32 %v3101_v36, %v322_v5  ;;  %v3475_v28 = vsel %vm691_vm11, %v831_v20, %v858_v37  ;;  %v3480_v43 = vrot.slane %v893_v42, 7  ;;  %v374_v48 = vadd.f32 %v3101_v36, %v3137_v10 }
  0x59   : > { %v3478_v32 = vsel %vm691_vm11, %v839_v29, %v866_v41  ;;  %1520 = vmatprep.mubr.bf16.mxu0 %v3475_v28  ;;  %v638_v50 = vsel %vm578_vm6, %v633_v19, %v637_v56  ;;  %v666_v35 = vsel %vm651_vm7, %v663_v46, %v665_v0  ;;  %v641_v1 = vor.u32 %v639_v31, %v637_v56 }
  0x5a   : > { %v339_v3 = vadd.f32 %v3101_v36, %v323_v6  ;;  %v877_v20 = vshrl.u32 %v638_v50, 16  ;;  %v880_v29 = vshll.u32 %v638_v50, 16  ;;  %v898_v61 = vor.u32 %v896_v30, %v3480_v43 }
  0x5b   : > { %1618 = vmatmul.mubr.bf16.gmra.mrb[20].mxu1 %v3478_v32  ;;  %v885_v63 = vshrl.u32 %v666_v35, 16  ;;  %v888_v18 = vshll.u32 %v666_v35, 16  ;;  %v941_v55 = vshrl.u32 %v641_v1, 16  ;;  %v944_v11 = vshll.u32 %v641_v1, 16 }
  0x5c   : > { %v354_v10 = vmax.f32 %v338_v59, 0.0  ;;  %1521 = vmatmul.mubr.bf16.gmra.mrb[20].mxu0 %v3436_v44  ;;  %v3492_v15 = vrot.slane %v877_v20, 7  ;;  %v3495_v46 = vsel %vm691_vm11, %v871_v60, %v898_v61  ;;  %v355_v34 = vmax.f32 %v339_v3, 0.0 }
  0x5d   : > { %v887_v52 = vrot.slane %v885_v63, 7  ;;  %1625 = vmatprep.mubr.bf16.mxu1 %v3495_v46  ;;  %v943_v16 = vrot.slane %v941_v55, 7  ;;  %v749_v19 = vshrl.u32 %v3164_v39, 16  ;;  %v375_v26 = vadd.f32 %v3101_v36, %v3148_v14 }
  0x5e   : > { %v882_v21 = vor.u32 %v880_v29, %v3492_v15  ;;  %v363_v25 = vpack.c.bf16 %v355_v34, %v354_v10  ;;  %v376_v31 = vmax.f32 %v374_v48, 0.0  ;;  %v769_v30 = vshrl.u32 %v3199_v9, 16 }
  0x5f   : > { %v890_v5 = vor.u32 %v888_v18, %v887_v52  ;;  %v946_v40 = vor.u32 %v944_v11, %v943_v16  ;;  %v377_v6 = vmax.f32 %v375_v26, 0.0  ;;  %v380_v50 = vstv %s379_s7  ;;  %s226_s7 = sadd.s32 %s2217_s22, %s2216_s14 }
  0x60   : > { %v3505_v60 = vsel %vm691_vm11, %v855_v22, %v882_v21  ;;  %v552_v39 = vsel %vm3139_vm9, %v363_v25, 0  ;;  %v576_v41 = vsel %vm3143_vm10, %v363_v25, 0  ;;  %v670_v56 = vshll.u32 %v363_v25, 16  ;;  %s2218_s26 = sshll.u32 %s226_s7, 2 }
  0x61   : > { %v3508_v37 = vsel %vm691_vm11, %v863_v58, %v890_v5  ;;  %1528 = vmatprep.mubr.bf16.mxu0 %v3505_v60  ;;  %v917_v42 = vshrl.u32 %v552_v39, 16  ;;  %v920_v36 = vshll.u32 %v552_v39, 16  ;;  %v667_v14 = vrot.slane %v576_v41, 1  ;;  %s3725_s27 = scalar_lea.vmem %s3782_s3, %s2218_s26 }
  0x62   : > { %v947_v22 = vsel %vm691_vm11, %v3492_v15, %v946_v40  ;;  %v751_v58 = vrot.slane %v749_v19, 7  ;;  %v674_v35 = vshrl.u32 %v363_v25, 16  ;;  %v672_v29 = vrot.slane %v670_v56, 1 }
  0x63   : > { %1626 = vmatmul.mubr.bf16.gmra.mrb[24].mxu1 %v3508_v37  ;;  %v3519_v59 = vrot.slane %v917_v42, 7  ;;  %v668_v48 = vsel %vm651_vm7, %v665_v0, %v667_v14  ;;  %v378_v9 = vpack.c.bf16 %v377_v6, %v376_v31  ;;  %v771_v63 = vrot.slane %v769_v30, 7 }
  0x64   : > { %1529 = vmatmul.mubr.bf16.gmra.mrb[24].mxu0 %v3464_v24  ;;  %v909_v3 = vshrl.u32 %v668_v48, 16  ;;  %v912_v20 = vshll.u32 %v668_v48, 16  ;;  %vm381_vm12 = vcmp.eq.s32.totalorder %v380_v50, 1  ;;  %v781_v11 = vshrl.u32 %v3197_v7, 16 }
  0x65   : > { %1536 = vmatprep.mubr.bf16.mxu0 %v947_v22  ;;  %v922_v61 = vor.u32 %v920_v36, %v3519_v59  ;;  %v382_v55 = vsel %vm381_vm12, %v378_v9, 0  ;;  %v3530_v10 = vsel %vm578_vm6, %v641_v1, %v672_v29  ;;  %v3532_v34 = vor.u32 %v674_v35, %v672_v29 }
  0x66   : > { %v911_v18 = vrot.slane %v909_v3, 7  ;;  %v681_v16 = vshll.u32 %v382_v55, 16  ;;  %v759_v21 = vsel %vm691_vm11, %v751_v58, %v3246_v49  ;;  %v577_v5 = vsel %vm3143_vm10, %v382_v55, 0 }
  0x67   : > { %v3527_v0 = vsel %vm691_vm11, %v3480_v43, %v922_v61  ;;  %v685_v7 = vshrl.u32 %v382_v55, 16  ;;  %v779_v43 = vsel %vm691_vm11, %v771_v63, %v3343_v8  ;;  %v737_v25 = vshrl.u32 %v3158_v27, 16 }
  0x68   : > { %1633 = vmatprep.mubr.bf16.mxu1 %v3527_v0  ;;  %v914_v19 = vor.u32 %v912_v20, %v911_v18  ;;  %v683_v1 = vrot.slane %v681_v16, 1  ;;  %v678_v26 = vrot.slane %v577_v5, 1  ;;  %v901_v31 = vshrl.u32 %v3530_v10, 16  ;;  %v2866_v16 = vld [vmem:[%s3780_s1 + $0x208] sm:$0xff]  }
  0x69   : > { %v553_v39 = vsel %vm3139_vm9, %v382_v55, 0  ;;  %v689_v49 = vrot.slane %v2914_v47, 1  ;;  %v783_v41 = vrot.slane %v781_v11, 7  ;;  %v739_v12 = vrot.slane %v737_v25, 7 }
  0x6a   : > { %v3543_v40 = vsel %vm691_vm11, %v887_v52, %v914_v19  ;;  %v684_v13 = vsel %vm578_vm6, %v3532_v34, %v683_v1  ;;  %v679_v8 = vsel %vm651_vm7, %v667_v14, %v678_v26  ;;  %v687_v27 = vor.u32 %v685_v7, %v683_v1 }
  0x6b   : > { %1634 = vmatmul.mubr.bf16.gmra.mrb[28].mxu1 %v3543_v40  ;;  %v925_v52 = vshrl.u32 %v684_v13, 16  ;;  %v928_v42 = vshll.u32 %v684_v13, 16  ;;  %v933_v36 = vshrl.u32 %v679_v8, 16  ;;  %v936_v30 = vshll.u32 %v679_v8, 16 }
  0x6c   : > { %1537 = vmatmul.mubr.bf16.gmra.mrb[28].mxu0 %v3495_v46  ;;  %1771 = vmatprep.mubr.bf16.mxu1 %v779_v43  ;;  %v965_v22 = vshrl.u32 %v687_v27, 16  ;;  %v968_v47 = vshll.u32 %v687_v27, 16  ;;  %v957_v6 = vshrl.u32 %v553_v39, 16  ;;  %v960_v48 = vshll.u32 %v553_v39, 16 }
  0x6d   : > { %1674 = vmatprep.mubr.bf16.mxu0 %v759_v21  ;;  %v927_v58 = vrot.slane %v925_v52, 7  ;;  %v935_v56 = vrot.slane %v933_v36, 7  ;;  %v3554_v50 = vrot.slane %v901_v31, 7  ;;  %v3558_v35 = vsel %vm691_vm11, %v783_v41, %v3335_v2 }
  0x6e   : > { %v967_v14 = vrot.slane %v965_v22, 7  ;;  %v690_v3 = vsel %vm651_vm7, %v678_v26, %v689_v49  ;;  %v959_v9 = vrot.slane %v957_v6, 7  ;;  %v747_v63 = vsel %vm691_vm11, %v739_v12, %v3256_v38 }
  0x6f   : > { %v930_v20 = vor.u32 %v928_v42, %v927_v58  ;;  %v938_v29 = vor.u32 %v936_v30, %v935_v56  ;;  %v973_v61 = vshrl.u32 %v690_v3, 16  ;;  %v976_v11 = vshll.u32 %v690_v3, 16 }
  0x70   : > { %v970_v55 = vor.u32 %v968_v47, %v967_v14  ;;  %v962_v21 = vor.u32 %v960_v48, %v959_v9 }
  0x71   : > { %v3568_v19 = vsel %vm691_vm11, %v3554_v50, %v930_v20  ;;  %v3571_v2 = vsel %vm691_vm11, %v911_v18, %v938_v29  ;;  %v975_v5 = vrot.slane %v973_v61, 7  ;;  %v2867_v18 = vld [vmem:[%s3780_s1 + $0x210] sm:$0xff]  }
  0x72   : > { %v3575_v7 = vsel %vm691_vm11, %v927_v58, %v970_v55  ;;  %v3580_v38 = vsel %vm691_vm11, %v3519_v59, %v962_v21  ;;  %v904_v59 = vshll.u32 %v3530_v10, 16 }
  0x73   : > { %1772 = vmatmul.mubr.bf16.vlgmr.msra.gmra.mrb[32].mxu1 %v3242_v45  ;;  %v978_v43 = vor.u32 %v976_v11, %v975_v5 }
  0x74   : > { %1675 = vmatmul.mubr.bf16.vlgmr.msra.gmra.mrb[32].mxu0 %v747_v63  ;;  %2750 = vmatpush3.bf16.msra.mxu1 %v3427_v4 }
  0x75   : > { %2711 = vmatpush3.bf16.msra.mxu0 %v3427_v4  ;;  %1682 = vmatprep.mubr.bf16.mxu0 %v3354_v17  ;;  %v3589_v45 = vsel %vm691_vm11, %v935_v56, %v978_v43  ;;  %v2868_v4 = vld [vmem:[%s3780_s1 + $0x218] sm:$0xff]   ;;  %v2869_v17 = vld [vmem:[%s3780_s1 + $0x220] sm:$0xff]  }
  0x76   : > { %1779 = vmatprep.mubr.bf16.mxu1 %v3403_v54  ;;  %2712 = vmatprep.subr.bf16.mxu0 %v2866_v16 }
  0x77   : > { %2743 = vmatprep.subr.bf16.mxu1 %v2866_v16 }
  0x78   : > { %2751 = vmatpush3.bf16.msra.mxu1 %v2866_v16 }
  0x79   : > { %2713 = vmatpush3.bf16.msra.mxu0 %v2866_v16  ;;  %2744 = vmatprep.subr.bf16.mxu1 %v2867_v18 }
  0x7a   : > { %2714 = vmatprep.subr.bf16.mxu0 %v2867_v18 }
  0x7b   : > { %1780 = vmatmul.mubr.bf16.gmra.mrb[36].mxu1 %v3328_v62  ;;  %v2870_v62 = vld [vmem:[%s3780_s1 + $0x228] sm:$0xff]  }
  0x7c   : > { %1683 = vmatmul.mubr.bf16.gmra.mrb[36].mxu0 %v3360_v23  ;;  %1787 = vmatprep.mubr.bf16.mxu1 %v3450_v51  ;;  %v2871_v23 = vld [vmem:[%s3780_s1 + $0x230] sm:$0xff]  }
  0x7d   : > { %1690 = vmatprep.mubr.bf16.mxu0 %v3409_v53  ;;  %2715 = vmatpush3.bf16.msra.mxu0 %v2867_v18 }
  0x7e   : > { %2752 = vmatpush3.bf16.msra.mxu1 %v2867_v18  ;;  %2716 = vmatprep.subr.bf16.mxu0 %v2868_v4 }
  0x7f   : > { %2745 = vmatprep.subr.bf16.mxu1 %v2868_v4 }
  0x81   : > { %2717 = vmatpush3.bf16.msra.mxu0 %v2868_v4 }
  0x82   : > { %2753 = vmatpush3.bf16.msra.mxu1 %v2868_v4  ;;  %2718 = vmatprep.subr.bf16.mxu0 %v2869_v17 }
  0x83   : > { %1788 = vmatmul.mubr.bf16.gmra.mrb[40].mxu1 %v3380_v33  ;;  %2746 = vmatprep.subr.bf16.mxu1 %v2869_v17  ;;  %v2872_v33 = vld [vmem:[%s3780_s1 + $0x238] sm:$0xff]  }
  0x84   : > { %1691 = vmatmul.mubr.bf16.gmra.mrb[40].mxu0 %v3403_v54  ;;  %1795 = vmatprep.mubr.bf16.mxu1 %v3475_v28  ;;  %v906_v54 = vor.u32 %v904_v59, %v3554_v50 }
  0x85   : > { %1698 = vmatprep.mubr.bf16.mxu0 %v3454_v57  ;;  %2719 = vmatpush3.bf16.msra.mxu0 %v2869_v17 }
  0x86   : > { %2754 = vmatpush3.bf16.msra.mxu1 %v2869_v17  ;;  %2720 = vmatprep.subr.bf16.mxu0 %v2870_v62  ;;  %v907_v10 = vsel %vm691_vm11, %v3492_v15, %v906_v54  ;;  %v952_v15 = vshll.u32 %v3532_v34, 16 }
  0x87   : > { %2747 = vmatprep.subr.bf16.mxu1 %v2870_v62 }
  0x89   : > { %2721 = vmatpush3.bf16.msra.mxu0 %v2870_v62 }
  0x8a   : > { %2755 = vmatpush3.bf16.msra.mxu1 %v2870_v62  ;;  %2722 = vmatprep.subr.bf16.mxu0 %v2871_v23 }
  0x8b   : > { %1796 = vmatmul.mubr.bf16.gmra.mrb[44].mxu1 %v3436_v44  ;;  %2748 = vmatprep.subr.bf16.mxu1 %v2871_v23  ;;  %v949_v44 = vshrl.u32 %v3532_v34, 16 }
  0x8c   : > { %1699 = vmatmul.mubr.bf16.gmra.mrb[44].mxu0 %v3450_v51  ;;  %1803 = vmatprep.mubr.bf16.mxu1 %v3505_v60 }
  0x8d   : > { %1706 = vmatprep.mubr.bf16.mxu0 %v3478_v32  ;;  %2723 = vmatpush3.bf16.msra.mxu0 %v2871_v23  ;;  %v951_v51 = vrot.slane %v949_v44, 7 }
  0x8e   : > { %2756 = vmatpush3.bf16.msra.mxu1 %v2871_v23  ;;  %2724 = vmatprep.subr.bf16.mxu0 %v2872_v33 }
  0x8f   : > { %2749 = vmatprep.subr.bf16.mxu1 %v2872_v33 }
  0x91   : > { %2725 = vmatpush3.bf16.msra.mxu0 %v2872_v33 }
  0x92   : > { %2757 = vmatpush3.bf16.msra.mxu1 %v2872_v33 }
  0x93   : > { %1804 = vmatmul.mubr.bf16.gmra.mrb[48].mxu1 %v3464_v24  ;;  %v954_v24 = vor.u32 %v952_v15, %v951_v51 }
  0x94   : > { %1707 = vmatmul.mubr.bf16.gmra.mrb[48].mxu0 %v3475_v28  ;;  %1811 = vmatprep.mubr.bf16.mxu1 %v907_v10 }
  0x95   : > { %1714 = vmatprep.mubr.bf16.mxu0 %v3508_v37  ;;  %v955_v28 = vsel %vm691_vm11, %v3554_v50, %v954_v24 }
  0x9b   : > { %1812 = vmatmul.mubr.bf16.gmra.mrb[52].mxu1 %v3495_v46 }
  0x9c   : > { %1715 = vmatmul.mubr.bf16.gmra.mrb[52].mxu0 %v3505_v60  ;;  %1819 = vmatprep.mubr.bf16.mxu1 %v3568_v19 }
  0x9d   : > { %1722 = vmatprep.mubr.bf16.mxu0 %v3543_v40 }
  0xa3   : > { %1820 = vmatmul.mubr.bf16.gmra.mrb[56].mxu1 %v3527_v0 }
  0xa4   : > { %1723 = vmatmul.mubr.bf16.gmra.mrb[56].mxu0 %v907_v10  ;;  %1827 = vmatprep.mubr.bf16.mxu1 %v3575_v7 }
  0xa5   : > { %1730 = vmatprep.mubr.bf16.mxu0 %v3571_v2 }
  0xab   : > { %1828 = vmatmul.mubr.bf16.gmra.mrb[60].mxu1 %v3580_v38 }
  0xac   : > { %1731 = vmatmul.mubr.bf16.gmra.mrb[60].mxu0 %v955_v28  ;;  %2734 = vmatprep.mubr.bf16.mxu1 %v3508_v37 }
  0xad   : > { %2726 = vmatprep.mubr.bf16.mxu0 %v3558_v35 }
  0xb3   : > { %2735 = vmatmul.mubr.bf16.vlgmr.msra.gmra.mrb[64].mxu1 %v3543_v40 }
  0xb4   : > { %2727 = vmatmul.mubr.bf16.vlgmr.msra.gmra.mrb[64].mxu0 %v3409_v53  ;;  %2738 = vmatprep.mubr.bf16.mxu1 %v3571_v2 }
  0xb5   : > { %2730 = vmatprep.mubr.bf16.mxu0 %v3454_v57 }
  0xbb   : > { %2739 = vmatmul.mubr.bf16.gmra.mrb[68].mxu1 %v3589_v45 }
  0xbc   : > { %2731 = vmatmul.mubr.bf16.gmra.mrb[68].mxu0 %v3478_v32 }
 0x103   : > { %v2518_v60 = vpop.f32.mrb[0].mxu1 }
 0x104   : > { %v2519_v34 = vpop.f32.mrb[1].mxu1 }
 0x105   : > { %v2520_v37 = vadd.f32 %v2519_v34, %v2518_v60  ;;  %v2521_v26 = vpop.f32.mrb[2].mxu1 }
 0x106   : > { %v2522_v40 = vpop.f32.mrb[3].mxu1 }
 0x107   : > { %v2454_v46 = vpop.f32.mrb[0].mxu0  ;;  %v2523_v49 = vadd.f32 %v2522_v40, %v2521_v26 }
 0x108   : > { %v2455_v0 = vpop.f32.mrb[1].mxu0 }
 0x109   : > { %v2456_v25 = vadd.f32 %v2455_v0, %v2454_v46  ;;  %v2457_v1 = vpop.f32.mrb[2].mxu0 }
 0x10a   : > { %v2458_v31 = vpop.f32.mrb[3].mxu0 }
 0x10b   : > { %v3645_v39 = vadd.f32 %v2520_v37, %v2456_v25  ;;  %v2459_v53 = vadd.f32 %v2458_v31, %v2457_v1  ;;  %v2524_v8 = vpop.f32.mrb[4].mxu1 }
 0x10c   : > { %v2525_v32 = vpop.f32.mrb[5].mxu1 }
 0x10d   : > { %v3647_v13 = vadd.f32 %v2523_v49, %v2459_v53  ;;  %v2526_v52 = vadd.f32 %v2525_v32, %v2524_v8  ;;  %v2527_v36 = vpop.f32.mrb[6].mxu1 }
 0x10e   : > { %v2528_v12 = vpop.f32.mrb[7].mxu1 }
 0x10f   : > { %v2460_v57 = vpop.f32.mrb[4].mxu0  ;;  %v2529_v58 = vadd.f32 %v2528_v12, %v2527_v36 }
 0x110   : > { %v2461_v27 = vpop.f32.mrb[5].mxu0 }
 0x111   : > { %v2462_v41 = vadd.f32 %v2461_v27, %v2460_v57  ;;  %v2463_v42 = vpop.f32.mrb[6].mxu0 }
 0x112   : > { %v2464_v30 = vpop.f32.mrb[7].mxu0 }
 0x113   : > { %v3649_v22 = vadd.f32 %v2526_v52, %v2462_v41  ;;  %v2465_v47 = vadd.f32 %v2464_v30, %v2463_v42 }
 0x115   : > { %v3651_v56 = vadd.f32 %v2529_v58, %v2465_v47 }
 0x116   : > { %v2530_v6 = vpop.f32.mrb[8].mxu1 }
 0x117   : > { %v2531_v48 = vpop.f32.mrb[9].mxu1  ;;  %v2466_v50 = vpop.f32.mrb[8].mxu0 }
 0x118   : > { %v2532_v14 = vadd.f32 %v2531_v48, %v2530_v6  ;;  %v2533_v35 = vpop.f32.mrb[10].mxu1  ;;  %v2467_v3 = vpop.f32.mrb[9].mxu0 }
 0x119   : > { %v2534_v20 = vpop.f32.mrb[11].mxu1  ;;  %v2468_v29 = vadd.f32 %v2467_v3, %v2466_v50  ;;  %v2469_v9 = vpop.f32.mrb[10].mxu0 }
 0x11a   : > { %v2535_v61 = vadd.f32 %v2534_v20, %v2533_v35  ;;  %v2470_v63 = vpop.f32.mrb[11].mxu0 }
 0x11b   : > { %v3653_v55 = vadd.f32 %v2532_v14, %v2468_v29  ;;  %v2471_v11 = vadd.f32 %v2470_v63, %v2469_v9 }
 0x11d   : > { %v3655_v16 = vadd.f32 %v2535_v61, %v2471_v11 }
 0x11e   : > { %v2536_v19 = vpop.f32.mrb[12].mxu1 }
 0x11f   : > { %v2537_v2 = vpop.f32.mrb[13].mxu1  ;;  %v2472_v21 = vpop.f32.mrb[12].mxu0 }
 0x120   : > { %v2538_v5 = vadd.f32 %v2537_v2, %v2536_v19  ;;  %v2539_v7 = vpop.f32.mrb[14].mxu1  ;;  %v2473_v38 = vpop.f32.mrb[13].mxu0 }
 0x121   : > { %v2540_v43 = vpop.f32.mrb[15].mxu1  ;;  %v2474_v18 = vadd.f32 %v2473_v38, %v2472_v21  ;;  %v2475_v45 = vpop.f32.mrb[14].mxu0 }
 0x122   : > { %v2541_v4 = vadd.f32 %v2540_v43, %v2539_v7  ;;  %v2476_v17 = vpop.f32.mrb[15].mxu0 }
 0x123   : > { %v3657_v62 = vadd.f32 %v2538_v5, %v2474_v18  ;;  %v2477_v23 = vadd.f32 %v2476_v17, %v2475_v45 }
 0x125   : > { %v3659_v59 = vadd.f32 %v2541_v4, %v2477_v23 }
 0x126   : > { %v2542_v33 = vpop.f32.mrb[16].mxu1 }
 0x127   : > { %v2543_v54 = vpop.f32.mrb[17].mxu1  ;;  %v2478_v10 = vpop.f32.mrb[16].mxu0 }
 0x128   : > { %v2544_v44 = vadd.f32 %v2543_v54, %v2542_v33  ;;  %v2545_v51 = vpop.f32.mrb[18].mxu1  ;;  %v2479_v15 = vpop.f32.mrb[17].mxu0 }
 0x129   : > { %v2546_v24 = vpop.f32.mrb[19].mxu1  ;;  %v2480_v28 = vadd.f32 %v2479_v15, %v2478_v10  ;;  %v2481_v46 = vpop.f32.mrb[18].mxu0 }
 0x12a   : > { %v2547_v60 = vadd.f32 %v2546_v24, %v2545_v51  ;;  %v2482_v0 = vpop.f32.mrb[19].mxu0 }
 0x12b   : > { %v3661_v34 = vadd.f32 %v2544_v44, %v2480_v28  ;;  %v2483_v25 = vadd.f32 %v2482_v0, %v2481_v46 }
 0x12d   : > { %v3663_v37 = vadd.f32 %v2547_v60, %v2483_v25 }
 0x12e   : > { %v2548_v1 = vpop.f32.mrb[20].mxu1 }
 0x12f   : > { %v2549_v26 = vpop.f32.mrb[21].mxu1  ;;  %v2484_v31 = vpop.f32.mrb[20].mxu0 }
 0x130   : > { %v2550_v40 = vadd.f32 %v2549_v26, %v2548_v1  ;;  %v2551_v53 = vpop.f32.mrb[22].mxu1  ;;  %v2485_v49 = vpop.f32.mrb[21].mxu0 }
 0x131   : > { %v2552_v57 = vpop.f32.mrb[23].mxu1  ;;  %v2486_v8 = vadd.f32 %v2485_v49, %v2484_v31  ;;  %v2487_v27 = vpop.f32.mrb[22].mxu0 }
 0x132   : > { %v2553_v32 = vadd.f32 %v2552_v57, %v2551_v53  ;;  %v2488_v41 = vpop.f32.mrb[23].mxu0 }
 0x133   : > { %v3665_v52 = vadd.f32 %v2550_v40, %v2486_v8  ;;  %v2489_v42 = vadd.f32 %v2488_v41, %v2487_v27 }
 0x135   : > { %v3667_v36 = vadd.f32 %v2553_v32, %v2489_v42 }
 0x136   : > { %v2554_v30 = vpop.f32.mrb[24].mxu1 }
 0x137   : > { %v2555_v12 = vpop.f32.mrb[25].mxu1  ;;  %v2490_v47 = vpop.f32.mrb[24].mxu0 }
 0x138   : > { %v2556_v58 = vadd.f32 %v2555_v12, %v2554_v30  ;;  %v2557_v6 = vpop.f32.mrb[26].mxu1  ;;  %v2491_v48 = vpop.f32.mrb[25].mxu0 }
 0x139   : > { %v2558_v50 = vpop.f32.mrb[27].mxu1  ;;  %v2492_v14 = vadd.f32 %v2491_v48, %v2490_v47  ;;  %v2493_v35 = vpop.f32.mrb[26].mxu0 }
 0x13a   : > { %v2559_v3 = vadd.f32 %v2558_v50, %v2557_v6  ;;  %v2494_v20 = vpop.f32.mrb[27].mxu0 }
 0x13b   : > { %v3669_v29 = vadd.f32 %v2556_v58, %v2492_v14  ;;  %v2495_v9 = vadd.f32 %v2494_v20, %v2493_v35 }
 0x13d   : > { %v3671_v61 = vadd.f32 %v2559_v3, %v2495_v9 }
 0x13e   : > { %v2560_v63 = vpop.f32.mrb[28].mxu1 }
 0x13f   : > { %v2496_v11 = vpop.f32.mrb[28].mxu0  ;;  %v2561_v19 = vpop.f32.mrb[29].mxu1 }
 0x140   : > { %v2497_v2 = vpop.f32.mrb[29].mxu0  ;;  %v2562_v21 = vadd.f32 %v2561_v19, %v2560_v63  ;;  %v2563_v5 = vpop.f32.mrb[30].mxu1 }
 0x141   : > { %v2498_v7 = vadd.f32 %v2497_v2, %v2496_v11  ;;  %v2499_v38 = vpop.f32.mrb[30].mxu0  ;;  %v2564_v43 = vpop.f32.mrb[31].mxu1 }
 0x142   : > { %v2500_v18 = vpop.f32.mrb[31].mxu0  ;;  %v2565_v45 = vadd.f32 %v2564_v43, %v2563_v5 }
 0x143   : > { %v3673_v4 = vadd.f32 %v2562_v21, %v2498_v7  ;;  %v2501_v17 = vadd.f32 %v2500_v18, %v2499_v38 }
 0x145   : > { %v3675_v23 = vadd.f32 %v2565_v45, %v2501_v17 }
 0x146   : > { %v2646_v33 = vpop.f32.mrb[32].mxu1 }
 0x147   : > { %v2582_v54 = vpop.f32.mrb[32].mxu0  ;;  %v2647_v10 = vpop.f32.mrb[33].mxu1 }
 0x148   : > { %v2583_v44 = vpop.f32.mrb[33].mxu0  ;;  %v2648_v51 = vadd.f32 %v2647_v10, %v2646_v33  ;;  %v2649_v15 = vpop.f32.mrb[34].mxu1 }
 0x149   : > { %v2584_v24 = vadd.f32 %v2583_v44, %v2582_v54  ;;  %v2585_v28 = vpop.f32.mrb[34].mxu0  ;;  %v2650_v46 = vpop.f32.mrb[35].mxu1 }
 0x14a   : > { %v2586_v60 = vpop.f32.mrb[35].mxu0  ;;  %v2651_v0 = vadd.f32 %v2650_v46, %v2649_v15 }
 0x14b   : > { %v1677_v25 = vadd.f32 %v2584_v24, %v3645_v39  ;;  %v2587_v1 = vadd.f32 %v2586_v60, %v2585_v28 }
 0x14d   : > { %v1680_v26 = vadd.f32 %v2587_v1, %v3647_v13  ;;  %v3679_v31 = vadd.f32 %v2648_v51, %v1677_v25 }
 0x14e   : > { %v2652_v40 = vpop.f32.mrb[36].mxu1 }
 0x14f   : > { %v2588_v53 = vpop.f32.mrb[36].mxu0  ;;  %v2653_v49 = vpop.f32.mrb[37].mxu1  ;;  %v3681_v57 = vadd.f32 %v2651_v0, %v1680_v26 }
 0x150   : > { %v2589_v8 = vpop.f32.mrb[37].mxu0  ;;  %v2654_v27 = vadd.f32 %v2653_v49, %v2652_v40  ;;  %v2655_v32 = vpop.f32.mrb[38].mxu1 }
 0x151   : > { %v2590_v41 = vadd.f32 %v2589_v8, %v2588_v53  ;;  %v2591_v42 = vpop.f32.mrb[38].mxu0  ;;  %v2656_v30 = vpop.f32.mrb[39].mxu1 }
 0x152   : > { %v2592_v12 = vpop.f32.mrb[39].mxu0  ;;  %v2657_v47 = vadd.f32 %v2656_v30, %v2655_v32 }
 0x153   : > { %v1685_v39 = vadd.f32 %v2590_v41, %v3649_v22  ;;  %v2593_v58 = vadd.f32 %v2592_v12, %v2591_v42 }
 0x155   : > { %v1688_v13 = vadd.f32 %v2593_v58, %v3651_v56  ;;  %v3685_v6 = vadd.f32 %v2654_v27, %v1685_v39 }
 0x156   : > { %v2658_v48 = vpop.f32.mrb[40].mxu1 }
 0x157   : > { %v2594_v50 = vpop.f32.mrb[40].mxu0  ;;  %v2659_v14 = vpop.f32.mrb[41].mxu1  ;;  %v3687_v35 = vadd.f32 %v2657_v47, %v1688_v13 }
 0x158   : > { %v2595_v3 = vpop.f32.mrb[41].mxu0  ;;  %v2660_v20 = vadd.f32 %v2659_v14, %v2658_v48  ;;  %v2661_v9 = vpop.f32.mrb[42].mxu1 }
 0x159   : > { %v2596_v63 = vadd.f32 %v2595_v3, %v2594_v50  ;;  %v2597_v11 = vpop.f32.mrb[42].mxu0  ;;  %v2662_v19 = vpop.f32.mrb[43].mxu1 }
 0x15a   : > { %v2598_v2 = vpop.f32.mrb[43].mxu0  ;;  %v2663_v21 = vadd.f32 %v2662_v19, %v2661_v9 }
 0x15b   : > { %v1693_v22 = vadd.f32 %v2596_v63, %v3653_v55  ;;  %v2599_v5 = vadd.f32 %v2598_v2, %v2597_v11 }
 0x15d   : > { %v1696_v56 = vadd.f32 %v2599_v5, %v3655_v16  ;;  %v3691_v7 = vadd.f32 %v2660_v20, %v1693_v22 }
 0x15e   : > { %v2664_v38 = vpop.f32.mrb[44].mxu1 }
 0x15f   : > { %v2600_v43 = vpop.f32.mrb[44].mxu0  ;;  %v2665_v18 = vpop.f32.mrb[45].mxu1  ;;  %v3693_v45 = vadd.f32 %v2663_v21, %v1696_v56 }
 0x160   : > { %v2601_v17 = vpop.f32.mrb[45].mxu0  ;;  %v2666_v33 = vadd.f32 %v2665_v18, %v2664_v38  ;;  %v2667_v54 = vpop.f32.mrb[46].mxu1 }
 0x161   : > { %v2602_v10 = vadd.f32 %v2601_v17, %v2600_v43  ;;  %v2603_v44 = vpop.f32.mrb[46].mxu0  ;;  %v2668_v51 = vpop.f32.mrb[47].mxu1 }
 0x162   : > { %v2604_v15 = vpop.f32.mrb[47].mxu0  ;;  %v2669_v24 = vadd.f32 %v2668_v51, %v2667_v54 }
 0x163   : > { %v1701_v55 = vadd.f32 %v2602_v10, %v3657_v62  ;;  %v2605_v28 = vadd.f32 %v2604_v15, %v2603_v44 }
 0x165   : > { %v1704_v16 = vadd.f32 %v2605_v28, %v3659_v59  ;;  %v3697_v46 = vadd.f32 %v2666_v33, %v1701_v55 }
 0x166   : > { %v2670_v60 = vpop.f32.mrb[48].mxu1 }
 0x167   : > { %v2606_v0 = vpop.f32.mrb[48].mxu0  ;;  %v2671_v25 = vpop.f32.mrb[49].mxu1  ;;  %v3699_v1 = vadd.f32 %v2669_v24, %v1704_v16 }
 0x168   : > { %v2607_v26 = vpop.f32.mrb[49].mxu0  ;;  %v2672_v40 = vadd.f32 %v2671_v25, %v2670_v60  ;;  %v2673_v53 = vpop.f32.mrb[50].mxu1 }
 0x169   : > { %v2608_v49 = vadd.f32 %v2607_v26, %v2606_v0  ;;  %v2609_v8 = vpop.f32.mrb[50].mxu0  ;;  %v2674_v27 = vpop.f32.mrb[51].mxu1 }
 0x16a   : > { %v2610_v32 = vpop.f32.mrb[51].mxu0  ;;  %v2675_v41 = vadd.f32 %v2674_v27, %v2673_v53 }
 0x16b   : > { %v1709_v62 = vadd.f32 %v2608_v49, %v3661_v34  ;;  %v2611_v42 = vadd.f32 %v2610_v32, %v2609_v8 }
 0x16d   : > { %v1712_v59 = vadd.f32 %v2611_v42, %v3663_v37  ;;  %v1806_v30 = vadd.f32 %v2672_v40, %v1709_v62 }
 0x16e   : > { %v2676_v12 = vpop.f32.mrb[52].mxu1 }
 0x16f   : > { %v2612_v47 = vpop.f32.mrb[52].mxu0  ;;  %v2677_v39 = vpop.f32.mrb[53].mxu1  ;;  %v3703_v58 = vadd.f32 %v2675_v41, %v1712_v59 }
 0x170   : > { %v2613_v13 = vpop.f32.mrb[53].mxu0  ;;  %v2678_v48 = vadd.f32 %v2677_v39, %v2676_v12  ;;  %v2679_v50 = vpop.f32.mrb[54].mxu1 }
 0x171   : > { %v2614_v14 = vadd.f32 %v2613_v13, %v2612_v47  ;;  %v2615_v3 = vpop.f32.mrb[54].mxu0  ;;  %v2680_v20 = vpop.f32.mrb[55].mxu1 }
 0x172   : > { %v2616_v9 = vpop.f32.mrb[55].mxu0  ;;  %v2681_v63 = vadd.f32 %v2680_v20, %v2679_v50 }
 0x173   : > { %v1717_v34 = vadd.f32 %v2614_v14, %v3665_v52  ;;  %v2617_v11 = vadd.f32 %v2616_v9, %v2615_v3 }
 0x175   : > { %v1720_v37 = vadd.f32 %v2617_v11, %v3667_v36  ;;  %v1814_v19 = vadd.f32 %v2678_v48, %v1717_v34 }
 0x176   : > { %v2682_v2 = vpop.f32.mrb[56].mxu1 }
 0x177   : > { %v2618_v21 = vpop.f32.mrb[56].mxu0  ;;  %v2683_v22 = vpop.f32.mrb[57].mxu1  ;;  %v1817_v5 = vadd.f32 %v2681_v63, %v1720_v37 }
 0x178   : > { %v2619_v56 = vpop.f32.mrb[57].mxu0  ;;  %v2684_v38 = vadd.f32 %v2683_v22, %v2682_v2  ;;  %v2685_v43 = vpop.f32.mrb[58].mxu1 }
 0x179   : > { %v2620_v18 = vadd.f32 %v2619_v56, %v2618_v21  ;;  %v2621_v17 = vpop.f32.mrb[58].mxu0  ;;  %v2686_v33 = vpop.f32.mrb[59].mxu1 }
 0x17a   : > { %v2622_v54 = vpop.f32.mrb[59].mxu0  ;;  %v2687_v10 = vadd.f32 %v2686_v33, %v2685_v43 }
 0x17b   : > { %v1725_v52 = vadd.f32 %v2620_v18, %v3669_v29  ;;  %v2623_v44 = vadd.f32 %v2622_v54, %v2621_v17 }
 0x17d   : > { %v1728_v36 = vadd.f32 %v2623_v44, %v3671_v61  ;;  %v1822_v51 = vadd.f32 %v2684_v38, %v1725_v52 }
 0x17e   : > { %v2688_v15 = vpop.f32.mrb[60].mxu1 }
 0x17f   : > { %v2624_v24 = vpop.f32.mrb[60].mxu0  ;;  %v2689_v55 = vpop.f32.mrb[61].mxu1  ;;  %v1825_v28 = vadd.f32 %v2687_v10, %v1728_v36 }
 0x180   : > { %v2625_v16 = vpop.f32.mrb[61].mxu0  ;;  %v2690_v60 = vadd.f32 %v2689_v55, %v2688_v15  ;;  %v2691_v0 = vpop.f32.mrb[62].mxu1 }
 0x181   : > { %v2626_v25 = vadd.f32 %v2625_v16, %v2624_v24  ;;  %v2627_v26 = vpop.f32.mrb[62].mxu0  ;;  %v2692_v40 = vpop.f32.mrb[63].mxu1 }
 0x182   : > { %v2628_v53 = vpop.f32.mrb[63].mxu0  ;;  %v2693_v29 = vadd.f32 %v2692_v40, %v2691_v0 }
 0x183   : > { %v1733_v49 = vadd.f32 %v2626_v25, %v3673_v4  ;;  %v2629_v8 = vadd.f32 %v2628_v53, %v2627_v26 }
 0x185   : > { %v1736_v61 = vadd.f32 %v2629_v8, %v3675_v23  ;;  %v1830_v27 = vadd.f32 %v2690_v60, %v1733_v49 }
 0x186   : > { %v2736_v32 = vpop.f32.mrb[64].mxu1 }
 0x187   : > { %v2728_v41 = vpop.f32.mrb[64].mxu0  ;;  %v3714_v62 = vadd.f32 %v2736_v32, %v1814_v19  ;;  %v1902_v42 = vpop.f32.mrb[65].mxu1  ;;  %v1833_v59 = vadd.f32 %v2693_v29, %v1736_v61 }
 0x188   : > { %v1879_v12 = vadd.f32 %v2728_v41, %v3685_v6  ;;  %v1870_v47 = vpop.f32.mrb[65].mxu0  ;;  %v3717_v39 = vadd.f32 %v1902_v42, %v1806_v30  ;;  %v2737_v13 = vpop.f32.mrb[66].mxu1 }
 0x189   : > { %v1871_v4 = vadd.f32 %v1870_v47, %v3679_v31  ;;  %v2729_v48 = vpop.f32.mrb[66].mxu0  ;;  %v3720_v50 = vadd.f32 %v2737_v13, %v1817_v5  ;;  %v1905_v23 = vpop.f32.mrb[67].mxu1 }
 0x18a   : > { %v1882_v6 = vadd.f32 %v2729_v48, %v3687_v35  ;;  %v1873_v30 = vpop.f32.mrb[67].mxu0  ;;  %v1906_v14 = vadd.f32 %v1905_v23, %v3703_v58 }
 0x18b   : > { %v2412_v31 = vpack.c.bf16 %v3720_v50, %v3714_v62  ;;  %v1874_v3 = vadd.f32 %v1873_v30, %v3681_v57 }
 0x18c   : > { %v2392_v20 = vpack.c.bf16 %v1882_v6, %v1879_v12  ;;  %v2407_v9 = vpack.c.bf16 %v1906_v14, %v3717_v39 }
 0x18d   : > { %2435 = vst [vmem:[%s3725_s27 + $0x28] sm:$0xff] %v2412_v31   ;;  %v2387_v63 = vpack.c.bf16 %v1874_v3, %v1871_v4 }
 0x18e   : > { %2431 = vst [vmem:[%s3725_s27 + $0x8] sm:$0xff] %v2392_v20   ;;  %2434 = vst [vmem:[%s3725_s27 + $0x20] sm:$0xff] %v2407_v9   ;;  %v2740_v34 = vpop.f32.mrb[68].mxu1 }
 0x18f   : > { %2388 = vst [vmem:[%s3725_s27] sm:$0xff] %v2387_v63   ;;  %v2732_v11 = vpop.f32.mrb[68].mxu0  ;;  %v3737_v37 = vadd.f32 %v2740_v34, %v1830_v27  ;;  %v1918_v35 = vpop.f32.mrb[69].mxu1 }
 0x190   : > { %v1895_v58 = vadd.f32 %v2732_v11, %v3697_v46  ;;  %v1886_v19 = vpop.f32.mrb[69].mxu0  ;;  %v1919_v2 = vadd.f32 %v1918_v35, %v1822_v51  ;;  %v2741_v57 = vpop.f32.mrb[70].mxu1 }
 0x191   : > { %v1887_v21 = vadd.f32 %v1886_v19, %v3691_v7  ;;  %v2733_v22 = vpop.f32.mrb[70].mxu0  ;;  %v1930_v5 = vadd.f32 %v2741_v57, %v1833_v59  ;;  %v1921_v56 = vpop.f32.mrb[71].mxu1  ;;  %2016 = sbr.rel (%p2320_p11) target bundleno = 408 (0x198), region = 36  ;;  %v2915_v7 = vmov (!%p2320_p11), 0.0  }
 0x192   : > { %v1898_v38 = vadd.f32 %v2733_v22, %v3699_v1  ;;  %v1889_v43 = vpop.f32.mrb[71].mxu0  ;;  %v1922_v18 = vadd.f32 %v1921_v56, %v1825_v28  ;;  %2017 = vst [vmem:[%s3000_s13] sm:$0x3] (!%p2320_p11), %v2915_v7 }
 0x193   : > { %v2422_v17 = vpack.c.bf16 %v1930_v5, %v3737_v37  ;;  %v1890_v33 = vadd.f32 %v1889_v43, %v3693_v45 }
 0x194   : > { %v2402_v46 = vpack.c.bf16 %v1898_v38, %v1895_v58  ;;  %v2417_v54 = vpack.c.bf16 %v1922_v18, %v1919_v2 }
 0x195   : > { %2437 = vst [vmem:[%s3725_s27 + $0x38] sm:$0xff] %v2422_v17   ;;  %v2397_v10 = vpack.c.bf16 %v1890_v33, %v1887_v21 }
 0x196   : > { %2433 = vst [vmem:[%s3725_s27 + $0x18] sm:$0xff] %v2402_v46   ;;  %2436 = vst [vmem:[%s3725_s27 + $0x30] sm:$0xff] %v2417_v54  }
 0x197   : > { %2432 = vst [vmem:[%s3725_s27 + $0x10] sm:$0xff] %v2397_v10  }
 0x198 PF: > { %v2019_v1 = vadd.f32 %v1874_v3, %v1871_v4  ;;  %v2040_v52 = vmul.f32 %v1871_v4, %v1871_v4  ;;  %v2041_v44 = vmul.f32 %v1874_v3, %v1874_v3  ;;  %v2042_v51 = vmul.f32 %v1879_v12, %v1879_v12 }
 0x199   : > { %v2043_v15 = vmul.f32 %v1882_v6, %v1882_v6  ;;  %v2044_v28 = vmul.f32 %v1887_v21, %v1887_v21  ;;  %v2045_v0 = vmul.f32 %v1890_v33, %v1890_v33  ;;  %v2046_v40 = vmul.f32 %v1895_v58, %v1895_v58 }
 0x19a   : > { %v2020_v36 = vadd.f32 %v2019_v1, %v1879_v12  ;;  %v2056_v24 = vadd.f32 %v2041_v44, %v2040_v52  ;;  %v2047_v49 = vmul.f32 %v1898_v38, %v1898_v38  ;;  %v2048_v27 = vmul.f32 %v3717_v39, %v3717_v39 }
 0x19b   : > { %v2049_v42 = vmul.f32 %v1906_v14, %v1906_v14  ;;  %v2050_v47 = vmul.f32 %v3714_v62, %v3714_v62  ;;  %v2051_v48 = vmul.f32 %v3720_v50, %v3720_v50  ;;  %v2052_v30 = vmul.f32 %v1919_v2, %v1919_v2 }
 0x19c   : > { %v2021_v45 = vadd.f32 %v2020_v36, %v1882_v6  ;;  %v2057_v16 = vadd.f32 %v2056_v24, %v2042_v51  ;;  %v2053_v3 = vmul.f32 %v1922_v18, %v1922_v18  ;;  %v2054_v9 = vmul.f32 %v3737_v37, %v3737_v37 }
 0x19d   : > { %v2055_v34 = vmul.f32 %v1930_v5, %v1930_v5  ;;  %vm2077_vm13 = vcmask 1040384  }
 0x19e   : > { %v2022_v55 = vadd.f32 %v2021_v45, %v1887_v21  ;;  %v2058_v25 = vadd.f32 %v2057_v16, %v2043_v15 }
 0x1a0   : > { %v2023_v60 = vadd.f32 %v2022_v55, %v1890_v33  ;;  %v2059_v53 = vadd.f32 %v2058_v25, %v2044_v28 }
 0x1a2   : > { %v2024_v26 = vadd.f32 %v2023_v60, %v1895_v58  ;;  %v2060_v8 = vadd.f32 %v2059_v53, %v2045_v0 }
 0x1a4   : > { %v2025_v29 = vadd.f32 %v2024_v26, %v1898_v38  ;;  %v2061_v32 = vadd.f32 %v2060_v8, %v2046_v40 }
 0x1a6   : > { %v2026_v61 = vadd.f32 %v2025_v29, %v3717_v39  ;;  %v2062_v59 = vadd.f32 %v2061_v32, %v2047_v49 }
 0x1a8   : > { %v2027_v41 = vadd.f32 %v2026_v61, %v1906_v14  ;;  %v2063_v13 = vadd.f32 %v2062_v59, %v2048_v27 }
 0x1aa   : > { %v2028_v12 = vadd.f32 %v2027_v41, %v3714_v62  ;;  %v2064_v23 = vadd.f32 %v2063_v13, %v2049_v42 }
 0x1ac   : > { %v2029_v4 = vadd.f32 %v2028_v12, %v3720_v50  ;;  %v2065_v31 = vadd.f32 %v2064_v23, %v2050_v47 }
 0x1ae   : > { %v2030_v6 = vadd.f32 %v2029_v4, %v1919_v2  ;;  %v2066_v20 = vadd.f32 %v2065_v31, %v2051_v48 }
 0x1b0   : > { %v2031_v39 = vadd.f32 %v2030_v6, %v1922_v18  ;;  %v2067_v63 = vadd.f32 %v2066_v20, %v2052_v30 }
 0x1b2   : > { %v2032_v14 = vadd.f32 %v2031_v39, %v3737_v37  ;;  %v2068_v11 = vadd.f32 %v2067_v63, %v2053_v3  ;;  %v2018_v37 = vld [vmem:[%s3000_s13] sm:$0x3] }
 0x1b4   : > { %v2033_v62 = vadd.f32 %v2032_v14, %v1930_v5  ;;  %v2069_v58 = vadd.f32 %v2068_v11, %v2054_v9 }
 0x1b6   : > { %v2034_v35 = vrot.slane %v2033_v62, 4  ;;  %v2070_v19 = vadd.f32 %v2069_v58, %v2055_v34 }
 0x1b8   : > { %v2035_v50 = vadd.f32 %v2034_v35, %v2033_v62  ;;  %v2071_v57 = vrot.slane %v2070_v19, 4 }
 0x1ba   : > { %v2036_v2 = vrot.slane %v2035_v50, 2  ;;  %v2072_v22 = vadd.f32 %v2071_v57, %v2070_v19 }
 0x1bc   : > { %v2037_v21 = vadd.f32 %v2036_v2, %v2035_v50  ;;  %v2073_v38 = vrot.slane %v2072_v22, 2 }
 0x1be   : > { %v2038_v56 = vrot.slane %v2037_v21, 1  ;;  %v2074_v43 = vadd.f32 %v2073_v38, %v2072_v22 }
 0x1c0   : > { %v2039_v18 = vadd.f32 %v2038_v56, %v2037_v21  ;;  %v2075_v17 = vrot.slane %v2074_v43, 1 }
 0x1c2   : > { %v2076_v33 = vadd.f32 %v2075_v17, %v2074_v43 }
 0x1c4   : > { %v2078_v5 = vsel %vm2077_vm13, %v2039_v18, %v2076_v33 }
 0x1c5   : > { %v2079_v46 = vadd.f32 %v2078_v5, %v2018_v37 }
 0x1c7   : > { %2080 = vst [vmem:[%s3000_s13] sm:$0x3] %v2079_v46 }
 0x1c8 PF: > { %s15_s19 = sadd.s32 1, %s2911_s19   ;;  %s3788_s15 = smov %s2903_s17 }
 0x1c9   : > { %p12_p12 = scmp.ge.s32.totalorder %s15_s19, 6   ;;  %s3789_s16 = smov %s2907_s18 }
 0x1ca   : > { %s3790_s17 = smov %s3793_s20  ;;  %s3791_s18 = smov %s3797_s21 }
 0x1cb   :  { %14 = sbr.rel (!%p12_p12) target bundleno = 3 (0x3), region = 81 }

// kernel: deres_block_forward.3
= control target key start
LH: loop header
LB: loop body
LE: loop exit
PB: predicated region body
PF: predicated region fallthrough
CT: control target
= control target key end

     0   :  { %s3220_s18 = smov 0   ;;  %s3222_s19 = smov 0   ;;  %s4190_s0 = inlined_call_operand.vmem [shape: bf16[2,16,16,128], index: 0, kind: input, shape index: {}]   ;;  %s4191_s1 = inlined_call_operand.vmem [shape: bf16[1152,128], index: 1, kind: input, shape index: {}]   ;;  %s4192_s2 = inlined_call_operand.vmem [shape: bf16[128,128], index: 2, kind: input, shape index: {}]   ;;  %s4193_s3 = inlined_call_operand.vmem [shape: bf16[2,16,16,128], index: 3, kind: output, shape index: {0}]   ;;  %s4194_s4 = inlined_call_operand.vmem [shape: f32[2,2,128], index: 4, kind: output, shape index: {1}]   ;;  %s4195_s5 = inlined_call_operand.vmem [shape: f32[2,2,128], index: 5, kind: output, shape index: {2}]  }
   0x1   :  { %s3224_s20 = smov 0   ;;  %s3226_s21 = smov 0  }
   0x2   :  { %s3228_s22 = smov 0  }
   0x3 LB: > { %s25_s23 = sadd.s32 1, %s3177_s20  ;;  %s28_s24 = sadd.s32 1, %s3181_s21  ;;  %s3185_s22 = sphi %s3228_s22, %s16_s22   ;;  %s3181_s21 = sphi %s3226_s21, %s4204_s21   ;;  %s3177_s20 = sphi %s3224_s20, %s4203_s20   ;;  %s3173_s19 = sphi %s3222_s19, %s4202_s19   ;;  %s3169_s18 = sphi %s3220_s18, %s4201_s18  }
   0x4   : > { %p26_p0 = scmp.ge.s32.totalorder %s25_s23, 2  ;;  %p2466_p1 = scmp.ge.s32.totalorder %s3185_s22, 1 }
   0x5   : > { %p206_p2 = scmp.lt.s32.totalorder %s3185_s22, 5 }
   0x6   : > { %s4206_s23 = smov (%p26_p0, %s25_s23), 0  ;;  %s4208_s24 = smov (!%p26_p0, %s28_s24), %s3181_s21 }
   0x7   : > { %p207_p3 = pnand %p2466_p1, %p206_p2  ;;  %p30_p4 = scmp.ge.s32.totalorder %s4208_s24, 2 }
   0x8   : > { %v3057_v0 = vld [vmem:[%s4191_s1 + $0x40] sm:$0xff] (!%p207_p3)   ;;  %p247_p5 = scmp.lt.s32.totalorder (!%p207_p3), %s3173_s19, 1  ;;  %v3061_v4 = vld [vmem:[%s4191_s1 + $0x48] sm:$0xff] (!%p207_p3)   ;;  %v3065_v8 = vld [vmem:[%s4191_s1 + $0x50] sm:$0xff] (!%p207_p3)   ;;  %s3302_s13 = sshll.u32 (!%p207_p3), %s3169_s18, 3  ;;  %v526_v19 = vlaneseq (!%p207_p3)  ;;  %vm3187_vm1 = vmmov (!%p207_p3), 1  }
   0x9   : > { %s4210_s24 = smov (%p30_p4, %s4208_s24), 0  ;;  %210 = sbr.rel (%p207_p3) target bundleno = 466 (0x1d2), region = 32 }
   0xa   : > { %v3058_v1 = vld [vmem:[%s4191_s1 + $0xc0] sm:$0xff] (!%p207_p3)   ;;  %2662 = vmatprep.subr.bf16.mxu0 (!%p207_p3), %v3057_v0  ;;  %v3062_v5 = vld [vmem:[%s4191_s1 + $0xc8] sm:$0xff] (!%p207_p3)   ;;  %v3066_v9 = vld [vmem:[%s4191_s1 + $0xd0] sm:$0xff] (!%p207_p3)   ;;  %s2476_s29 = sadd.s32 (!%p207_p3), 4294967295, %s3302_s13  ;;  %v527_v24 = vshrl.u32 (!%p207_p3), %v526_v19, 7  ;;  %p281_p7 = scmp.gt.s32.totalorder (!%p207_p3), %s3169_s18, 0 }
   0xb   : > { %v3059_v2 = vld [vmem:[%s4191_s1] sm:$0xff] (!%p207_p3)   ;;  %2726 = vmatprep.subr.bf16.mxu1 (!%p207_p3), %v3058_v1  ;;  %v3063_v6 = vld [vmem:[%s4191_s1 + $0x8] sm:$0xff] (!%p207_p3)   ;;  %v3067_v10 = vld [vmem:[%s4191_s1 + $0x10] sm:$0xff] (!%p207_p3)   ;;  %p276_p6 = scmp.gt.s32.totalorder (!%p207_p3), %s2476_s29, 0  ;;  %s2597_s10 = sshll.u32 (!%p207_p3), %s3169_s18, 6  ;;  %v3188_v39 = vmov (!%p207_p3), 0  }
   0xc   : > { %v3060_v3 = vld [vmem:[%s4191_s1 + $0x80] sm:$0xff] (!%p207_p3)   ;;  %2663 = vmatpush3.bf16.msra.mxu0 (!%p207_p3), %v3059_v2  ;;  %v3064_v7 = vld [vmem:[%s4191_s1 + $0x88] sm:$0xff] (!%p207_p3)   ;;  %v3068_v11 = vld [vmem:[%s4191_s1 + $0x90] sm:$0xff] (!%p207_p3)   ;;  %v528_v29 = vadd.s32 (!%p207_p3), 8, %v527_v24  ;;  %vm553_vm3 = vcmp.ne.s32.totalorder (!%p207_p3), %v527_v24, 0  ;;  %v3382_v41 = vrot.slane (!%p207_p3), %v3188_v39, 7 }
   0xd   : > { %2727 = vmatpush3.bf16.msra.mxu1 (!%p207_p3), %v3060_v3  ;;  %2664 = vmatprep.subr.bf16.mxu0 (!%p207_p3), %v3061_v4  ;;  %v3069_v12 = vld [vmem:[%s4191_s1 + $0x58] sm:$0xff] (!%p207_p3)   ;;  %v3073_v16 = vld [vmem:[%s4191_s1 + $0x60] sm:$0xff] (!%p207_p3)   ;;  %v3077_v21 = vld [vmem:[%s4191_s1 + $0x68] sm:$0xff] (!%p207_p3)   ;;  %vm577_vm4 = vsmask.f32 (!%p207_p3), 7424  ;;  %vm650_vm9 = vcmask (!%p207_p3), 1046528  }
   0xe   : > { %2728 = vmatprep.subr.bf16.mxu1 (!%p207_p3), %v3062_v5  ;;  %v3070_v13 = vld [vmem:[%s4191_s1 + $0xd8] sm:$0xff] (!%p207_p3)   ;;  %v3074_v17 = vld [vmem:[%s4191_s1 + $0xe0] sm:$0xff] (!%p207_p3)   ;;  %v3078_v22 = vld [vmem:[%s4191_s1 + $0xe8] sm:$0xff] (!%p207_p3)   ;;  %vm530_vm0 = vcmp.ne.s32.totalorder (!%p207_p3), %v528_v29, 15  ;;  %vm690_vm7 = vsmask.f32 (!%p207_p3), 256 }
   0xf   : > { %v3071_v14 = vld [vmem:[%s4191_s1 + $0x18] sm:$0xff] (!%p207_p3)   ;;  %v3075_v18 = vld [vmem:[%s4191_s1 + $0x20] sm:$0xff] (!%p207_p3)   ;;  %v3079_v23 = vld [vmem:[%s4191_s1 + $0x28] sm:$0xff] (!%p207_p3)   ;;  %p311_p9 = scmp.lt.s32.totalorder (!%p207_p3), %s3169_s18, 1  ;;  %p255_p10 = scmp.lt.s32.totalorder (!%p207_p3), %s3302_s13, 15 }
  0x10   : > { %s4212_s19 = smov (!%p247_p5, %s3173_s19), 1  ;;  %2665 = vmatpush3.bf16.msra.mxu0 %v3063_v6  ;;  %v3072_v15 = vld [vmem:[%s4191_s1 + $0x98] sm:$0xff]   ;;  %v3076_v20 = vld [vmem:[%s4191_s1 + $0xa0] sm:$0xff]   ;;  %s4214_s29 = smov (!%p276_p6, %s2476_s29), 0  ;;  %v3080_v25 = vld [vmem:[%s4191_s1 + $0xa8] sm:$0xff]  }
  0x11   : > { %s2473_s12 = sshll.u32 %s4212_s19, 1  ;;  %2729 = vmatpush3.bf16.msra.mxu1 %v3064_v7  ;;  %2666 = vmatprep.subr.bf16.mxu0 %v3065_v8  ;;  %s2594_s9 = sshll.u32 %s4212_s19, 7  ;;  %v3081_v26 = vld [vmem:[%s4191_s1 + $0x70] sm:$0xff]   ;;  %v3085_v31 = vld [vmem:[%s4191_s1 + $0x78] sm:$0xff]   ;;  %vm535_vm2 = vmpackc.low %vm3187_vm1, %vm3187_vm1 }
  0x12   : > { %s3279_s17 = scalar_lea.vmem %s4194_s4, %s2473_s12  ;;  %s3284_s27 = scalar_lea.vmem %s4195_s5, %s2473_s12  ;;  %2730 = vmatprep.subr.bf16.mxu1 %v3066_v9  ;;  %v3082_v27 = vld [vmem:[%s4191_s1 + $0xf0] sm:$0xff]   ;;  %v3086_v32 = vld [vmem:[%s4191_s1 + $0xf8] sm:$0xff]   ;;  %vm536_vm5 = vmpackc.low %vm530_vm0, %vm530_vm0  ;;  %v537_v40 = vsel %vm535_vm2, 65537, %v3188_v39 }
  0x13   : > { %s2595_s15 = sshll.u32 %s4214_s29, 3  ;;  %v3083_v28 = vld [vmem:[%s4191_s1 + $0x30] sm:$0xff]   ;;  %s3354_s30 = scalar_lea.vmem %s4190_s0, %s2594_s9  ;;  %v3087_v33 = vld [vmem:[%s4191_s1 + $0x38] sm:$0xff]   ;;  %v538_v42 = vsel %vm536_vm5, 65537, %v3188_v39  ;;  %vm559_vm8 = vmpackc.low %vm553_vm3, %vm553_vm3 }
  0x14   : > { %2667 = vmatpush3.bf16.msra.mxu0 %v3067_v10  ;;  %v3084_v30 = vld [vmem:[%s4191_s1 + $0xb0] sm:$0xff]   ;;  %s284_s12 = scalar_lea.vmem %s3354_s30, %s2595_s15  ;;  %v3088_v34 = vld [vmem:[%s4191_s1 + $0xb8] sm:$0xff]   ;;  %s3375_s28 = scalar_lea.vmem %s3354_s30, %s2597_s10  ;;  %v2493_v46 = vcombine.low %v537_v40, %v538_v42  ;;  %v3090_v47 = vld [vmem:[%s4191_s1 + $0x140] sm:$0xff]   ;;  %v561_v49 = vsel %vm559_vm8, 65537, %v3188_v39 }
  0x15   : > { %2731 = vmatpush3.bf16.msra.mxu1 %v3068_v11  ;;  %2668 = vmatprep.subr.bf16.mxu0 %v3069_v12  ;;  %v285_v35 = vld [vmem:[%s284_s12] sm:$0xf]  ;;  %s287_s6 = scalar_select %p281_p7, 1, 0  ;;  %v286_v36 = vld [vmem:[%s284_s12 + $0x4] sm:$0xf]  ;;  %v2494_v52 = vcombine.low %v561_v49, %v537_v40 }
  0x16   : > { %2732 = vmatprep.subr.bf16.mxu1 %v3070_v13  ;;  %v3089_v38 = vld [vmem:[%s3375_s28] sm:$0xff]   ;;  %vm3391_vm10 = vcmp.ne.s16.totalorder %v2493_v46, 0  ;;  %v3094_v9 = vld [vmem:[%s3375_s28 + $0x8] sm:$0xff]   ;;  %s278_s9 = sadd.s32 8, %s3302_s13  ;;  %s4218_s13 = smov (!%p255_p10, %s3302_s13), 15 }
  0x17   : > { %v288_v37 = vstv %s287_s6  ;;  %v586_v45 = vshll.u32 %v3089_v38, 16  ;;  %v544_v56 = vsel %vm3391_vm10, %v3089_v38, 0  ;;  %v3092_v57 = vld [vmem:[%s4191_s1 + $0x1c0] sm:$0xff]   ;;  %vm3402_vm11 = vcmp.ne.s16.totalorder %v2494_v52, 0  ;;  %p3718_p8 = scmp.lt.s32.totalorder %s278_s9, 15  ;;  %p2591_p11 = scmp.ne.s32.totalorder %s3169_s18, 0 }
  0x18   : > { %2669 = vmatpush3.bf16.msra.mxu0 %v3071_v14  ;;  %vm289_vm6 = vcmp.eq.s32.totalorder %v288_v37, 1  ;;  %v728_v60 = vshrl.u32 %v544_v56, 16  ;;  %v731_v61 = vshll.u32 %v544_v56, 16  ;;  %v568_v3 = vsel %vm3402_vm11, %v3089_v38, 0  ;;  %v3093_v29 = vld [vmem:[%s4191_s1 + $0x180] sm:$0xff]  }
  0x19   : > { %2733 = vmatpush3.bf16.msra.mxu1 %v3072_v15  ;;  %2670 = vmatprep.subr.bf16.mxu0 %v3073_v16  ;;  %v290_v43 = vsel %vm289_vm6, %v285_v35, 0  ;;  %v291_v44 = vsel %vm289_vm6, %v286_v36, 0  ;;  %v3389_v50 = vrot.slane %v586_v45, 1  ;;  %v3412_v7 = vrot.slane %v568_v3, 1  ;;  %v3095_v35 = vld [vmem:[%s4191_s1 + $0x148] sm:$0xff]   ;;  %v3443_v36 = vld [vmem:[%s3375_s28 + $0x10] sm:$0xff]  }
  0x1a   : > { %2734 = vmatprep.subr.bf16.mxu1 %v3074_v17  ;;  %v2483_v48 = vcombine.low %v290_v43, %v291_v44  ;;  %v3406_v1 = vrot.slane %v728_v60, 7  ;;  %v590_v10 = vshrl.u32 %v3089_v38, 16  ;;  %v594_v24 = vshll.u32 %v3094_v9, 16  ;;  %v3097_v44 = vld [vmem:[%s4191_s1 + $0x1c8] sm:$0xff]   ;;  %v3100_v60 = vld [vmem:[%s4191_s1 + $0x150] sm:$0xff]   ;;  %s4216_s9 = smov (!%p3718_p8, %s278_s9), 15 }
  0x1b   : > { %v598_v37 = vshrl.u32 %v3094_v9, 16  ;;  %v3102_v3 = vld [vmem:[%s4191_s1 + $0x1d0] sm:$0xff]   ;;  %s2598_s11 = sshll.u32 %s4216_s9, 3 }
  0x1c   : > { %2671 = vmatpush3.bf16.msra.mxu0 %v3075_v18  ;;  %v579_v53 = vshll.u32 %v2483_v48, 16  ;;  %v582_v54 = vshrl.u32 %v2483_v48, 16  ;;  %v543_v55 = vsel %vm3391_vm10, %v2483_v48, 0  ;;  %v567_v2 = vsel %vm3402_vm11, %v2483_v48, 0  ;;  %s314_s12 = scalar_lea.vmem %s3354_s30, %s2598_s11  ;;  %s2471_s30 = sshll.u32 %s4212_s19, 5 }
  0x1d   : > { %2735 = vmatpush3.bf16.msra.mxu1 %v3076_v20  ;;  %2672 = vmatprep.subr.bf16.mxu0 %v3077_v21  ;;  %v696_v58 = vshrl.u32 %v543_v55, 16  ;;  %v699_v59 = vshll.u32 %v543_v55, 16  ;;  %v651_v6 = vrot.slane %v567_v2, 1  ;;  %v733_v8 = vor.u32 %v731_v61, %v3406_v1  ;;  %v3098_v55 = vld [vmem:[%s4191_s1 + $0x188] sm:$0xff]   ;;  %s317_s9 = scalar_select %p311_p9, 1, 0 }
  0x1e   : > { %2736 = vmatprep.subr.bf16.mxu1 %v3078_v22  ;;  %v581_v62 = vrot.slane %v579_v53, 1  ;;  %v592_v22 = vor.u32 %v590_v10, %v3389_v50  ;;  %v3492_v10 = vld [vmem:[%s3375_s28 + $0x18] sm:$0xff]  }
  0x1f   : > { %v698_v0 = vrot.slane %v696_v58, 7  ;;  %v653_v13 = vsel %vm650_vm9, %v651_v6, %v3412_v7  ;;  %v716_v14 = vshrl.u32 %v651_v6, 16  ;;  %v602_v58 = vshll.u32 %v3443_v36, 16 }
  0x20   : > { %2673 = vmatpush3.bf16.msra.mxu0 %v3079_v23  ;;  %v584_v4 = vor.u32 %v582_v54, %v581_v62  ;;  %v704_v5 = vshrl.u32 %v581_v62, 16  ;;  %v720_v20 = vshrl.u32 %v653_v13, 16  ;;  %v723_v21 = vshll.u32 %v653_v13, 16  ;;  %v3096_v54 = vld [vmem:[%s4191_s1 + $0x108] sm:$0xff]  }
  0x21   : > { %2737 = vmatpush3.bf16.msra.mxu1 %v3080_v25  ;;  %2674 = vmatprep.subr.bf16.mxu0 %v3081_v26  ;;  %v3421_v17 = vsel %vm690_vm7, %v698_v0, %v733_v8  ;;  %v701_v18 = vor.u32 %v699_v59, %v698_v0  ;;  %v718_v19 = vrot.slane %v716_v14, 7  ;;  %v545_v25 = vsel %vm3391_vm10, %v3094_v9, 0  ;;  %v3101_v14 = vld [vmem:[%s4191_s1 + $0x110] sm:$0xff]  }
  0x22   : > { %2738 = vmatprep.subr.bf16.mxu1 %v3082_v27  ;;  %v589_v11 = vsel %vm577_vm4, %v584_v4, %v3389_v50  ;;  %v706_v12 = vrot.slane %v704_v5, 7  ;;  %1576 = vmatprep.mubr.bf16.mxu1 %v3421_v17  ;;  %v569_v26 = vsel %vm3402_vm11, %v3094_v9, 0  ;;  %v722_v27 = vrot.slane %v720_v20, 7  ;;  %v3103_v20 = vld [vmem:[%s4191_s1 + $0x190] sm:$0xff]  }
  0x23   : > { %v708_v15 = vshrl.u32 %v589_v11, 16  ;;  %v711_v16 = vshll.u32 %v589_v11, 16  ;;  %v702_v38 = vsel %vm690_vm7, %v3382_v41, %v701_v18  ;;  %v546_v59 = vsel %vm3391_vm10, %v3443_v36, 0 }
  0x24   : > { %2675 = vmatpush3.bf16.msra.mxu0 %v3083_v28  ;;  %v3091_v28 = vld [vmem:[%s4191_s1 + $0x100] sm:$0xff]   ;;  %v725_v40 = vor.u32 %v723_v21, %v722_v27  ;;  %v796_v0 = vshrl.u32 %v546_v59, 16  ;;  %v799_v2 = vshll.u32 %v546_v59, 16  ;;  %v604_v5 = vrot.slane %v602_v58, 1  ;;  %v3105_v21 = vld [vmem:[%s4191_s1 + $0x158] sm:$0xff]  }
  0x25   : > { %2739 = vmatpush3.bf16.msra.mxu1 %v3084_v30  ;;  %2676 = vmatprep.subr.bf16.mxu0 %v3085_v31  ;;  %v710_v23 = vrot.slane %v708_v15, 7  ;;  %v760_v30 = vshrl.u32 %v545_v25, 16  ;;  %v763_v31 = vshll.u32 %v545_v25, 16  ;;  %v570_v6 = vsel %vm3402_vm11, %v3443_v36, 0  ;;  %v3111_v59 = vld [vmem:[%s4191_s1 + $0x120] sm:$0xff]  }
  0x26   : > { %2740 = vmatprep.subr.bf16.mxu1 %v3086_v32  ;;  %v3435_v32 = vrot.slane %v569_v26, 1  ;;  %v726_v41 = vsel %vm690_vm7, %v718_v19, %v725_v40  ;;  %v656_v9 = vrot.slane %v570_v6, 1  ;;  %v606_v11 = vshrl.u32 %v3443_v36, 16  ;;  %v3108_v40 = vld [vmem:[%s4191_s1 + $0x198] sm:$0xff]  }
  0x27   : > { %v762_v42 = vrot.slane %v760_v30, 7  ;;  %v547_v25 = vsel %vm3391_vm10, %v3492_v10, 0  ;;  %v3106_v30 = vld [vmem:[%s4191_s1 + $0x118] sm:$0xff]  }
  0x28   : > { %2677 = vmatpush3.bf16.msra.mxu0 %v3087_v33  ;;  %v713_v33 = vor.u32 %v711_v16, %v710_v23  ;;  %v655_v43 = vsel %vm650_vm9, %v3412_v7, %v3435_v32 }
  0x29   : > { %2741 = vmatpush3.bf16.msra.mxu1 %v3088_v34  ;;  %2790 = vmatprep.subr.bf16.mxu0 %v3090_v47  ;;  %v3437_v34 = vrot.slane %v594_v24, 1  ;;  %v752_v47 = vshrl.u32 %v655_v43, 16  ;;  %v755_v48 = vshll.u32 %v655_v43, 16  ;;  %v765_v53 = vor.u32 %v763_v31, %v762_v42  ;;  %v3107_v31 = vld [vmem:[%s4191_s1 + $0x1d8] sm:$0xff]  }
  0x2a   : > { %2854 = vmatprep.subr.bf16.mxu1 %v3092_v57  ;;  %v714_v45 = vsel %vm690_vm7, %v706_v12, %v713_v33  ;;  %v610_v24 = vshll.u32 %v3492_v10, 16 }
  0x2b   : > { %v597_v46 = vsel %vm577_vm4, %v592_v22, %v3437_v34  ;;  %1479 = vmatprep.mubr.bf16.mxu0 %v714_v45  ;;  %v3463_v56 = vrot.slane %v752_v47, 7  ;;  %v600_v57 = vor.u32 %v598_v37, %v3437_v34  ;;  %v3475_v62 = vsel %vm690_vm7, %v3406_v1, %v765_v53 }
  0x2c   : > { %v740_v49 = vshrl.u32 %v597_v46, 16  ;;  %v743_v52 = vshll.u32 %v597_v46, 16  ;;  %1480 = vmatmul.mubr.bf16.vlgmr.msra.gmra.mrb[0].mxu0 %v702_v38  ;;  %1577 = vmatmul.mubr.bf16.vlgmr.msra.gmra.mrb[0].mxu1 %v726_v41  ;;  %v3489_v1 = vrot.slane %v796_v0, 7  ;;  %v657_v22 = vsel %vm650_vm9, %v3435_v32, %v656_v9  ;;  %v3539_v46 = vld [vmem:[%s3375_s28 + $0x20] sm:$0xff]  }
  0x2d   : > { %2791 = vmatpush3.bf16.msra.mxu0 %v3091_v28  ;;  %2855 = vmatpush3.bf16.msra.mxu1 %v3093_v29  ;;  %v3482_v4 = vor.u32 %v755_v48, %v3463_v56  ;;  %v605_v13 = vsel %vm577_vm4, %v600_v57, %v604_v5  ;;  %v784_v28 = vshrl.u32 %v657_v22, 16  ;;  %v787_v29 = vshll.u32 %v657_v22, 16  ;;  %v3110_v48 = vld [vmem:[%s4191_s1 + $0x160] sm:$0xff]  }
  0x2e   : > { %v742_v61 = vrot.slane %v740_v49, 7  ;;  %1584 = vmatprep.mubr.bf16.mxu1 %v3475_v62  ;;  %2792 = vmatprep.subr.bf16.mxu0 %v3095_v35  ;;  %v772_v16 = vshrl.u32 %v605_v13, 16  ;;  %v775_v18 = vshll.u32 %v605_v13, 16  ;;  %v801_v19 = vor.u32 %v799_v2, %v3489_v1 }
  0x2f   : > { %2856 = vmatprep.subr.bf16.mxu1 %v3097_v44  ;;  %v792_v12 = vsel %vm690_vm7, %v722_v27, %v3482_v4  ;;  %v612_v33 = vrot.slane %v610_v24, 1  ;;  %v820_v35 = vshrl.u32 %v547_v25, 16  ;;  %v823_v37 = vshll.u32 %v547_v25, 16 }
  0x30   : > { %v3487_v8 = vor.u32 %v743_v52, %v742_v61  ;;  %v774_v26 = vrot.slane %v772_v16, 7  ;;  %v3517_v27 = vsel %vm690_vm7, %v762_v42, %v801_v19  ;;  %v571_v38 = vsel %vm3402_vm11, %v3492_v10, 0 }
  0x31   : > { %2793 = vmatpush3.bf16.msra.mxu0 %v3096_v54  ;;  %2857 = vmatpush3.bf16.msra.mxu1 %v3098_v55  ;;  %v786_v43 = vrot.slane %v784_v28, 7  ;;  %v3536_v45 = vrot.slane %v820_v35, 7  ;;  %v614_v47 = vshrl.u32 %v3492_v10, 16  ;;  %v618_v58 = vshll.u32 %v3539_v46, 16 }
  0x32   : > { %v791_v15 = vsel %vm690_vm7, %v710_v23, %v3487_v8  ;;  %2794 = vmatprep.subr.bf16.mxu0 %v3100_v60  ;;  %v608_v23 = vor.u32 %v606_v11, %v604_v5  ;;  %2858 = vmatprep.subr.bf16.mxu1 %v3102_v3  ;;  %v3532_v42 = vor.u32 %v775_v18, %v774_v26  ;;  %v3112_v3 = vld [vmem:[%s4191_s1 + $0x1e0] sm:$0xff]   ;;  %v622_v19 = vshrl.u32 %v3539_v46, 16 }
  0x33   : > { %1487 = vmatprep.mubr.bf16.mxu0 %v791_v15  ;;  %v3549_v49 = vor.u32 %v787_v29, %v786_v43  ;;  %v825_v54 = vor.u32 %v823_v37, %v3536_v45  ;;  %v616_v57 = vor.u32 %v614_v47, %v612_v33  ;;  %v620_v6 = vrot.slane %v618_v58, 1  ;;  %v3113_v11 = vld [vmem:[%s4191_s1 + $0x1a0] sm:$0xff]   ;;  %v3582_v15 = vld [vmem:[%s3375_s28 + $0x28] sm:$0xff]  }
  0x34   : > { %1488 = vmatmul.mubr.bf16.gmra.mrb[4].mxu0 %v3421_v17  ;;  %1585 = vmatmul.mubr.bf16.gmra.mrb[4].mxu1 %v792_v12  ;;  %v658_v17 = vrot.slane %v571_v38, 1  ;;  %v613_v44 = vsel %vm577_vm4, %v608_v23, %v612_v33  ;;  %v3547_v41 = vsel %vm690_vm7, %v742_v61, %v3532_v42  ;;  %v626_v29 = vshll.u32 %v3582_v15, 16  ;;  %v3117_v38 = vld [vmem:[%s4191_s1 + $0x1e8] sm:$0xff]  }
  0x35   : > { %1592 = vmatprep.mubr.bf16.mxu1 %v3517_v27  ;;  %2795 = vmatpush3.bf16.msra.mxu0 %v3101_v14  ;;  %v804_v52 = vshrl.u32 %v613_v44, 16  ;;  %v807_v53 = vshll.u32 %v613_v44, 16  ;;  %v3561_v60 = vsel %vm690_vm7, %v3463_v56, %v3549_v49  ;;  %v3568_v5 = vsel %vm690_vm7, %v3489_v1, %v825_v54  ;;  %v3118_v47 = vld [vmem:[%s4191_s1 + $0x1a8] sm:$0xff]  }
  0x36   : > { %2859 = vmatpush3.bf16.msra.mxu1 %v3103_v20  ;;  %2796 = vmatprep.subr.bf16.mxu0 %v3105_v21  ;;  %v659_v55 = vsel %vm650_vm9, %v656_v9, %v658_v17  ;;  %v548_v56 = vsel %vm3391_vm10, %v3539_v46, 0  ;;  %v572_v9 = vsel %vm3402_vm11, %v3539_v46, 0  ;;  %v621_v16 = vsel %vm577_vm4, %v616_v57, %v620_v6 }
  0x37   : > { %2860 = vmatprep.subr.bf16.mxu1 %v3107_v31  ;;  %1495 = vmatprep.mubr.bf16.mxu0 %v3547_v41  ;;  %v806_v61 = vrot.slane %v804_v52, 7  ;;  %v812_v0 = vshrl.u32 %v659_v55, 16  ;;  %v815_v2 = vshll.u32 %v659_v55, 16  ;;  %v844_v1 = vshrl.u32 %v548_v56, 16  ;;  %v3623_v55 = vld [vmem:[%s3375_s28 + $0x30] sm:$0xff]  }
  0x38   : > { %v847_v14 = vshll.u32 %v548_v56, 16  ;;  %v660_v18 = vrot.slane %v572_v9, 1  ;;  %v828_v22 = vshrl.u32 %v621_v16, 16  ;;  %v831_v23 = vshll.u32 %v621_v16, 16  ;;  %v3120_v16 = vld [vmem:[%s4191_s1 + $0x170] sm:$0xff]  }
  0x39   : > { %2797 = vmatpush3.bf16.msra.mxu0 %v3106_v30  ;;  %v809_v12 = vor.u32 %v807_v53, %v806_v61  ;;  %v3579_v13 = vrot.slane %v812_v0, 7  ;;  %v3594_v24 = vrot.slane %v844_v1, 7  ;;  %v624_v28 = vor.u32 %v622_v19, %v620_v6  ;;  %v3116_v30 = vld [vmem:[%s4191_s1 + $0x128] sm:$0xff]  }
  0x3a   : > { %2861 = vmatpush3.bf16.msra.mxu1 %v3108_v40  ;;  %2798 = vmatprep.subr.bf16.mxu0 %v3110_v48  ;;  %v661_v25 = vsel %vm650_vm9, %v658_v17, %v660_v18  ;;  %v830_v33 = vrot.slane %v828_v22, 7  ;;  %v628_v17 = vrot.slane %v626_v29, 1  ;;  %v549_v44 = vsel %vm3391_vm10, %v3582_v15, 0 }
  0x3b   : > { %2862 = vmatprep.subr.bf16.mxu1 %v3112_v3  ;;  %v3589_v20 = vsel %vm690_vm7, %v774_v26, %v809_v12  ;;  %v817_v21 = vor.u32 %v815_v2, %v3579_v13  ;;  %v3115_v26 = vld [vmem:[%s4191_s1 + $0x168] sm:$0xff]   ;;  %v836_v35 = vshrl.u32 %v661_v25, 16  ;;  %v839_v37 = vshll.u32 %v661_v25, 16 }
  0x3c   : > { %1496 = vmatmul.mubr.bf16.gmra.mrb[8].mxu0 %v3475_v62  ;;  %1593 = vmatmul.mubr.bf16.gmra.mrb[8].mxu1 %v3561_v60  ;;  %v849_v40 = vor.u32 %v847_v14, %v3594_v24  ;;  %v833_v48 = vor.u32 %v831_v23, %v830_v33  ;;  %v868_v53 = vshrl.u32 %v549_v44, 16  ;;  %v871_v54 = vshll.u32 %v549_v44, 16  ;;  %v3121_v23 = vld [vmem:[%s4191_s1 + $0x130] sm:$0xff]  }
  0x3d   : > { %1600 = vmatprep.mubr.bf16.mxu1 %v3568_v5  ;;  %2799 = vmatpush3.bf16.msra.mxu0 %v3111_v59  ;;  %v3605_v31 = vsel %vm690_vm7, %v786_v43, %v817_v21  ;;  %v573_v43 = vsel %vm3402_vm11, %v3582_v15, 0  ;;  %v3620_v52 = vrot.slane %v836_v35, 7  ;;  %v629_v58 = vsel %vm577_vm4, %v624_v28, %v628_v17 }
  0x3e   : > { %1503 = vmatprep.mubr.bf16.mxu0 %v3589_v20  ;;  %2863 = vmatpush3.bf16.msra.mxu1 %v3113_v11  ;;  %v3627_v57 = vsel %vm690_vm7, %v3536_v45, %v849_v40  ;;  %v662_v59 = vrot.slane %v573_v43, 1  ;;  %v630_v0 = vshrl.u32 %v3582_v15, 16  ;;  %v3632_v2 = vsel %vm690_vm7, %v806_v61, %v833_v48 }
  0x3f   : > { %2800 = vmatprep.subr.bf16.mxu0 %v3115_v26  ;;  %2864 = vmatprep.subr.bf16.mxu1 %v3117_v38  ;;  %v852_v3 = vshrl.u32 %v629_v58, 16  ;;  %v855_v6 = vshll.u32 %v629_v58, 16  ;;  %v3636_v56 = vrot.slane %v868_v53, 7  ;;  %v634_v11 = vshll.u32 %v3623_v55, 16  ;;  %v3123_v38 = vld [vmem:[%s4191_s1 + $0x1b0] sm:$0xff]   ;;  %v3682_v58 = vld [vmem:[%s3375_s28 + $0x38] sm:$0xff]  }
  0x40   : > { %v663_v45 = vsel %vm650_vm9, %v660_v18, %v662_v59  ;;  %v632_v9 = vor.u32 %v630_v0, %v628_v17  ;;  %v841_v61 = vor.u32 %v839_v37, %v3620_v52  ;;  %v550_v21 = vsel %vm3391_vm10, %v3623_v55, 0 }
  0x41   : > { %2801 = vmatpush3.bf16.msra.mxu0 %v3116_v30  ;;  %v3643_v12 = vrot.slane %v852_v3, 7  ;;  %v860_v1 = vshrl.u32 %v663_v45, 16  ;;  %v863_v14 = vshll.u32 %v663_v45, 16  ;;  %v873_v19 = vor.u32 %v871_v54, %v3636_v56  ;;  %v3122_v30 = vld [vmem:[%s4191_s1 + $0x1f0] sm:$0xff]  }
  0x42   : > { %2865 = vmatpush3.bf16.msra.mxu1 %v3118_v47  ;;  %v636_v18 = vrot.slane %v634_v11, 1  ;;  %v574_v22 = vsel %vm3402_vm11, %v3623_v55, 0  ;;  %v892_v29 = vshrl.u32 %v550_v21, 16  ;;  %v895_v26 = vshll.u32 %v550_v21, 16  ;;  %2802 = vmatprep.subr.bf16.mxu0 %v3120_v16  ;;  %v3127_v11 = vld [vmem:[%s4191_s1 + $0x1f8] sm:$0xff]  }
  0x43   : > { %v857_v25 = vor.u32 %v855_v6, %v3643_v12  ;;  %v3659_v28 = vrot.slane %v860_v1, 7  ;;  %v664_v37 = vrot.slane %v574_v22, 1  ;;  %v3670_v40 = vsel %vm690_vm7, %v3579_v13, %v841_v61  ;;  %2866 = vmatprep.subr.bf16.mxu1 %v3122_v30  ;;  %v3125_v13 = vld [vmem:[%s4191_s1 + $0x178] sm:$0xff]   ;;  %v3739_v30 = vld [vmem:[%s4192_s2] sm:$0xff]  }
  0x44   : > { %1504 = vmatmul.mubr.bf16.gmra.mrb[12].mxu0 %v3517_v27  ;;  %1601 = vmatmul.mubr.bf16.gmra.mrb[12].mxu1 %v3605_v31  ;;  %v637_v35 = vsel %vm577_vm4, %v632_v9, %v636_v18  ;;  %v3674_v17 = vsel %vm690_vm7, %v3594_v24, %v873_v19  ;;  %v894_v48 = vrot.slane %v892_v29, 7  ;;  %v638_v54 = vshrl.u32 %v3623_v55, 16 }
  0x45   : > { %1511 = vmatprep.mubr.bf16.mxu0 %v3632_v2  ;;  %1608 = vmatprep.mubr.bf16.mxu1 %v3627_v57  ;;  %v876_v44 = vshrl.u32 %v637_v35, 16  ;;  %v879_v43 = vshll.u32 %v637_v35, 16  ;;  %v3677_v47 = vsel %vm690_vm7, %v830_v33, %v857_v25  ;;  %v665_v53 = vsel %vm650_vm9, %v662_v59, %v664_v37  ;;  %v3126_v33 = vld [vmem:[%s4191_s1 + $0x138] sm:$0xff]  }
  0x46   : > { %2803 = vmatpush3.bf16.msra.mxu0 %v3121_v23  ;;  %2867 = vmatpush3.bf16.msra.mxu1 %v3123_v38  ;;  %v884_v0 = vshrl.u32 %v665_v53, 16  ;;  %v3695_v59 = vor.u32 %v638_v54, %v636_v18  ;;  %v551_v3 = vsel %vm3391_vm10, %v3682_v58, 0  ;;  %v575_v6 = vsel %vm3402_vm11, %v3682_v58, 0  ;;  %v3128_v18 = vld [vmem:[%s4191_s1 + $0x1b8] sm:$0xff]  }
  0x47   : > { %v3688_v24 = vrot.slane %v876_v44, 7  ;;  %v865_v45 = vor.u32 %v863_v14, %v3659_v28  ;;  %v897_v9 = vor.u32 %v895_v26, %v894_v48  ;;  %v916_v16 = vshrl.u32 %v551_v3, 16  ;;  %2804 = vmatprep.subr.bf16.mxu0 %v3125_v13  ;;  %2868 = vmatprep.subr.bf16.mxu1 %v3127_v11  ;;  %v3734_v26 = vld [vmem:[%s4191_s1 + $0x200] sm:$0xff]  }
  0x48   : > { %v940_v1 = vshrl.u32 %v3695_v59, 16  ;;  %v3711_v19 = vrot.slane %v575_v6, 1  ;;  %v886_v14 = vrot.slane %v884_v0, 7  ;;  %v887_v21 = vshll.u32 %v665_v53, 16  ;;  %v316_v11 = vld [vmem:[%s314_s12 + $0x4] sm:$0xf] }
  0x49   : > { %v881_v61 = vor.u32 %v879_v43, %v3688_v24  ;;  %v3724_v22 = vsel %vm690_vm7, %v3620_v52, %v865_v45  ;;  %v3728_v23 = vsel %vm690_vm7, %v3636_v56, %v897_v9  ;;  %v943_v25 = vshll.u32 %v3695_v59, 16  ;;  %v315_v9 = vld [vmem:[%s314_s12] sm:$0xf] }
  0x4a   : > { %2805 = vmatpush3.bf16.msra.mxu0 %v3126_v33  ;;  %2869 = vmatpush3.bf16.msra.mxu1 %v3128_v18  ;;  %v919_v29 = vshll.u32 %v551_v3, 16  ;;  %v942_v35 = vrot.slane %v940_v1, 7  ;;  %v918_v56 = vrot.slane %v916_v16, 7  ;;  %v667_v38 = vsel %vm650_vm9, %v664_v37, %v3711_v19 }
  0x4b   : > { %v3743_v52 = vsel %vm690_vm7, %v3643_v12, %v881_v61  ;;  %2950 = vmatprep.subr.bf16.mxu0 %v3734_v26  ;;  %2982 = vmatprep.subr.bf16.mxu1 %v3739_v30  ;;  %v889_v12 = vor.u32 %v887_v21, %v886_v14  ;;  %v908_v44 = vshrl.u32 %v667_v38, 16  ;;  %v911_v53 = vshll.u32 %v667_v38, 16 }
  0x4c   : > { %1512 = vmatmul.mubr.bf16.gmra.mrb[16].mxu0 %v3568_v5  ;;  %1609 = vmatmul.mubr.bf16.gmra.mrb[16].mxu1 %v3670_v40  ;;  %v945_v37 = vor.u32 %v943_v25, %v942_v35  ;;  %v921_v43 = vor.u32 %v919_v29, %v918_v56  ;;  %v748_v54 = vshrl.u32 %v3412_v7, 16  ;;  %v768_v33 = vshrl.u32 %v3437_v34, 16 }
  0x4d   : > { %1519 = vmatprep.mubr.bf16.mxu0 %v3677_v47  ;;  %1616 = vmatprep.mubr.bf16.mxu1 %v3674_v17  ;;  %v3760_v13 = vsel %vm690_vm7, %v3659_v28, %v889_v12  ;;  %v3762_v0 = vrot.slane %v908_v44, 7  ;;  %v780_v34 = vshrl.u32 %v3435_v32, 16  ;;  %v736_v1 = vshrl.u32 %v3389_v50, 16 }
  0x4e   : > { %v946_v3 = vsel %vm690_vm7, %v3688_v24, %v945_v37  ;;  %v3768_v6 = vsel %vm690_vm7, %v894_v48, %v921_v43  ;;  %v750_v7 = vrot.slane %v748_v54, 7  ;;  %v770_v45 = vrot.slane %v768_v33, 7  ;;  %v3132_v37 = vld [vmem:[%s4192_s2 + $0x8] sm:$0xff]   ;;  %v3134_v43 = vld [vmem:[%s4192_s2 + $0x10] sm:$0xff]  }
  0x4f   : > { %v913_v28 = vor.u32 %v911_v53, %v3762_v0  ;;  %v318_v48 = vstv %s317_s9  ;;  %v782_v16 = vrot.slane %v780_v34, 7  ;;  %v738_v50 = vrot.slane %v736_v1, 7  ;;  %v3140_v54 = vld [vmem:[%s4192_s2 + $0x28] sm:$0xff]  }
  0x50   : > { %vm319_vm12 = vcmp.eq.s32.totalorder %v318_v48, 1  ;;  %v758_v18 = vsel %vm690_vm7, %v750_v7, %v3482_v4  ;;  %v778_v21 = vsel %vm690_vm7, %v770_v45, %v3532_v42  ;;  %v673_v33 = vshrl.u32 %v3682_v58, 16  ;;  %v3144_v48 = vld [vmem:[%s4192_s2 + $0x38] sm:$0xff]  }
  0x51   : > { %v3778_v61 = vsel %vm690_vm7, %v886_v14, %v913_v28  ;;  %v320_v25 = vsel %vm319_vm12, %v315_v9, 0  ;;  %v321_v29 = vsel %vm319_vm12, %v316_v11, 0  ;;  %v3789_v35 = vsel %vm690_vm7, %v782_v16, %v3549_v49  ;;  %v3131_v49 = vld [vmem:[%s4191_s1 + $0x208] sm:$0xff]   ;;  %v3143_v11 = vld [vmem:[%s4191_s1 + $0x238] sm:$0xff]  }
  0x52   : > { %v3785_v32 = vcombine.low %v320_v25, %v321_v29  ;;  %v746_v12 = vsel %vm690_vm7, %v738_v50, %v3487_v8  ;;  %v3133_v8 = vld [vmem:[%s4191_s1 + $0x210] sm:$0xff]  }
  0x54   : > { %1520 = vmatmul.mubr.bf16.gmra.mrb[20].mxu0 %v3627_v57  ;;  %1617 = vmatmul.mubr.bf16.gmra.mrb[20].mxu1 %v3724_v22  ;;  %v552_v4 = vsel %vm3391_vm10, %v3785_v32, 0  ;;  %v576_v1 = vsel %vm3402_vm11, %v3785_v32, 0 }
  0x55   : > { %1527 = vmatprep.mubr.bf16.mxu0 %v3743_v52  ;;  %1624 = vmatprep.mubr.bf16.mxu1 %v3728_v23  ;;  %v956_v42 = vshrl.u32 %v552_v4, 16  ;;  %v959_v14 = vshll.u32 %v552_v4, 16  ;;  %v677_v25 = vrot.slane %v576_v1, 1 }
  0x57   : > { %v958_v38 = vrot.slane %v956_v42, 7  ;;  %v678_v50 = vsel %vm650_vm9, %v3711_v19, %v677_v25 }
  0x58   : > { %v932_v4 = vshrl.u32 %v678_v50, 16 }
  0x59   : > { %v961_v44 = vor.u32 %v959_v14, %v958_v38  ;;  %v935_v14 = vshll.u32 %v678_v50, 16 }
  0x5a   : > { %v934_v38 = vrot.slane %v932_v4, 7 }
  0x5b   : > { %v3806_v51 = vsel %vm690_vm7, %v918_v56, %v961_v44  ;;  %v3138_v56 = vld [vmem:[%s4192_s2 + $0x20] sm:$0xff]  }
  0x5c   : > { %1528 = vmatmul.mubr.bf16.gmra.mrb[24].mxu0 %v3674_v17  ;;  %1625 = vmatmul.mubr.bf16.gmra.mrb[24].mxu1 %v3760_v13 }
  0x5d   : > { %1535 = vmatprep.mubr.bf16.mxu0 %v946_v3  ;;  %1632 = vmatprep.mubr.bf16.mxu1 %v3768_v6  ;;  %v680_v3 = vshll.u32 %v3785_v32, 16 }
  0x5f   : > { %v682_v45 = vrot.slane %v680_v3, 1 }
  0x64   : > { %1536 = vmatmul.mubr.bf16.gmra.mrb[28].mxu0 %v3728_v23  ;;  %1633 = vmatmul.mubr.bf16.gmra.mrb[28].mxu1 %v3778_v61 }
  0x65   : > { %1673 = vmatprep.mubr.bf16.mxu0 %v758_v18  ;;  %1770 = vmatprep.mubr.bf16.mxu1 %v778_v21  ;;  %v684_v21 = vshrl.u32 %v3785_v32, 16 }
  0x67   : > { %v686_v63 = vor.u32 %v684_v21, %v682_v45 }
  0x69   : > { %v964_v42 = vshrl.u32 %v686_v63, 16 }
  0x6c   : > { %1674 = vmatmul.mubr.bf16.vlgmr.msra.gmra.mrb[32].mxu0 %v746_v12  ;;  %1771 = vmatmul.mubr.bf16.vlgmr.msra.gmra.mrb[32].mxu1 %v3475_v62  ;;  %v3135_v62 = vld [vmem:[%s4191_s1 + $0x218] sm:$0xff]   ;;  %v966_v12 = vrot.slane %v964_v42, 7 }
  0x6d   : > { %2951 = vmatpush3.bf16.msra.mxu0 %v3734_v26  ;;  %2983 = vmatpush3.bf16.msra.mxu1 %v3739_v30  ;;  %v669_v26 = vshll.u32 %v3682_v58, 16  ;;  %v3137_v30 = vld [vmem:[%s4191_s1 + $0x220] sm:$0xff]  }
  0x6e   : > { %1681 = vmatprep.mubr.bf16.mxu0 %v3561_v60  ;;  %2952 = vmatprep.subr.bf16.mxu0 %v3131_v49  ;;  %v3136_v60 = vld [vmem:[%s4192_s2 + $0x18] sm:$0xff]  }
  0x6f   : > { %1778 = vmatprep.mubr.bf16.mxu1 %v3589_v20  ;;  %2984 = vmatprep.subr.bf16.mxu1 %v3132_v37  ;;  %v671_v53 = vrot.slane %v669_v26, 1 }
  0x71   : > { %2953 = vmatpush3.bf16.msra.mxu0 %v3131_v49  ;;  %2985 = vmatpush3.bf16.msra.mxu1 %v3132_v37  ;;  %v675_v28 = vor.u32 %v673_v33, %v671_v53  ;;  %v967_v49 = vshll.u32 %v686_v63, 16 }
  0x72   : > { %2954 = vmatprep.subr.bf16.mxu0 %v3133_v8  ;;  %2986 = vmatprep.subr.bf16.mxu1 %v3134_v43 }
  0x73   : > { %v683_v9 = vsel %vm577_vm4, %v675_v28, %v682_v45  ;;  %v969_v19 = vor.u32 %v967_v49, %v966_v12  ;;  %v951_v37 = vshll.u32 %v675_v28, 16 }
  0x74   : > { %1682 = vmatmul.mubr.bf16.gmra.mrb[36].mxu0 %v3547_v41  ;;  %1779 = vmatmul.mubr.bf16.gmra.mrb[36].mxu1 %v3517_v27  ;;  %v3139_v27 = vld [vmem:[%s4191_s1 + $0x228] sm:$0xff]   ;;  %v672_v41 = vsel %vm577_vm4, %v3695_v59, %v671_v53  ;;  %v3141_v59 = vld [vmem:[%s4191_s1 + $0x230] sm:$0xff]   ;;  %v924_v18 = vshrl.u32 %v683_v9, 16  ;;  %v927_v29 = vshll.u32 %v683_v9, 16 }
  0x75   : > { %1689 = vmatprep.mubr.bf16.mxu0 %v3605_v31  ;;  %1786 = vmatprep.mubr.bf16.mxu1 %v3632_v2  ;;  %v900_v7 = vshrl.u32 %v672_v41, 16  ;;  %v903_v34 = vshll.u32 %v672_v41, 16 }
  0x76   : > { %2955 = vmatpush3.bf16.msra.mxu0 %v3133_v8  ;;  %2987 = vmatpush3.bf16.msra.mxu1 %v3134_v43 }
  0x77   : > { %2956 = vmatprep.subr.bf16.mxu0 %v3135_v62  ;;  %2988 = vmatprep.subr.bf16.mxu1 %v3136_v60 }
  0x7a   : > { %2957 = vmatpush3.bf16.msra.mxu0 %v3135_v62  ;;  %2989 = vmatpush3.bf16.msra.mxu1 %v3136_v60  ;;  %v3145_v62 = vld [vmem:[%s3375_s28] sm:$0xff]  }
  0x7b   : > { %2958 = vmatprep.subr.bf16.mxu0 %v3137_v30  ;;  %2990 = vmatprep.subr.bf16.mxu1 %v3138_v56 }
  0x7c   : > { %1690 = vmatmul.mubr.bf16.gmra.mrb[40].mxu0 %v3589_v20  ;;  %1787 = vmatmul.mubr.bf16.gmra.mrb[40].mxu1 %v3568_v5  ;;  %v3142_v20 = vld [vmem:[%s4192_s2 + $0x30] sm:$0xff]   ;;  %v902_v5 = vrot.slane %v900_v7, 7 }
  0x7d   : > { %1697 = vmatprep.mubr.bf16.mxu0 %v3670_v40  ;;  %1794 = vmatprep.mubr.bf16.mxu1 %v3677_v47 }
  0x7e   : > { %2959 = vmatpush3.bf16.msra.mxu0 %v3137_v30  ;;  %2991 = vmatpush3.bf16.msra.mxu1 %v3138_v56  ;;  %v905_v16 = vor.u32 %v903_v34, %v902_v5 }
  0x7f   : > { %2960 = vmatprep.subr.bf16.mxu0 %v3139_v27  ;;  %2992 = vmatprep.subr.bf16.mxu1 %v3140_v54 }
  0x82   : > { %2961 = vmatpush3.bf16.msra.mxu0 %v3139_v27  ;;  %2993 = vmatpush3.bf16.msra.mxu1 %v3140_v54 }
  0x83   : > { %2962 = vmatprep.subr.bf16.mxu0 %v3141_v59  ;;  %2994 = vmatprep.subr.bf16.mxu1 %v3142_v20 }
  0x84   : > { %1698 = vmatmul.mubr.bf16.gmra.mrb[44].mxu0 %v3632_v2  ;;  %1795 = vmatmul.mubr.bf16.gmra.mrb[44].mxu1 %v3627_v57  ;;  %v906_v57 = vsel %vm690_vm7, %v3688_v24, %v905_v16  ;;  %v926_v2 = vrot.slane %v924_v18, 7 }
  0x85   : > { %1705 = vmatprep.mubr.bf16.mxu0 %v3724_v22  ;;  %1802 = vmatprep.mubr.bf16.mxu1 %v3743_v52 }
  0x86   : > { %2963 = vmatpush3.bf16.msra.mxu0 %v3141_v59  ;;  %2995 = vmatpush3.bf16.msra.mxu1 %v3142_v20  ;;  %v929_v32 = vor.u32 %v927_v29, %v926_v2  ;;  %v970_v43 = vsel %vm690_vm7, %v926_v2, %v969_v19 }
  0x87   : > { %2964 = vmatprep.subr.bf16.mxu0 %v3143_v11  ;;  %2996 = vmatprep.subr.bf16.mxu1 %v3144_v48 }
  0x88   : > { %v930_v24 = vsel %vm690_vm7, %v902_v5, %v929_v32 }
  0x8a   : > { %2965 = vmatpush3.bf16.msra.mxu0 %v3143_v11  ;;  %2997 = vmatpush3.bf16.msra.mxu1 %v3144_v48 }
  0x8c   : > { %1706 = vmatmul.mubr.bf16.gmra.mrb[48].mxu0 %v3677_v47  ;;  %1803 = vmatmul.mubr.bf16.gmra.mrb[48].mxu1 %v3674_v17  ;;  %v948_v17 = vshrl.u32 %v675_v28, 16  ;;  %v937_v47 = vor.u32 %v935_v14, %v934_v38 }
  0x8d   : > { %1713 = vmatprep.mubr.bf16.mxu0 %v3760_v13  ;;  %1810 = vmatprep.mubr.bf16.mxu1 %v906_v57 }
  0x8e   : > { %v950_v44 = vrot.slane %v948_v17, 7  ;;  %v938_v8 = vsel %vm690_vm7, %v3762_v0, %v937_v47  ;;  %v3146_v0 = vld [vmem:[%s3375_s28 + $0x8] sm:$0xff]   ;;  %s2470_s28 = sshll.u32 %s4218_s13, 1 }
  0x8f   : > { %s259_s14 = sadd.s32 %s2471_s30, %s2470_s28 }
  0x90   : > { %s2472_s16 = sshll.u32 %s259_s14, 2 }
  0x91   : > { %s4003_s25 = scalar_lea.vmem %s4193_s3, %s2472_s16 }
  0x94   : > { %1714 = vmatmul.mubr.bf16.gmra.mrb[52].mxu0 %v3743_v52  ;;  %1811 = vmatmul.mubr.bf16.gmra.mrb[52].mxu1 %v3728_v23  ;;  %v953_v23 = vor.u32 %v951_v37, %v950_v44 }
  0x95   : > { %1721 = vmatprep.mubr.bf16.mxu0 %v3778_v61  ;;  %1818 = vmatprep.mubr.bf16.mxu1 %v930_v24 }
  0x96   : > { %v954_v52 = vsel %vm690_vm7, %v902_v5, %v953_v23 }
  0x9c   : > { %1722 = vmatmul.mubr.bf16.gmra.mrb[56].mxu0 %v906_v57  ;;  %1819 = vmatmul.mubr.bf16.gmra.mrb[56].mxu1 %v3768_v6  ;;  %v688_v6 = vrot.slane %v3188_v39, 1 }
  0x9d   : > { %1729 = vmatprep.mubr.bf16.mxu0 %v938_v8  ;;  %1826 = vmatprep.mubr.bf16.mxu1 %v970_v43 }
  0x9e   : > { %v689_v60 = vsel %vm650_vm9, %v677_v25, %v688_v6 }
  0xa4   : > { %1730 = vmatmul.mubr.bf16.gmra.mrb[60].mxu0 %v954_v52  ;;  %1827 = vmatmul.mubr.bf16.gmra.mrb[60].mxu1 %v3806_v51  ;;  %v975_v51 = vshll.u32 %v689_v60, 16 }
  0xa5   : > { %2966 = vmatprep.mubr.bf16.mxu0 %v3789_v35  ;;  %2998 = vmatprep.mubr.bf16.mxu1 %v3145_v62  ;;  %v972_v35 = vshrl.u32 %v689_v60, 16 }
  0xac   : > { %2967 = vmatmul.mubr.bf16.vlgmr.msra.gmra.mrb[64].mxu0 %v3605_v31  ;;  %2999 = vmatmul.mubr.bf16.vlgmr.msra.gmra.mrb[64].mxu1 %v3146_v0  ;;  %v974_v31 = vrot.slane %v972_v35, 7 }
  0xad   : > { %2970 = vmatprep.mubr.bf16.mxu0 %v3670_v40  ;;  %3002 = vmatprep.mubr.bf16.mxu1 %v3443_v36 }
  0xae   : > { %v977_v36 = vor.u32 %v975_v51, %v974_v31 }
  0xb0   : > { %v978_v39 = vsel %vm690_vm7, %v934_v38, %v977_v36 }
  0xb4   : > { %2971 = vmatmul.mubr.bf16.gmra.mrb[68].mxu0 %v3724_v22  ;;  %3003 = vmatmul.mubr.bf16.gmra.mrb[68].mxu1 %v3492_v10 }
  0xb5   : > { %2974 = vmatprep.mubr.bf16.mxu0 %v3760_v13  ;;  %3006 = vmatprep.mubr.bf16.mxu1 %v3539_v46 }
  0xbc   : > { %2975 = vmatmul.mubr.bf16.gmra.mrb[72].mxu0 %v3778_v61  ;;  %3007 = vmatmul.mubr.bf16.gmra.mrb[72].mxu1 %v3582_v15 }
  0xbd   : > { %2978 = vmatprep.mubr.bf16.mxu0 %v938_v8  ;;  %3010 = vmatprep.mubr.bf16.mxu1 %v3623_v55 }
  0xc4   : > { %2979 = vmatmul.mubr.bf16.gmra.mrb[76].mxu0 %v978_v39  ;;  %3011 = vmatmul.mubr.bf16.gmra.mrb[76].mxu1 %v3682_v58 }
  0xff   : > { %v2678_v10 = vpop.f32.mrb[0].mxu0  ;;  %v2742_v40 = vpop.f32.mrb[0].mxu1 }
 0x100   : > { %v2679_v22 = vpop.f32.mrb[1].mxu0  ;;  %v2743_v46 = vpop.f32.mrb[1].mxu1 }
 0x101   : > { %v2680_v13 = vadd.f32 %v2679_v22, %v2678_v10  ;;  %v2744_v26 = vadd.f32 %v2743_v46, %v2742_v40  ;;  %v2681_v30 = vpop.f32.mrb[2].mxu0  ;;  %v2745_v56 = vpop.f32.mrb[2].mxu1 }
 0x102   : > { %v2682_v61 = vpop.f32.mrb[3].mxu0  ;;  %v2746_v53 = vpop.f32.mrb[3].mxu1 }
 0x103   : > { %v3904_v15 = vadd.f32 %v2744_v26, %v2680_v13  ;;  %v2683_v27 = vadd.f32 %v2682_v61, %v2681_v30  ;;  %v2747_v41 = vadd.f32 %v2746_v53, %v2745_v56 }
 0x105   : > { %v3906_v55 = vadd.f32 %v2747_v41, %v2683_v27 }
 0x107   : > { %v2684_v54 = vpop.f32.mrb[4].mxu0  ;;  %v2748_v33 = vpop.f32.mrb[4].mxu1 }
 0x108   : > { %v2685_v3 = vpop.f32.mrb[5].mxu0  ;;  %v2749_v58 = vpop.f32.mrb[5].mxu1 }
 0x109   : > { %v2686_v7 = vadd.f32 %v2685_v3, %v2684_v54  ;;  %v2750_v59 = vadd.f32 %v2749_v58, %v2748_v33  ;;  %v2687_v28 = vpop.f32.mrb[6].mxu0  ;;  %v2751_v45 = vpop.f32.mrb[6].mxu1 }
 0x10a   : > { %v2688_v20 = vpop.f32.mrb[7].mxu0  ;;  %v2752_v5 = vpop.f32.mrb[7].mxu1 }
 0x10b   : > { %v3908_v34 = vadd.f32 %v2750_v59, %v2686_v7  ;;  %v2689_v9 = vadd.f32 %v2688_v20, %v2687_v28  ;;  %v2753_v11 = vadd.f32 %v2752_v5, %v2751_v45 }
 0x10d   : > { %v3910_v48 = vadd.f32 %v2753_v11, %v2689_v9 }
 0x10f   : > { %v2690_v1 = vpop.f32.mrb[8].mxu0  ;;  %v2754_v16 = vpop.f32.mrb[8].mxu1 }
 0x110   : > { %v2691_v18 = vpop.f32.mrb[9].mxu0  ;;  %v2755_v21 = vpop.f32.mrb[9].mxu1 }
 0x111   : > { %v2692_v25 = vadd.f32 %v2691_v18, %v2690_v1  ;;  %v2756_v57 = vadd.f32 %v2755_v21, %v2754_v16  ;;  %v2693_v2 = vpop.f32.mrb[10].mxu0  ;;  %v2757_v29 = vpop.f32.mrb[10].mxu1 }
 0x112   : > { %v2694_v63 = vpop.f32.mrb[11].mxu0  ;;  %v2758_v50 = vpop.f32.mrb[11].mxu1 }
 0x113   : > { %v3912_v32 = vadd.f32 %v2756_v57, %v2692_v25  ;;  %v2695_v4 = vadd.f32 %v2694_v63, %v2693_v2  ;;  %v2759_v42 = vadd.f32 %v2758_v50, %v2757_v29 }
 0x115   : > { %v3914_v14 = vadd.f32 %v2759_v42, %v2695_v4 }
 0x117   : > { %v2696_v24 = vpop.f32.mrb[12].mxu0  ;;  %v2760_v38 = vpop.f32.mrb[12].mxu1 }
 0x118   : > { %v2697_v12 = vpop.f32.mrb[13].mxu0  ;;  %v2761_v49 = vpop.f32.mrb[13].mxu1 }
 0x119   : > { %v2698_v17 = vadd.f32 %v2697_v12, %v2696_v24  ;;  %v2762_v47 = vadd.f32 %v2761_v49, %v2760_v38  ;;  %v2699_v19 = vpop.f32.mrb[14].mxu0  ;;  %v2763_v44 = vpop.f32.mrb[14].mxu1 }
 0x11a   : > { %v2700_v37 = vpop.f32.mrb[15].mxu0  ;;  %v2764_v8 = vpop.f32.mrb[15].mxu1 }
 0x11b   : > { %v3916_v43 = vadd.f32 %v2762_v47, %v2698_v17  ;;  %v2701_v23 = vadd.f32 %v2700_v37, %v2699_v19  ;;  %v2765_v52 = vadd.f32 %v2764_v8, %v2763_v44 }
 0x11d   : > { %v3918_v62 = vadd.f32 %v2765_v52, %v2701_v23 }
 0x11f   : > { %v2702_v0 = vpop.f32.mrb[16].mxu0  ;;  %v2766_v6 = vpop.f32.mrb[16].mxu1 }
 0x120   : > { %v2703_v60 = vpop.f32.mrb[17].mxu0  ;;  %v2767_v35 = vpop.f32.mrb[17].mxu1 }
 0x121   : > { %v2704_v31 = vadd.f32 %v2703_v60, %v2702_v0  ;;  %v2768_v51 = vadd.f32 %v2767_v35, %v2766_v6  ;;  %v2705_v36 = vpop.f32.mrb[18].mxu0  ;;  %v2769_v39 = vpop.f32.mrb[18].mxu1 }
 0x122   : > { %v2706_v10 = vpop.f32.mrb[19].mxu0  ;;  %v2770_v40 = vpop.f32.mrb[19].mxu1 }
 0x123   : > { %v3920_v22 = vadd.f32 %v2768_v51, %v2704_v31  ;;  %v2707_v46 = vadd.f32 %v2706_v10, %v2705_v36  ;;  %v2771_v13 = vadd.f32 %v2770_v40, %v2769_v39 }
 0x125   : > { %v3922_v26 = vadd.f32 %v2771_v13, %v2707_v46 }
 0x127   : > { %v2708_v30 = vpop.f32.mrb[20].mxu0  ;;  %v2772_v56 = vpop.f32.mrb[20].mxu1 }
 0x128   : > { %v2709_v61 = vpop.f32.mrb[21].mxu0  ;;  %v2773_v53 = vpop.f32.mrb[21].mxu1 }
 0x129   : > { %v2710_v27 = vadd.f32 %v2709_v61, %v2708_v30  ;;  %v2774_v41 = vadd.f32 %v2773_v53, %v2772_v56  ;;  %v2711_v54 = vpop.f32.mrb[22].mxu0  ;;  %v2775_v33 = vpop.f32.mrb[22].mxu1 }
 0x12a   : > { %v2712_v3 = vpop.f32.mrb[23].mxu0  ;;  %v2776_v58 = vpop.f32.mrb[23].mxu1 }
 0x12b   : > { %v3924_v7 = vadd.f32 %v2774_v41, %v2710_v27  ;;  %v2713_v59 = vadd.f32 %v2712_v3, %v2711_v54  ;;  %v2777_v28 = vadd.f32 %v2776_v58, %v2775_v33 }
 0x12d   : > { %v3926_v45 = vadd.f32 %v2777_v28, %v2713_v59 }
 0x12f   : > { %v2714_v20 = vpop.f32.mrb[24].mxu0  ;;  %v2778_v5 = vpop.f32.mrb[24].mxu1 }
 0x130   : > { %v2715_v9 = vpop.f32.mrb[25].mxu0  ;;  %v2779_v11 = vpop.f32.mrb[25].mxu1 }
 0x131   : > { %v2716_v1 = vadd.f32 %v2715_v9, %v2714_v20  ;;  %v2780_v16 = vadd.f32 %v2779_v11, %v2778_v5  ;;  %v2717_v18 = vpop.f32.mrb[26].mxu0  ;;  %v2781_v21 = vpop.f32.mrb[26].mxu1 }
 0x132   : > { %v2718_v25 = vpop.f32.mrb[27].mxu0  ;;  %v2782_v57 = vpop.f32.mrb[27].mxu1 }
 0x133   : > { %v3928_v2 = vadd.f32 %v2780_v16, %v2716_v1  ;;  %v2719_v29 = vadd.f32 %v2718_v25, %v2717_v18  ;;  %v2783_v63 = vadd.f32 %v2782_v57, %v2781_v21 }
 0x135   : > { %v3930_v50 = vadd.f32 %v2783_v63, %v2719_v29 }
 0x137   : > { %v2720_v4 = vpop.f32.mrb[28].mxu0  ;;  %v2784_v42 = vpop.f32.mrb[28].mxu1 }
 0x138   : > { %v2721_v24 = vpop.f32.mrb[29].mxu0  ;;  %v2785_v38 = vpop.f32.mrb[29].mxu1 }
 0x139   : > { %v2722_v12 = vadd.f32 %v2721_v24, %v2720_v4  ;;  %v2786_v49 = vadd.f32 %v2785_v38, %v2784_v42  ;;  %v2723_v17 = vpop.f32.mrb[30].mxu0  ;;  %v2787_v47 = vpop.f32.mrb[30].mxu1 }
 0x13a   : > { %v2724_v19 = vpop.f32.mrb[31].mxu0  ;;  %v2788_v44 = vpop.f32.mrb[31].mxu1 }
 0x13b   : > { %v3932_v37 = vadd.f32 %v2786_v49, %v2722_v12  ;;  %v2725_v8 = vadd.f32 %v2724_v19, %v2723_v17  ;;  %v2789_v23 = vadd.f32 %v2788_v44, %v2787_v47 }
 0x13d   : > { %v3934_v52 = vadd.f32 %v2789_v23, %v2725_v8 }
 0x13f   : > { %v2806_v0 = vpop.f32.mrb[32].mxu0  ;;  %v2870_v6 = vpop.f32.mrb[32].mxu1 }
 0x140   : > { %v2807_v60 = vpop.f32.mrb[33].mxu0  ;;  %v2871_v35 = vpop.f32.mrb[33].mxu1 }
 0x141   : > { %v2808_v31 = vadd.f32 %v2807_v60, %v2806_v0  ;;  %v2809_v51 = vpop.f32.mrb[34].mxu0  ;;  %v2872_v36 = vadd.f32 %v2871_v35, %v2870_v6  ;;  %v2873_v39 = vpop.f32.mrb[34].mxu1 }
 0x142   : > { %v2810_v10 = vpop.f32.mrb[35].mxu0  ;;  %v2874_v40 = vpop.f32.mrb[35].mxu1 }
 0x143   : > { %v1676_v46 = vadd.f32 %v2808_v31, %v3904_v15  ;;  %v2811_v13 = vadd.f32 %v2810_v10, %v2809_v51  ;;  %v2875_v30 = vadd.f32 %v2874_v40, %v2873_v39 }
 0x145   : > { %v1679_v56 = vadd.f32 %v2811_v13, %v3906_v55  ;;  %v3938_v61 = vadd.f32 %v2872_v36, %v1676_v46 }
 0x147   : > { %v2812_v53 = vpop.f32.mrb[36].mxu0  ;;  %v2876_v27 = vpop.f32.mrb[36].mxu1  ;;  %v3940_v41 = vadd.f32 %v2875_v30, %v1679_v56 }
 0x148   : > { %v2813_v54 = vpop.f32.mrb[37].mxu0  ;;  %v2877_v33 = vpop.f32.mrb[37].mxu1 }
 0x149   : > { %v2814_v3 = vadd.f32 %v2813_v54, %v2812_v53  ;;  %v2815_v58 = vpop.f32.mrb[38].mxu0  ;;  %v2878_v59 = vadd.f32 %v2877_v33, %v2876_v27  ;;  %v2879_v28 = vpop.f32.mrb[38].mxu1 }
 0x14a   : > { %v2816_v20 = vpop.f32.mrb[39].mxu0  ;;  %v2880_v5 = vpop.f32.mrb[39].mxu1 }
 0x14b   : > { %v1684_v15 = vadd.f32 %v2814_v3, %v3908_v34  ;;  %v2817_v9 = vadd.f32 %v2816_v20, %v2815_v58  ;;  %v2881_v11 = vadd.f32 %v2880_v5, %v2879_v28 }
 0x14d   : > { %v1687_v55 = vadd.f32 %v2817_v9, %v3910_v48  ;;  %v3944_v1 = vadd.f32 %v2878_v59, %v1684_v15 }
 0x14f   : > { %v2818_v16 = vpop.f32.mrb[40].mxu0  ;;  %v2882_v18 = vpop.f32.mrb[40].mxu1  ;;  %v3946_v21 = vadd.f32 %v2881_v11, %v1687_v55 }
 0x150   : > { %v2819_v25 = vpop.f32.mrb[41].mxu0  ;;  %v2883_v57 = vpop.f32.mrb[41].mxu1 }
 0x151   : > { %v2820_v29 = vadd.f32 %v2819_v25, %v2818_v16  ;;  %v2821_v63 = vpop.f32.mrb[42].mxu0  ;;  %v2884_v4 = vadd.f32 %v2883_v57, %v2882_v18  ;;  %v2885_v42 = vpop.f32.mrb[42].mxu1 }
 0x152   : > { %v2822_v24 = vpop.f32.mrb[43].mxu0  ;;  %v2886_v38 = vpop.f32.mrb[43].mxu1 }
 0x153   : > { %v1692_v34 = vadd.f32 %v2820_v29, %v3912_v32  ;;  %v2823_v12 = vadd.f32 %v2822_v24, %v2821_v63  ;;  %v2887_v49 = vadd.f32 %v2886_v38, %v2885_v42 }
 0x155   : > { %v1695_v48 = vadd.f32 %v2823_v12, %v3914_v14  ;;  %v3950_v17 = vadd.f32 %v2884_v4, %v1692_v34 }
 0x157   : > { %v2824_v47 = vpop.f32.mrb[44].mxu0  ;;  %v2888_v19 = vpop.f32.mrb[44].mxu1  ;;  %v3952_v44 = vadd.f32 %v2887_v49, %v1695_v48 }
 0x158   : > { %v2825_v8 = vpop.f32.mrb[45].mxu0  ;;  %v2889_v23 = vpop.f32.mrb[45].mxu1 }
 0x159   : > { %v2826_v0 = vadd.f32 %v2825_v8, %v2824_v47  ;;  %v2827_v6 = vpop.f32.mrb[46].mxu0  ;;  %v2890_v60 = vadd.f32 %v2889_v23, %v2888_v19  ;;  %v2891_v35 = vpop.f32.mrb[46].mxu1 }
 0x15a   : > { %v2828_v31 = vpop.f32.mrb[47].mxu0  ;;  %v2892_v51 = vpop.f32.mrb[47].mxu1 }
 0x15b   : > { %v1700_v32 = vadd.f32 %v2826_v0, %v3916_v43  ;;  %v2829_v36 = vadd.f32 %v2828_v31, %v2827_v6  ;;  %v2893_v39 = vadd.f32 %v2892_v51, %v2891_v35 }
 0x15d   : > { %v1703_v14 = vadd.f32 %v2829_v36, %v3918_v62  ;;  %v3956_v10 = vadd.f32 %v2890_v60, %v1700_v32 }
 0x15f   : > { %v2830_v40 = vpop.f32.mrb[48].mxu0  ;;  %v2894_v46 = vpop.f32.mrb[48].mxu1  ;;  %v3958_v13 = vadd.f32 %v2893_v39, %v1703_v14 }
 0x160   : > { %v2831_v30 = vpop.f32.mrb[49].mxu0  ;;  %v2895_v56 = vpop.f32.mrb[49].mxu1 }
 0x161   : > { %v2832_v53 = vadd.f32 %v2831_v30, %v2830_v40  ;;  %v2833_v27 = vpop.f32.mrb[50].mxu0  ;;  %v2896_v54 = vadd.f32 %v2895_v56, %v2894_v46  ;;  %v2897_v33 = vpop.f32.mrb[50].mxu1 }
 0x162   : > { %v2834_v3 = vpop.f32.mrb[51].mxu0  ;;  %v2898_v58 = vpop.f32.mrb[51].mxu1 }
 0x163   : > { %v1708_v43 = vadd.f32 %v2832_v53, %v3920_v22  ;;  %v2835_v59 = vadd.f32 %v2834_v3, %v2833_v27  ;;  %v2899_v28 = vadd.f32 %v2898_v58, %v2897_v33 }
 0x165   : > { %v1711_v62 = vadd.f32 %v2835_v59, %v3922_v26  ;;  %v3962_v20 = vadd.f32 %v2896_v54, %v1708_v43 }
 0x167   : > { %v2836_v5 = vpop.f32.mrb[52].mxu0  ;;  %v2900_v15 = vpop.f32.mrb[52].mxu1  ;;  %v3964_v9 = vadd.f32 %v2899_v28, %v1711_v62 }
 0x168   : > { %v2837_v11 = vpop.f32.mrb[53].mxu0  ;;  %v2901_v55 = vpop.f32.mrb[53].mxu1 }
 0x169   : > { %v2838_v16 = vadd.f32 %v2837_v11, %v2836_v5  ;;  %v2839_v18 = vpop.f32.mrb[54].mxu0  ;;  %v2902_v25 = vadd.f32 %v2901_v55, %v2900_v15  ;;  %v2903_v57 = vpop.f32.mrb[54].mxu1 }
 0x16a   : > { %v2840_v29 = vpop.f32.mrb[55].mxu0  ;;  %v2904_v63 = vpop.f32.mrb[55].mxu1 }
 0x16b   : > { %v1716_v22 = vadd.f32 %v2838_v16, %v3924_v7  ;;  %v2841_v4 = vadd.f32 %v2840_v29, %v2839_v18  ;;  %v2905_v42 = vadd.f32 %v2904_v63, %v2903_v57 }
 0x16d   : > { %v1719_v26 = vadd.f32 %v2841_v4, %v3926_v45  ;;  %v3968_v24 = vadd.f32 %v2902_v25, %v1716_v22 }
 0x16f   : > { %v2842_v38 = vpop.f32.mrb[56].mxu0  ;;  %v2906_v34 = vpop.f32.mrb[56].mxu1  ;;  %v3970_v12 = vadd.f32 %v2905_v42, %v1719_v26 }
 0x170   : > { %v2843_v49 = vpop.f32.mrb[57].mxu0  ;;  %v2907_v48 = vpop.f32.mrb[57].mxu1 }
 0x171   : > { %v2844_v47 = vadd.f32 %v2843_v49, %v2842_v38  ;;  %v2845_v19 = vpop.f32.mrb[58].mxu0  ;;  %v2908_v8 = vadd.f32 %v2907_v48, %v2906_v34  ;;  %v2909_v23 = vpop.f32.mrb[58].mxu1 }
 0x172   : > { %v2846_v0 = vpop.f32.mrb[59].mxu0  ;;  %v2910_v7 = vpop.f32.mrb[59].mxu1 }
 0x173   : > { %v1724_v6 = vadd.f32 %v2844_v47, %v3928_v2  ;;  %v2847_v60 = vadd.f32 %v2846_v0, %v2845_v19  ;;  %v2911_v45 = vadd.f32 %v2910_v7, %v2909_v23 }
 0x175   : > { %v1727_v35 = vadd.f32 %v2847_v60, %v3930_v50  ;;  %v3975_v31 = vadd.f32 %v2908_v8, %v1724_v6 }
 0x177   : > { %v2848_v51 = vpop.f32.mrb[60].mxu0  ;;  %v2912_v32 = vpop.f32.mrb[60].mxu1  ;;  %v3978_v36 = vadd.f32 %v2911_v45, %v1727_v35 }
 0x178   : > { %v2849_v39 = vpop.f32.mrb[61].mxu0  ;;  %v2913_v14 = vpop.f32.mrb[61].mxu1 }
 0x179   : > { %v2850_v40 = vadd.f32 %v2849_v39, %v2848_v51  ;;  %v2851_v46 = vpop.f32.mrb[62].mxu0  ;;  %v2914_v30 = vadd.f32 %v2913_v14, %v2912_v32  ;;  %v2915_v56 = vpop.f32.mrb[62].mxu1 }
 0x17a   : > { %v2852_v53 = vpop.f32.mrb[63].mxu0  ;;  %v2916_v2 = vpop.f32.mrb[63].mxu1 }
 0x17b   : > { %v1732_v27 = vadd.f32 %v2850_v40, %v3932_v37  ;;  %v2853_v50 = vadd.f32 %v2852_v53, %v2851_v46  ;;  %v2917_v54 = vadd.f32 %v2916_v2, %v2915_v56 }
 0x17d   : > { %v1735_v33 = vadd.f32 %v2853_v50, %v3934_v52  ;;  %v1829_v3 = vadd.f32 %v2914_v30, %v1732_v27 }
 0x17f   : > { %v2968_v58 = vpop.f32.mrb[64].mxu0  ;;  %v3983_v43 = vpop.f32.mrb[64].mxu1  ;;  %v1832_v59 = vadd.f32 %v2917_v54, %v1735_v33 }
 0x180   : > { %v3986_v28 = vadd.f32 %v2968_v58, %v3944_v1  ;;  %v1869_v62 = vpop.f32.mrb[65].mxu0  ;;  %v3988_v5 = vpop.f32.mrb[65].mxu1 }
 0x181   : > { %v3991_v15 = vadd.f32 %v1869_v62, %v3938_v61  ;;  %v2969_v37 = vpop.f32.mrb[66].mxu0  ;;  %v3993_v11 = vpop.f32.mrb[66].mxu1 }
 0x182   : > { %v3996_v52 = vadd.f32 %v2969_v37, %v3946_v21  ;;  %v1872_v55 = vpop.f32.mrb[67].mxu0  ;;  %v3998_v16 = vpop.f32.mrb[67].mxu1 }
 0x183   : > { %v1873_v1 = vadd.f32 %v1872_v55, %v3940_v41 }
 0x184   : > { %v2623_v61 = vpack.c.bf16 %v3996_v52, %v3986_v28 }
 0x185   : > { %v2618_v18 = vpack.c.bf16 %v1873_v1, %v3991_v15 }
 0x186   : > { %2655 = vst [vmem:[%s4003_s25 + $0x8] sm:$0xff] %v2623_v61  }
 0x187   : > { %2619 = vst [vmem:[%s4003_s25] sm:$0xff] %v2618_v18   ;;  %v2972_v21 = vpop.f32.mrb[68].mxu0  ;;  %v4011_v25 = vpop.f32.mrb[68].mxu1 }
 0x188   : > { %v4014_v57 = vadd.f32 %v2972_v21, %v3956_v10  ;;  %v1885_v29 = vpop.f32.mrb[69].mxu0  ;;  %v4016_v63 = vpop.f32.mrb[69].mxu1 }
 0x189   : > { %v1886_v41 = vadd.f32 %v1885_v29, %v3950_v17  ;;  %v2973_v22 = vpop.f32.mrb[70].mxu0  ;;  %v4019_v4 = vpop.f32.mrb[70].mxu1 }
 0x18a   : > { %v4022_v42 = vadd.f32 %v2973_v22, %v3958_v13  ;;  %v1888_v26 = vpop.f32.mrb[71].mxu0  ;;  %v4024_v38 = vpop.f32.mrb[71].mxu1 }
 0x18b   : > { %v1889_v34 = vadd.f32 %v1888_v26, %v3952_v44 }
 0x18c   : > { %v2633_v10 = vpack.c.bf16 %v4022_v42, %v4014_v57 }
 0x18d   : > { %v2628_v49 = vpack.c.bf16 %v1889_v34, %v1886_v41 }
 0x18e   : > { %2657 = vst [vmem:[%s4003_s25 + $0x18] sm:$0xff] %v2633_v10  }
 0x18f   : > { %2656 = vst [vmem:[%s4003_s25 + $0x10] sm:$0xff] %v2628_v49   ;;  %v2976_v17 = vpop.f32.mrb[72].mxu0  ;;  %v4031_v48 = vpop.f32.mrb[72].mxu1 }
 0x190   : > { %v4034_v47 = vadd.f32 %v2976_v17, %v3968_v24  ;;  %v1901_v13 = vpop.f32.mrb[73].mxu0  ;;  %v4036_v19 = vpop.f32.mrb[73].mxu1 }
 0x191   : > { %v4039_v8 = vadd.f32 %v1901_v13, %v3962_v20  ;;  %v2977_v44 = vpop.f32.mrb[74].mxu0  ;;  %v4041_v23 = vpop.f32.mrb[74].mxu1 }
 0x192   : > { %v4044_v0 = vadd.f32 %v2977_v44, %v3970_v12  ;;  %v1904_v7 = vpop.f32.mrb[75].mxu0  ;;  %v4046_v6 = vpop.f32.mrb[75].mxu1 }
 0x193   : > { %v4049_v60 = vadd.f32 %v1904_v7, %v3964_v9 }
 0x194   : > { %v2643_v24 = vpack.c.bf16 %v4044_v0, %v4034_v47 }
 0x195   : > { %v2638_v45 = vpack.c.bf16 %v4049_v60, %v4039_v8 }
 0x196   : > { %2659 = vst [vmem:[%s4003_s25 + $0x28] sm:$0xff] %v2643_v24  }
 0x197   : > { %2658 = vst [vmem:[%s4003_s25 + $0x20] sm:$0xff] %v2638_v45   ;;  %v2980_v20 = vpop.f32.mrb[76].mxu0  ;;  %v4057_v35 = vpop.f32.mrb[76].mxu1 }
 0x198   : > { %v4059_v12 = vadd.f32 %v2980_v20, %v1829_v3  ;;  %v1917_v51 = vpop.f32.mrb[77].mxu0  ;;  %v4061_v32 = vpop.f32.mrb[77].mxu1 }
 0x199   : > { %v4064_v9 = vadd.f32 %v1917_v51, %v3975_v31  ;;  %v2981_v39 = vpop.f32.mrb[78].mxu0  ;;  %v4066_v14 = vpop.f32.mrb[78].mxu1  ;;  %2176 = sbr.rel (%p2591_p11) target bundleno = 416 (0x1a0), region = 36  ;;  %v3189_v31 = vmov (!%p2591_p11), 0.0  }
 0x19a   : > { %v4068_v40 = vadd.f32 %v2981_v39, %v1832_v59  ;;  %v1920_v46 = vpop.f32.mrb[79].mxu0  ;;  %v4070_v30 = vpop.f32.mrb[79].mxu1  ;;  %2177 = vst [vmem:[%s3279_s17] sm:$0x3] (!%p2591_p11), %v3189_v31  ;;  %2178 = vst [vmem:[%s3284_s27] sm:$0x3] (!%p2591_p11), %v3189_v31 }
 0x19b   : > { %v4073_v56 = vadd.f32 %v1920_v46, %v3978_v36 }
 0x19c   : > { %v2653_v53 = vpack.c.bf16 %v4068_v40, %v4059_v12 }
 0x19d   : > { %v2648_v2 = vpack.c.bf16 %v4073_v56, %v4064_v9 }
 0x19e   : > { %2661 = vst [vmem:[%s4003_s25 + $0x38] sm:$0xff] %v2653_v53  }
 0x19f   : > { %2660 = vst [vmem:[%s4003_s25 + $0x30] sm:$0xff] %v2648_v2  }
 0x1a0 PF: > { %v2180_v36 = vadd.f32 %v1873_v1, %v3991_v15  ;;  %v2201_v27 = vmul.f32 %v3991_v15, %v3991_v15  ;;  %v2202_v50 = vmul.f32 %v1873_v1, %v1873_v1  ;;  %v2203_v33 = vmul.f32 %v3986_v28, %v3986_v28 }
 0x1a1   : > { %v2204_v58 = vmul.f32 %v3996_v52, %v3996_v52  ;;  %v2243_v62 = vadd.f32 %v3998_v16, %v3988_v5  ;;  %v2205_v55 = vmul.f32 %v1886_v41, %v1886_v41  ;;  %v2264_v1 = vmul.f32 %v3988_v5, %v3988_v5 }
 0x1a2   : > { %v2181_v54 = vadd.f32 %v2180_v36, %v3986_v28  ;;  %v2217_v59 = vadd.f32 %v2202_v50, %v2201_v27  ;;  %v2265_v28 = vmul.f32 %v3998_v16, %v3998_v16  ;;  %v2206_v21 = vmul.f32 %v1889_v34, %v1889_v34 }
 0x1a3   : > { %v2244_v15 = vadd.f32 %v3983_v43, %v2243_v62  ;;  %v2266_v22 = vmul.f32 %v3983_v43, %v3983_v43  ;;  %v2267_v5 = vmul.f32 %v3993_v11, %v3993_v11  ;;  %v2208_v17 = vmul.f32 %v4022_v42, %v4022_v42 }
 0x1a4   : > { %v2182_v3 = vadd.f32 %v2181_v54, %v3996_v52  ;;  %v2218_v61 = vadd.f32 %v2217_v59, %v2203_v33  ;;  %v2280_v16 = vadd.f32 %v2265_v28, %v2264_v1  ;;  %v2268_v44 = vmul.f32 %v4016_v63, %v4016_v63 }
 0x1a5   : > { %v2245_v52 = vadd.f32 %v3993_v11, %v2244_v15  ;;  %v2209_v24 = vmul.f32 %v4039_v8, %v4039_v8  ;;  %v2269_v20 = vmul.f32 %v4024_v38, %v4024_v38  ;;  %v2210_v39 = vmul.f32 %v4049_v60, %v4049_v60 }
 0x1a6   : > { %v2183_v37 = vadd.f32 %v2182_v3, %v1886_v41  ;;  %v2219_v29 = vadd.f32 %v2218_v61, %v2204_v58  ;;  %v2207_v41 = vmul.f32 %v4014_v57, %v4014_v57  ;;  %v2281_v7 = vadd.f32 %v2280_v16, %v2266_v22 }
 0x1a7   : > { %v2246_v49 = vadd.f32 %v2245_v52, %v4016_v63  ;;  %v2270_v53 = vmul.f32 %v4011_v25, %v4011_v25  ;;  %v2211_v31 = vmul.f32 %v4034_v47, %v4034_v47  ;;  %v2271_v27 = vmul.f32 %v4019_v4, %v4019_v4 }
 0x1a8   : > { %v2184_v18 = vadd.f32 %v2183_v37, %v1889_v34  ;;  %v2220_v10 = vadd.f32 %v2219_v29, %v2205_v55  ;;  %v2282_v51 = vadd.f32 %v2281_v7, %v2267_v5  ;;  %v2212_v54 = vmul.f32 %v4044_v0, %v4044_v0 }
 0x1a9   : > { %v2247_v43 = vadd.f32 %v2246_v49, %v4024_v38  ;;  %v2272_v3 = vmul.f32 %v4036_v19, %v4036_v19  ;;  %v2213_v59 = vmul.f32 %v4064_v9, %v4064_v9  ;;  %v2273_v37 = vmul.f32 %v4046_v6, %v4046_v6 }
 0x1aa   : > { %v2185_v26 = vadd.f32 %v2184_v18, %v4014_v57  ;;  %v2221_v13 = vadd.f32 %v2220_v10, %v2206_v21  ;;  %v2283_v2 = vadd.f32 %v2282_v51, %v2268_v44  ;;  %v2214_v61 = vmul.f32 %v4073_v56, %v4073_v56 }
 0x1ab   : > { %v2248_v11 = vadd.f32 %v4011_v25, %v2247_v43  ;;  %v2274_v1 = vmul.f32 %v4031_v48, %v4031_v48  ;;  %v2215_v18 = vmul.f32 %v4059_v12, %v4059_v12  ;;  %v2275_v29 = vmul.f32 %v4041_v23, %v4041_v23 }
 0x1ac   : > { %v2186_v34 = vadd.f32 %v2185_v26, %v4022_v42  ;;  %v2222_v45 = vadd.f32 %v2221_v13, %v2207_v41  ;;  %v2284_v50 = vadd.f32 %v2283_v2, %v2269_v20  ;;  %v2216_v22 = vmul.f32 %v4068_v40, %v4068_v40 }
 0x1ad   : > { %v2249_v63 = vadd.f32 %v4019_v4, %v2248_v11  ;;  %v2276_v41 = vmul.f32 %v4061_v32, %v4061_v32  ;;  %vm2238_vm13 = vcmask 1040384  }
 0x1ae   : > { %v2187_v57 = vadd.f32 %v2186_v34, %v4039_v8  ;;  %v2223_v46 = vadd.f32 %v2222_v45, %v2208_v17  ;;  %v2285_v58 = vadd.f32 %v2284_v50, %v2270_v53 }
 0x1af   : > { %v2250_v38 = vadd.f32 %v2249_v63, %v4036_v19 }
 0x1b0   : > { %v2188_v42 = vadd.f32 %v2187_v57, %v4049_v60  ;;  %v2224_v36 = vadd.f32 %v2223_v46, %v2209_v24  ;;  %v2286_v55 = vadd.f32 %v2285_v58, %v2271_v27  ;;  %v2279_v57 = vmul.f32 %v4066_v14, %v4066_v14 }
 0x1b1   : > { %v2251_v25 = vadd.f32 %v2250_v38, %v4046_v6 }
 0x1b2   : > { %v2189_v8 = vadd.f32 %v2188_v42, %v4034_v47  ;;  %v2225_v33 = vadd.f32 %v2224_v36, %v2210_v39  ;;  %v2287_v28 = vadd.f32 %v2286_v55, %v2272_v3  ;;  %v2242_v3 = vld [vmem:[%s3284_s27] sm:$0x3] }
 0x1b3   : > { %v2252_v4 = vadd.f32 %v4031_v48, %v2251_v25 }
 0x1b4   : > { %v2190_v60 = vadd.f32 %v2189_v8, %v4044_v0  ;;  %v2226_v62 = vadd.f32 %v2225_v33, %v2211_v31  ;;  %v2288_v52 = vadd.f32 %v2287_v28, %v2273_v37  ;;  %v2179_v31 = vld [vmem:[%s3279_s17] sm:$0x3] }
 0x1b5   : > { %v2253_v19 = vadd.f32 %v4041_v23, %v2252_v4  ;;  %v2277_v23 = vmul.f32 %v4070_v30, %v4070_v30 }
 0x1b6   : > { %v2191_v47 = vadd.f32 %v2190_v60, %v4064_v9  ;;  %v2227_v15 = vadd.f32 %v2226_v62, %v2212_v54  ;;  %v2289_v10 = vadd.f32 %v2288_v52, %v2274_v1 }
 0x1b7   : > { %v2254_v6 = vadd.f32 %v2253_v19, %v4061_v32 }
 0x1b8   : > { %v2192_v0 = vadd.f32 %v2191_v47, %v4073_v56  ;;  %v2228_v21 = vadd.f32 %v2227_v15, %v2213_v59  ;;  %v2290_v16 = vadd.f32 %v2289_v10, %v2275_v29 }
 0x1b9   : > { %v2255_v48 = vadd.f32 %v2254_v6, %v4070_v30 }
 0x1ba   : > { %v2193_v9 = vadd.f32 %v2192_v0, %v4059_v12  ;;  %v2229_v26 = vadd.f32 %v2228_v21, %v2214_v61  ;;  %v2291_v43 = vadd.f32 %v2290_v16, %v2276_v41 }
 0x1bb   : > { %v2256_v5 = vadd.f32 %v4057_v35, %v2255_v48 }
 0x1bc   : > { %v2194_v56 = vadd.f32 %v2193_v9, %v4068_v40  ;;  %v2230_v49 = vadd.f32 %v2229_v26, %v2215_v18  ;;  %v2278_v40 = vmul.f32 %v4057_v35, %v4057_v35  ;;  %v2292_v24 = vadd.f32 %v2291_v43, %v2277_v23 }
 0x1bd   : > { %v2257_v13 = vadd.f32 %v4066_v14, %v2256_v5 }
 0x1be   : > { %v2195_v12 = vrot.slane %v2194_v56, 4  ;;  %v2231_v17 = vadd.f32 %v2230_v49, %v2216_v22  ;;  %v2293_v20 = vadd.f32 %v2292_v24, %v2278_v40 }
 0x1bf   : > { %v2258_v32 = vrot.slane %v2257_v13, 4 }
 0x1c0   : > { %v2196_v34 = vadd.f32 %v2195_v12, %v2194_v56  ;;  %v2232_v7 = vrot.slane %v2231_v17, 4  ;;  %v2294_v46 = vadd.f32 %v2293_v20, %v2279_v57 }
 0x1c1   : > { %v2259_v30 = vadd.f32 %v2258_v32, %v2257_v13 }
 0x1c2   : > { %v2197_v44 = vrot.slane %v2196_v34, 2  ;;  %v2233_v11 = vadd.f32 %v2232_v7, %v2231_v17  ;;  %v2295_v53 = vrot.slane %v2294_v46, 4 }
 0x1c3   : > { %v2260_v39 = vrot.slane %v2259_v30, 2 }
 0x1c4   : > { %v2198_v45 = vadd.f32 %v2197_v44, %v2196_v34  ;;  %v2234_v42 = vrot.slane %v2233_v11, 2  ;;  %v2296_v14 = vadd.f32 %v2295_v53, %v2294_v46 }
 0x1c5   : > { %v2261_v35 = vadd.f32 %v2260_v39, %v2259_v30 }
 0x1c6   : > { %v2199_v51 = vrot.slane %v2198_v45, 1  ;;  %v2235_v63 = vadd.f32 %v2234_v42, %v2233_v11  ;;  %v2297_v27 = vrot.slane %v2296_v14, 2 }
 0x1c7   : > { %v2262_v38 = vrot.slane %v2261_v35, 1 }
 0x1c8   : > { %v2200_v2 = vadd.f32 %v2199_v51, %v2198_v45  ;;  %v2236_v8 = vrot.slane %v2235_v63, 1  ;;  %v2298_v54 = vadd.f32 %v2297_v27, %v2296_v14 }
 0x1c9   : > { %v2263_v33 = vadd.f32 %v2262_v38, %v2261_v35 }
 0x1ca   : > { %v2237_v36 = vadd.f32 %v2236_v8, %v2235_v63  ;;  %v2299_v25 = vrot.slane %v2298_v54, 1 }
 0x1cc   : > { %v2239_v50 = vsel %vm2238_vm13, %v2200_v2, %v2237_v36  ;;  %v2300_v58 = vadd.f32 %v2299_v25, %v2298_v54 }
 0x1cd   : > { %v2240_v60 = vadd.f32 %v2239_v50, %v2179_v31 }
 0x1ce   : > { %v2301_v47 = vsel %vm2238_vm13, %v2263_v33, %v2300_v58 }
 0x1cf   : > { %2241 = vst [vmem:[%s3279_s17] sm:$0x3] %v2240_v60  ;;  %v2302_v59 = vadd.f32 %v2301_v47, %v2242_v3 }
 0x1d1   : > { %2303 = vst [vmem:[%s3284_s27] sm:$0x3] %v2302_v59 }
 0x1d2 PF: > { %s16_s22 = sadd.s32 1, %s3185_s22   ;;  %s4201_s18 = smov %s3177_s20 }
 0x1d3   : > { %p13_p12 = scmp.ge.s32.totalorder %s16_s22, 6   ;;  %s4202_s19 = smov %s3181_s21 }
 0x1d4   : > { %s4203_s20 = smov %s4206_s23  ;;  %s4204_s21 = smov %s4210_s24 }
 0x1d5   :  { %15 = sbr.rel (!%p13_p12) target bundleno = 3 (0x3), region = 93 }

</bundles_post_ra>
